<compile_context>
chip_gen: v5e
topology: v5e:2x2
jax: 0.10.0
libtpu: 0.0.40
codegen_flags: <defaults>
</compile_context>

<pallas_src>
import functools

import jax
import jax.numpy as jnp
from jax.experimental import pallas as pl
from jax.experimental.pallas import tpu as pltpu


# ----------------------------------------------------------------------------
# Single fused kernel: encoder LSTM + CTC/key heads + greedy attention decoder
# ----------------------------------------------------------------------------

def asr_kernel(len_ref,                                   # SMEM scalar-prefetch: [B] int32
               x_ref, enc_wih_ref, enc_whh_ref, enc_b_ref,
               head_w_ref, head_b_ref, q_b_ref,
               dec_hw_ref, wih_char_ref, wih_ctx_ref, dec_b_ref,
               char_w_ref, char_b_ref, emb_ref,
               ctc_ref, att_out_ref, att_seq_ref,
               *, B, T, He, Hd, A, V, S, inv_temp):
    f32 = jnp.float32

    # ------------------- Encoder LSTM (time loop unrolled, T static) -------------------
    # Hoisted input projection for all time steps: one MXU matmul outside the recurrence.
    xp = jnp.dot(x_ref[...], enc_wih_ref[...], preferred_element_type=f32) + enc_b_ref[...]
    enc_whh = enc_whh_ref[...]

    h = jnp.zeros((B, He), f32)
    c = jnp.zeros((B, He), f32)
    h_steps = []
    for t in range(T):                                    # static slices, full LLO visibility
        gates = xp[t * B:(t + 1) * B, :] + jnp.dot(h, enc_whh, preferred_element_type=f32)
        # Fused [B, 4He] gate dot (4He = 128 -> one MXU pass even on v5e).
        i_g = jax.nn.sigmoid(gates[:, 0 * He:1 * He])
        f_g = jax.nn.sigmoid(gates[:, 1 * He:2 * He])
        g_g = jnp.tanh(gates[:, 2 * He:3 * He])
        o_g = jax.nn.sigmoid(gates[:, 3 * He:4 * He])
        c = f_g * c + i_g * g_g
        h = o_g * jnp.tanh(c)
        h_steps.append(h)

    # encode_feature directly in final [B, T, He] layout; never leaves VMEM.
    enc = jnp.stack(h_steps, axis=1)                      # [B, T, He]
    enc_flat = enc.reshape(B * T, He)                     # row = b*T + t

    # ------------- CTC head (log_softmax) + attention key projection (one dot) ---------
    heads = jnp.dot(enc_flat, head_w_ref[...], preferred_element_type=f32) + head_b_ref[...]
    ctc_logits = heads[:, :V]
    m = jnp.max(ctc_logits, axis=-1, keepdims=True)
    z = ctc_logits - m
    ctc_log_probs = z - jnp.log(jnp.sum(jnp.exp(z), axis=-1, keepdims=True))
    ctc_ref[...] = ctc_log_probs.reshape(B, T, V)         # one slab store

    key = jnp.tanh(heads[:, V:]).reshape(B, T, A)         # proj_k + tanh
    value = enc                                           # v_proj = False

    # --------------- attention mask bias from encode_len (SMEM scalars) ----------------
    iota_t = jax.lax.broadcasted_iota(jnp.int32, (1, T), 1)
    bias = jnp.concatenate(
        [jnp.where(iota_t >= len_ref[b], -1e9, 0.0) for b in range(B)], axis=0)  # [B, T] f32

    # --------------- greedy attention decoder (decode loop fully unrolled) -------------
    q_b = q_b_ref[...]
    dec_hw = dec_hw_ref[...]                              # [Hd, 4Hd + A] = [W_hh | q_w]
    wih_char = wih_char_ref[...]
    wih_ctx = wih_ctx_ref[...]
    dec_b = dec_b_ref[...]
    char_w = char_w_ref[...]
    char_b = char_b_ref[...]
    emb = emb_ref[...]

    h_d = jnp.zeros((B, Hd), f32)
    c_d = jnp.zeros((B, Hd), f32)
    # last_char = pre_embed(<sos> = 0): broadcast embedding row 0.
    last_char = jnp.broadcast_to(emb_ref[pl.ds(0, 1), :], (B, Hd))

    logit_steps = []
    attn_steps = []
    for _ in range(S):
        # Merged h-dependent matmul: gates_h (4Hd cols) and query pre-activation (A cols).
        hW = jnp.dot(h_d, dec_hw, preferred_element_type=f32)       # [B, 4Hd + A]
        gates_h = hW[:, :4 * Hd]
        q = jnp.tanh(hW[:, 4 * Hd:] + q_b)                          # [B, A]

        # ScaleDot attention (num_head=1), VPU form: no degenerate M=1 matmuls.
        energy = jnp.sum(q[:, None, :] * key, axis=-1) * inv_temp + bias   # [B, T]
        e_max = jnp.max(energy, axis=-1, keepdims=True)
        e = jnp.exp(energy - e_max)
        attn = e / jnp.sum(e, axis=-1, keepdims=True)                      # [B, T]
        ctx = jnp.sum(attn[:, :, None] * value, axis=1)                    # [B, He]

        # Decoder LSTM cell: input = concat([last_char, ctx]) realised as two dots.
        gates = (jnp.dot(last_char, wih_char, preferred_element_type=f32)
                 + jnp.dot(ctx, wih_ctx, preferred_element_type=f32)
                 + gates_h + dec_b)                                        # [B, 4Hd]
        i_g = jax.nn.sigmoid(gates[:, 0 * Hd:1 * Hd])
        f_g = jax.nn.sigmoid(gates[:, 1 * Hd:2 * Hd])
        g_g = jnp.tanh(gates[:, 2 * Hd:3 * Hd])
        o_g = jax.nn.sigmoid(gates[:, 3 * Hd:4 * Hd])
        c_d = f_g * c_d + i_g * g_g
        h_d = o_g * jnp.tanh(c_d)

        # char_trans: raw logits (matches the PyTorch output when emb_decoder is None).
        logits = jnp.dot(h_d, char_w, preferred_element_type=f32) + char_b  # [B, V]

        # Greedy feedback: embed[argmax(logits)] via first-max one-hot @ embed (MXU).
        lane = jax.lax.broadcasted_iota(jnp.int32, logits.shape, 1)
        idx = jnp.min(jnp.where(logits == jnp.max(logits, axis=-1, keepdims=True), lane, V),
                      axis=-1, keepdims=True)                               # first max
        onehot = (lane == idx).astype(f32)
        last_char = jnp.dot(onehot, emb, preferred_element_type=f32)        # [B, Hd]

        logit_steps.append(logits)
        attn_steps.append(attn)

    # One lane-dense slab store each, already in final layout.
    att_out_ref[...] = jnp.stack(logit_steps, axis=1)     # [B, S, V]
    att_seq_ref[...] = jnp.stack(attn_steps, axis=1)      # [B, S, T]


# ----------------------------------------------------------------------------
# Parameters + jitted forward (mirrors ASR.forward, inference path)
# ----------------------------------------------------------------------------

def init_params(key, d_in, enc_dim, dec_dim, att_dim, vocab):
    ks = jax.random.split(key, 16)
    s = 0.1
    n = jax.random.normal
    return {
        # Encoder LSTM (1 layer, unidirectional), gate order i,f,g,o.
        "enc_wih": s * n(ks[0], (d_in, 4 * enc_dim), jnp.float32),
        "enc_whh": s * n(ks[1], (enc_dim, 4 * enc_dim), jnp.float32),
        "enc_b":   s * n(ks[2], (1, 4 * enc_dim), jnp.float32),
        # CTC layer
        "ctc_w":   s * n(ks[3], (enc_dim, vocab), jnp.float32),
        "ctc_b":   s * n(ks[4], (1, vocab), jnp.float32),
        # Embedding (pre_embed)
        "embed":   s * n(ks[5], (vocab, dec_dim), jnp.float32),
        # Decoder LSTM (input = [last_char(dec_dim), context(enc_dim)])
        "dec_wih": s * n(ks[6], (dec_dim + enc_dim, 4 * dec_dim), jnp.float32),
        "dec_whh": s * n(ks[7], (dec_dim, 4 * dec_dim), jnp.float32),
        "dec_b":   s * n(ks[8], (1, 4 * dec_dim), jnp.float32),
        # char_trans
        "char_w":  s * n(ks[9], (dec_dim, vocab), jnp.float32),
        "char_b":  s * n(ks[10], (1, vocab), jnp.float32),
        # Attention projections (query_dim = dec_dim * layer(=1))
        "q_w":     s * n(ks[11], (dec_dim, att_dim), jnp.float32),
        "q_b":     s * n(ks[12], (1, att_dim), jnp.float32),
        "k_w":     s * n(ks[13], (enc_dim, att_dim), jnp.float32),
        "k_b":     s * n(ks[14], (1, att_dim), jnp.float32),
    }


@functools.partial(jax.jit, static_argnames=("decode_step", "temperature"))
def asr_forward(params, audio_feature, feature_len, decode_step, temperature=1.0):
    """Returns (ctc_output, encode_len, att_output, att_seq, dec_state=None)."""
    B, T, In = audio_feature.shape
    He = params["enc_whh"].shape[0]
    Hd = params["dec_whh"].shape[0]
    A = params["q_w"].shape[1]
    V = params["ctc_w"].shape[1]
    S = decode_step

    # One-time input re-layout to time-major 2D rows (tiny; keeps the recurrence 2D).
    x2d = jnp.transpose(audio_feature, (1, 0, 2)).reshape(T * B, In)

    # One-time weight packing (merged dots per the perf review).
    head_w = jnp.concatenate([params["ctc_w"], params["k_w"]], axis=1)    # [He, V+A]
    head_b = jnp.concatenate([params["ctc_b"], params["k_b"]], axis=1)    # [1, V+A]
    dec_hw = jnp.concatenate([params["dec_whh"], params["q_w"]], axis=1)  # [Hd, 4Hd+A]
    wih_char = params["dec_wih"][:Hd]                                     # last_char rows
    wih_ctx = params["dec_wih"][Hd:]                                      # context rows

    kern = functools.partial(asr_kernel, B=B, T=T, He=He, Hd=Hd, A=A, V=V, S=S,
                             inv_temp=float(1.0 / temperature))

    ctc_out, att_out, att_seq = pl.pallas_call(
        kern,
        out_shape=(jax.ShapeDtypeStruct((B, T, V), jnp.float32),
                   jax.ShapeDtypeStruct((B, S, V), jnp.float32),
                   jax.ShapeDtypeStruct((B, S, T), jnp.float32)),
        grid_spec=pltpu.PrefetchScalarGridSpec(
            num_scalar_prefetch=1,                                        # feature_len -> SMEM
            grid=(1,),
            in_specs=[
                pl.BlockSpec((T * B, In), lambda i, lens: (0, 0)),        # x (time-major rows)
                pl.BlockSpec((In, 4 * He), lambda i, lens: (0, 0)),       # enc W_ih
                pl.BlockSpec((He, 4 * He), lambda i, lens: (0, 0)),       # enc W_hh
                pl.BlockSpec((1, 4 * He), lambda i, lens: (0, 0)),        # enc bias
                pl.BlockSpec((He, V + A), lambda i, lens: (0, 0)),        # [ctc_w | k_w]
                pl.BlockSpec((1, V + A), lambda i, lens: (0, 0)),         # [ctc_b | k_b]
                pl.BlockSpec((1, A), lambda i, lens: (0, 0)),             # proj_q bias
                pl.BlockSpec((Hd, 4 * Hd + A), lambda i, lens: (0, 0)),   # [dec W_hh | q_w]
                pl.BlockSpec((Hd, 4 * Hd), lambda i, lens: (0, 0)),       # dec W_ih (last_char)
                pl.BlockSpec((He, 4 * Hd), lambda i, lens: (0, 0)),       # dec W_ih (context)
                pl.BlockSpec((1, 4 * Hd), lambda i, lens: (0, 0)),        # dec bias
                pl.BlockSpec((Hd, V), lambda i, lens: (0, 0)),            # char_trans weight
                pl.BlockSpec((1, V), lambda i, lens: (0, 0)),             # char_trans bias
                pl.BlockSpec((V, Hd), lambda i, lens: (0, 0)),            # embedding table
            ],
            out_specs=(pl.BlockSpec((B, T, V), lambda i, lens: (0, 0, 0)),
                       pl.BlockSpec((B, S, V), lambda i, lens: (0, 0, 0)),
                       pl.BlockSpec((B, S, T), lambda i, lens: (0, 0, 0))),
        ),
        compiler_params=pltpu.CompilerParams(dimension_semantics=("arbitrary",)),
    )(feature_len, x2d, params["enc_wih"], params["enc_whh"], params["enc_b"],
      head_w, head_b, params["q_b"], dec_hw, wih_char, wih_ctx, params["dec_b"],
      params["char_w"], params["char_b"], params["embed"])

    encode_len = feature_len                       # no time downsampling in this config
    att_seq4 = att_seq[:, None, :, :]              # [B, 1(num_head), S, T]
    return ctc_out, encode_len, att_out, att_seq4, None


# ----------------------------------------------------------------------------
# Main
# ----------------------------------------------------------------------------

if __name__ == "__main__":
    key = jax.random.PRNGKey(0)
    k_param, k_audio = jax.random.split(key)

    B, T, D_IN = 2, 8, 16
    ENC_DIM, DEC_DIM, ATT_DIM, VOCAB = 32, 32, 32, 12
    DECODE_STEP = 4

    params = init_params(k_param, D_IN, ENC_DIM, DEC_DIM, ATT_DIM, VOCAB)
    audio_feature = jax.random.normal(k_audio, (B, T, D_IN), jnp.float32)
    feature_len = jnp.array([T, T - 2], jnp.int32)

    ctc_out, enc_len, att_out, att_seq, dec_state = asr_forward(
        params, audio_feature, feature_len, decode_step=DECODE_STEP)

    jax.block_until_ready(ctc_out)
    jax.block_until_ready(enc_len)
    jax.block_until_ready(att_out)
    jax.block_until_ready(att_seq)

    assert ctc_out.shape == (B, T, VOCAB)
    assert att_out.shape == (B, DECODE_STEP, VOCAB)
    assert att_seq.shape == (B, 1, DECODE_STEP, T)
    assert dec_state is None
    print("KERNEL_OK")
</pallas_src>

<mosaic_0001>
module attributes {stable_mosaic.version = 11 : i64} {
  func.func @asr_kernel(%arg0: i32, %arg1: memref<2xi32, #tpu.memory_space<smem>>, %arg2: memref<16x16xf32, #tpu.memory_space<vmem>>, %arg3: memref<16x128xf32, #tpu.memory_space<vmem>>, %arg4: memref<32x128xf32, #tpu.memory_space<vmem>>, %arg5: memref<1x128xf32, #tpu.memory_space<vmem>>, %arg6: memref<32x44xf32, #tpu.memory_space<vmem>>, %arg7: memref<1x44xf32, #tpu.memory_space<vmem>>, %arg8: memref<1x32xf32, #tpu.memory_space<vmem>>, %arg9: memref<32x160xf32, #tpu.memory_space<vmem>>, %arg10: memref<32x128xf32, #tpu.memory_space<vmem>>, %arg11: memref<32x128xf32, #tpu.memory_space<vmem>>, %arg12: memref<1x128xf32, #tpu.memory_space<vmem>>, %arg13: memref<32x12xf32, #tpu.memory_space<vmem>>, %arg14: memref<1x12xf32, #tpu.memory_space<vmem>>, %arg15: memref<12x32xf32, #tpu.memory_space<vmem>>, %arg16: memref<2x8x12xf32, #tpu.memory_space<vmem>>, %arg17: memref<2x4x12xf32, #tpu.memory_space<vmem>>, %arg18: memref<2x4x8xf32, #tpu.memory_space<vmem>>) attributes {dimension_semantics = [#tpu.dimension_semantics<arbitrary>], iteration_bounds = array<i64: 1>, scalar_prefetch = 1 : i64, scratch_operands = 0 : i64, tpu.core_type = #tpu.core_type<tc>, window_params = [{pipeline_mode = #tpu.pipeline_mode<synchronous>, transform_indices = @transform_0, window_bounds = array<i64: 16, 16>}, {pipeline_mode = #tpu.pipeline_mode<synchronous>, transform_indices = @transform_1, window_bounds = array<i64: 16, 128>}, {pipeline_mode = #tpu.pipeline_mode<synchronous>, transform_indices = @transform_2, window_bounds = array<i64: 32, 128>}, {pipeline_mode = #tpu.pipeline_mode<synchronous>, transform_indices = @transform_3, window_bounds = array<i64: 1, 128>}, {pipeline_mode = #tpu.pipeline_mode<synchronous>, transform_indices = @transform_4, window_bounds = array<i64: 32, 44>}, {pipeline_mode = #tpu.pipeline_mode<synchronous>, transform_indices = @transform_5, window_bounds = array<i64: 1, 44>}, {pipeline_mode = #tpu.pipeline_mode<synchronous>, transform_indices = @transform_6, window_bounds = array<i64: 1, 32>}, {pipeline_mode = #tpu.pipeline_mode<synchronous>, transform_indices = @transform_7, window_bounds = array<i64: 32, 160>}, {pipeline_mode = #tpu.pipeline_mode<synchronous>, transform_indices = @transform_8, window_bounds = array<i64: 32, 128>}, {pipeline_mode = #tpu.pipeline_mode<synchronous>, transform_indices = @transform_9, window_bounds = array<i64: 32, 128>}, {pipeline_mode = #tpu.pipeline_mode<synchronous>, transform_indices = @transform_10, window_bounds = array<i64: 1, 128>}, {pipeline_mode = #tpu.pipeline_mode<synchronous>, transform_indices = @transform_11, window_bounds = array<i64: 32, 12>}, {pipeline_mode = #tpu.pipeline_mode<synchronous>, transform_indices = @transform_12, window_bounds = array<i64: 1, 12>}, {pipeline_mode = #tpu.pipeline_mode<synchronous>, transform_indices = @transform_13, window_bounds = array<i64: 12, 32>}, {pipeline_mode = #tpu.pipeline_mode<synchronous>, transform_indices = @transform_14, window_bounds = array<i64: 2, 8, 12>}, {pipeline_mode = #tpu.pipeline_mode<synchronous>, transform_indices = @transform_15, window_bounds = array<i64: 2, 4, 12>}, {pipeline_mode = #tpu.pipeline_mode<synchronous>, transform_indices = @transform_16, window_bounds = array<i64: 2, 4, 8>}]} {
    %c0 = arith.constant 0 : index
    %c0_0 = arith.constant 0 : index
    %0 = vector.load %arg2[%c0, %c0_0] : memref<16x16xf32, #tpu.memory_space<vmem>>, vector<16x16xf32>
    %c0_1 = arith.constant 0 : index
    %c0_2 = arith.constant 0 : index
    %1 = vector.load %arg3[%c0_1, %c0_2] : memref<16x128xf32, #tpu.memory_space<vmem>>, vector<16x128xf32>
    %cst = arith.constant dense<0.000000e+00> : vector<16x128xf32>
    %2 = tpu.matmul %0, %1, %cst {dimension_numbers = #tpu.dot_dimension_numbers<[1], [0], [0], [1], [0, 0, 1, 1], [], []>} : vector<16x16xf32>, vector<16x128xf32>, vector<16x128xf32> -> vector<16x128xf32>
    %c0_3 = arith.constant 0 : index
    %c0_4 = arith.constant 0 : index
    %3 = vector.load %arg5[%c0_3, %c0_4] : memref<1x128xf32, #tpu.memory_space<vmem>>, vector<1x128xf32>
    %4 = vector.broadcast %3 : vector<1x128xf32> to vector<16x128xf32>
    %5 = arith.addf %2, %4 : vector<16x128xf32>
    %c0_5 = arith.constant 0 : index
    %c0_6 = arith.constant 0 : index
    %6 = vector.load %arg4[%c0_5, %c0_6] : memref<32x128xf32, #tpu.memory_space<vmem>>, vector<32x128xf32>
    %cst_7 = arith.constant 0.000000e+00 : f32
    %7 = vector.broadcast %cst_7 : f32 to vector<2x32xf32>
    %cst_8 = arith.constant 0.000000e+00 : f32
    %8 = vector.broadcast %cst_8 : f32 to vector<2x32xf32>
    %9 = vector.extract_strided_slice %5 {offsets = [0, 0], sizes = [2, 128], strides = [1, 1]} : vector<16x128xf32> to vector<2x128xf32>
    %cst_9 = arith.constant dense<0.000000e+00> : vector<2x128xf32>
    %10 = tpu.matmul %7, %6, %cst_9 {dimension_numbers = #tpu.dot_dimension_numbers<[1], [0], [0], [1], [0, 0, 1, 1], [], []>} : vector<2x32xf32>, vector<32x128xf32>, vector<2x128xf32> -> vector<2x128xf32>
    %11 = arith.addf %9, %10 : vector<2x128xf32>
    %12 = vector.extract_strided_slice %11 {offsets = [0, 0], sizes = [2, 32], strides = [1, 1]} : vector<2x128xf32> to vector<2x32xf32>
    %13 = arith.negf %12 : vector<2x32xf32>
    %14 = math.exp %13 : vector<2x32xf32>
    %cst_10 = arith.constant 1.000000e+00 : f32
    %15 = vector.broadcast %cst_10 : f32 to vector<2x32xf32>
    %16 = arith.addf %15, %14 : vector<2x32xf32>
    %17 = arith.divf %15, %16 : vector<2x32xf32>
    %18 = vector.extract_strided_slice %11 {offsets = [0, 32], sizes = [2, 32], strides = [1, 1]} : vector<2x128xf32> to vector<2x32xf32>
    %19 = arith.negf %18 : vector<2x32xf32>
    %20 = math.exp %19 : vector<2x32xf32>
    %cst_11 = arith.constant 1.000000e+00 : f32
    %21 = vector.broadcast %cst_11 : f32 to vector<2x32xf32>
    %22 = arith.addf %21, %20 : vector<2x32xf32>
    %23 = arith.divf %21, %22 : vector<2x32xf32>
    %24 = vector.extract_strided_slice %11 {offsets = [0, 64], sizes = [2, 32], strides = [1, 1]} : vector<2x128xf32> to vector<2x32xf32>
    %25 = math.tanh %24 : vector<2x32xf32>
    %26 = vector.extract_strided_slice %11 {offsets = [0, 96], sizes = [2, 32], strides = [1, 1]} : vector<2x128xf32> to vector<2x32xf32>
    %27 = arith.negf %26 : vector<2x32xf32>
    %28 = math.exp %27 : vector<2x32xf32>
    %cst_12 = arith.constant 1.000000e+00 : f32
    %29 = vector.broadcast %cst_12 : f32 to vector<2x32xf32>
    %30 = arith.addf %29, %28 : vector<2x32xf32>
    %31 = arith.divf %29, %30 : vector<2x32xf32>
    %32 = arith.mulf %23, %8 : vector<2x32xf32>
    %33 = arith.mulf %17, %25 : vector<2x32xf32>
    %34 = arith.addf %32, %33 : vector<2x32xf32>
    %35 = math.tanh %34 : vector<2x32xf32>
    %36 = arith.mulf %31, %35 : vector<2x32xf32>
    %37 = vector.extract_strided_slice %5 {offsets = [2, 0], sizes = [2, 128], strides = [1, 1]} : vector<16x128xf32> to vector<2x128xf32>
    %cst_13 = arith.constant dense<0.000000e+00> : vector<2x128xf32>
    %38 = tpu.matmul %36, %6, %cst_13 {dimension_numbers = #tpu.dot_dimension_numbers<[1], [0], [0], [1], [0, 0, 1, 1], [], []>} : vector<2x32xf32>, vector<32x128xf32>, vector<2x128xf32> -> vector<2x128xf32>
    %39 = arith.addf %37, %38 : vector<2x128xf32>
    %40 = vector.extract_strided_slice %39 {offsets = [0, 0], sizes = [2, 32], strides = [1, 1]} : vector<2x128xf32> to vector<2x32xf32>
    %41 = arith.negf %40 : vector<2x32xf32>
    %42 = math.exp %41 : vector<2x32xf32>
    %cst_14 = arith.constant 1.000000e+00 : f32
    %43 = vector.broadcast %cst_14 : f32 to vector<2x32xf32>
    %44 = arith.addf %43, %42 : vector<2x32xf32>
    %45 = arith.divf %43, %44 : vector<2x32xf32>
    %46 = vector.extract_strided_slice %39 {offsets = [0, 32], sizes = [2, 32], strides = [1, 1]} : vector<2x128xf32> to vector<2x32xf32>
    %47 = arith.negf %46 : vector<2x32xf32>
    %48 = math.exp %47 : vector<2x32xf32>
    %cst_15 = arith.constant 1.000000e+00 : f32
    %49 = vector.broadcast %cst_15 : f32 to vector<2x32xf32>
    %50 = arith.addf %49, %48 : vector<2x32xf32>
    %51 = arith.divf %49, %50 : vector<2x32xf32>
    %52 = vector.extract_strided_slice %39 {offsets = [0, 64], sizes = [2, 32], strides = [1, 1]} : vector<2x128xf32> to vector<2x32xf32>
    %53 = math.tanh %52 : vector<2x32xf32>
    %54 = vector.extract_strided_slice %39 {offsets = [0, 96], sizes = [2, 32], strides = [1, 1]} : vector<2x128xf32> to vector<2x32xf32>
    %55 = arith.negf %54 : vector<2x32xf32>
    %56 = math.exp %55 : vector<2x32xf32>
    %cst_16 = arith.constant 1.000000e+00 : f32
    %57 = vector.broadcast %cst_16 : f32 to vector<2x32xf32>
    %58 = arith.addf %57, %56 : vector<2x32xf32>
    %59 = arith.divf %57, %58 : vector<2x32xf32>
    %60 = arith.mulf %51, %34 : vector<2x32xf32>
    %61 = arith.mulf %45, %53 : vector<2x32xf32>
    %62 = arith.addf %60, %61 : vector<2x32xf32>
    %63 = math.tanh %62 : vector<2x32xf32>
    %64 = arith.mulf %59, %63 : vector<2x32xf32>
    %65 = vector.extract_strided_slice %5 {offsets = [4, 0], sizes = [2, 128], strides = [1, 1]} : vector<16x128xf32> to vector<2x128xf32>
    %cst_17 = arith.constant dense<0.000000e+00> : vector<2x128xf32>
    %66 = tpu.matmul %64, %6, %cst_17 {dimension_numbers = #tpu.dot_dimension_numbers<[1], [0], [0], [1], [0, 0, 1, 1], [], []>} : vector<2x32xf32>, vector<32x128xf32>, vector<2x128xf32> -> vector<2x128xf32>
    %67 = arith.addf %65, %66 : vector<2x128xf32>
    %68 = vector.extract_strided_slice %67 {offsets = [0, 0], sizes = [2, 32], strides = [1, 1]} : vector<2x128xf32> to vector<2x32xf32>
    %69 = arith.negf %68 : vector<2x32xf32>
    %70 = math.exp %69 : vector<2x32xf32>
    %cst_18 = arith.constant 1.000000e+00 : f32
    %71 = vector.broadcast %cst_18 : f32 to vector<2x32xf32>
    %72 = arith.addf %71, %70 : vector<2x32xf32>
    %73 = arith.divf %71, %72 : vector<2x32xf32>
    %74 = vector.extract_strided_slice %67 {offsets = [0, 32], sizes = [2, 32], strides = [1, 1]} : vector<2x128xf32> to vector<2x32xf32>
    %75 = arith.negf %74 : vector<2x32xf32>
    %76 = math.exp %75 : vector<2x32xf32>
    %cst_19 = arith.constant 1.000000e+00 : f32
    %77 = vector.broadcast %cst_19 : f32 to vector<2x32xf32>
    %78 = arith.addf %77, %76 : vector<2x32xf32>
    %79 = arith.divf %77, %78 : vector<2x32xf32>
    %80 = vector.extract_strided_slice %67 {offsets = [0, 64], sizes = [2, 32], strides = [1, 1]} : vector<2x128xf32> to vector<2x32xf32>
    %81 = math.tanh %80 : vector<2x32xf32>
    %82 = vector.extract_strided_slice %67 {offsets = [0, 96], sizes = [2, 32], strides = [1, 1]} : vector<2x128xf32> to vector<2x32xf32>
    %83 = arith.negf %82 : vector<2x32xf32>
    %84 = math.exp %83 : vector<2x32xf32>
    %cst_20 = arith.constant 1.000000e+00 : f32
    %85 = vector.broadcast %cst_20 : f32 to vector<2x32xf32>
    %86 = arith.addf %85, %84 : vector<2x32xf32>
    %87 = arith.divf %85, %86 : vector<2x32xf32>
    %88 = arith.mulf %79, %62 : vector<2x32xf32>
    %89 = arith.mulf %73, %81 : vector<2x32xf32>
    %90 = arith.addf %88, %89 : vector<2x32xf32>
    %91 = math.tanh %90 : vector<2x32xf32>
    %92 = arith.mulf %87, %91 : vector<2x32xf32>
    %93 = vector.extract_strided_slice %5 {offsets = [6, 0], sizes = [2, 128], strides = [1, 1]} : vector<16x128xf32> to vector<2x128xf32>
    %cst_21 = arith.constant dense<0.000000e+00> : vector<2x128xf32>
    %94 = tpu.matmul %92, %6, %cst_21 {dimension_numbers = #tpu.dot_dimension_numbers<[1], [0], [0], [1], [0, 0, 1, 1], [], []>} : vector<2x32xf32>, vector<32x128xf32>, vector<2x128xf32> -> vector<2x128xf32>
    %95 = arith.addf %93, %94 : vector<2x128xf32>
    %96 = vector.extract_strided_slice %95 {offsets = [0, 0], sizes = [2, 32], strides = [1, 1]} : vector<2x128xf32> to vector<2x32xf32>
    %97 = arith.negf %96 : vector<2x32xf32>
    %98 = math.exp %97 : vector<2x32xf32>
    %cst_22 = arith.constant 1.000000e+00 : f32
    %99 = vector.broadcast %cst_22 : f32 to vector<2x32xf32>
    %100 = arith.addf %99, %98 : vector<2x32xf32>
    %101 = arith.divf %99, %100 : vector<2x32xf32>
    %102 = vector.extract_strided_slice %95 {offsets = [0, 32], sizes = [2, 32], strides = [1, 1]} : vector<2x128xf32> to vector<2x32xf32>
    %103 = arith.negf %102 : vector<2x32xf32>
    %104 = math.exp %103 : vector<2x32xf32>
    %cst_23 = arith.constant 1.000000e+00 : f32
    %105 = vector.broadcast %cst_23 : f32 to vector<2x32xf32>
    %106 = arith.addf %105, %104 : vector<2x32xf32>
    %107 = arith.divf %105, %106 : vector<2x32xf32>
    %108 = vector.extract_strided_slice %95 {offsets = [0, 64], sizes = [2, 32], strides = [1, 1]} : vector<2x128xf32> to vector<2x32xf32>
    %109 = math.tanh %108 : vector<2x32xf32>
    %110 = vector.extract_strided_slice %95 {offsets = [0, 96], sizes = [2, 32], strides = [1, 1]} : vector<2x128xf32> to vector<2x32xf32>
    %111 = arith.negf %110 : vector<2x32xf32>
    %112 = math.exp %111 : vector<2x32xf32>
    %cst_24 = arith.constant 1.000000e+00 : f32
    %113 = vector.broadcast %cst_24 : f32 to vector<2x32xf32>
    %114 = arith.addf %113, %112 : vector<2x32xf32>
    %115 = arith.divf %113, %114 : vector<2x32xf32>
    %116 = arith.mulf %107, %90 : vector<2x32xf32>
    %117 = arith.mulf %101, %109 : vector<2x32xf32>
    %118 = arith.addf %116, %117 : vector<2x32xf32>
    %119 = math.tanh %118 : vector<2x32xf32>
    %120 = arith.mulf %115, %119 : vector<2x32xf32>
    %121 = vector.extract_strided_slice %5 {offsets = [8, 0], sizes = [2, 128], strides = [1, 1]} : vector<16x128xf32> to vector<2x128xf32>
    %cst_25 = arith.constant dense<0.000000e+00> : vector<2x128xf32>
    %122 = tpu.matmul %120, %6, %cst_25 {dimension_numbers = #tpu.dot_dimension_numbers<[1], [0], [0], [1], [0, 0, 1, 1], [], []>} : vector<2x32xf32>, vector<32x128xf32>, vector<2x128xf32> -> vector<2x128xf32>
    %123 = arith.addf %121, %122 : vector<2x128xf32>
    %124 = vector.extract_strided_slice %123 {offsets = [0, 0], sizes = [2, 32], strides = [1, 1]} : vector<2x128xf32> to vector<2x32xf32>
    %125 = arith.negf %124 : vector<2x32xf32>
    %126 = math.exp %125 : vector<2x32xf32>
    %cst_26 = arith.constant 1.000000e+00 : f32
    %127 = vector.broadcast %cst_26 : f32 to vector<2x32xf32>
    %128 = arith.addf %127, %126 : vector<2x32xf32>
    %129 = arith.divf %127, %128 : vector<2x32xf32>
    %130 = vector.extract_strided_slice %123 {offsets = [0, 32], sizes = [2, 32], strides = [1, 1]} : vector<2x128xf32> to vector<2x32xf32>
    %131 = arith.negf %130 : vector<2x32xf32>
    %132 = math.exp %131 : vector<2x32xf32>
    %cst_27 = arith.constant 1.000000e+00 : f32
    %133 = vector.broadcast %cst_27 : f32 to vector<2x32xf32>
    %134 = arith.addf %133, %132 : vector<2x32xf32>
    %135 = arith.divf %133, %134 : vector<2x32xf32>
    %136 = vector.extract_strided_slice %123 {offsets = [0, 64], sizes = [2, 32], strides = [1, 1]} : vector<2x128xf32> to vector<2x32xf32>
    %137 = math.tanh %136 : vector<2x32xf32>
    %138 = vector.extract_strided_slice %123 {offsets = [0, 96], sizes = [2, 32], strides = [1, 1]} : vector<2x128xf32> to vector<2x32xf32>
    %139 = arith.negf %138 : vector<2x32xf32>
    %140 = math.exp %139 : vector<2x32xf32>
    %cst_28 = arith.constant 1.000000e+00 : f32
    %141 = vector.broadcast %cst_28 : f32 to vector<2x32xf32>
    %142 = arith.addf %141, %140 : vector<2x32xf32>
    %143 = arith.divf %141, %142 : vector<2x32xf32>
    %144 = arith.mulf %135, %118 : vector<2x32xf32>
    %145 = arith.mulf %129, %137 : vector<2x32xf32>
    %146 = arith.addf %144, %145 : vector<2x32xf32>
    %147 = math.tanh %146 : vector<2x32xf32>
    %148 = arith.mulf %143, %147 : vector<2x32xf32>
    %149 = vector.extract_strided_slice %5 {offsets = [10, 0], sizes = [2, 128], strides = [1, 1]} : vector<16x128xf32> to vector<2x128xf32>
    %cst_29 = arith.constant dense<0.000000e+00> : vector<2x128xf32>
    %150 = tpu.matmul %148, %6, %cst_29 {dimension_numbers = #tpu.dot_dimension_numbers<[1], [0], [0], [1], [0, 0, 1, 1], [], []>} : vector<2x32xf32>, vector<32x128xf32>, vector<2x128xf32> -> vector<2x128xf32>
    %151 = arith.addf %149, %150 : vector<2x128xf32>
    %152 = vector.extract_strided_slice %151 {offsets = [0, 0], sizes = [2, 32], strides = [1, 1]} : vector<2x128xf32> to vector<2x32xf32>
    %153 = arith.negf %152 : vector<2x32xf32>
    %154 = math.exp %153 : vector<2x32xf32>
    %cst_30 = arith.constant 1.000000e+00 : f32
    %155 = vector.broadcast %cst_30 : f32 to vector<2x32xf32>
    %156 = arith.addf %155, %154 : vector<2x32xf32>
    %157 = arith.divf %155, %156 : vector<2x32xf32>
    %158 = vector.extract_strided_slice %151 {offsets = [0, 32], sizes = [2, 32], strides = [1, 1]} : vector<2x128xf32> to vector<2x32xf32>
    %159 = arith.negf %158 : vector<2x32xf32>
    %160 = math.exp %159 : vector<2x32xf32>
    %cst_31 = arith.constant 1.000000e+00 : f32
    %161 = vector.broadcast %cst_31 : f32 to vector<2x32xf32>
    %162 = arith.addf %161, %160 : vector<2x32xf32>
    %163 = arith.divf %161, %162 : vector<2x32xf32>
    %164 = vector.extract_strided_slice %151 {offsets = [0, 64], sizes = [2, 32], strides = [1, 1]} : vector<2x128xf32> to vector<2x32xf32>
    %165 = math.tanh %164 : vector<2x32xf32>
    %166 = vector.extract_strided_slice %151 {offsets = [0, 96], sizes = [2, 32], strides = [1, 1]} : vector<2x128xf32> to vector<2x32xf32>
    %167 = arith.negf %166 : vector<2x32xf32>
    %168 = math.exp %167 : vector<2x32xf32>
    %cst_32 = arith.constant 1.000000e+00 : f32
    %169 = vector.broadcast %cst_32 : f32 to vector<2x32xf32>
    %170 = arith.addf %169, %168 : vector<2x32xf32>
    %171 = arith.divf %169, %170 : vector<2x32xf32>
    %172 = arith.mulf %163, %146 : vector<2x32xf32>
    %173 = arith.mulf %157, %165 : vector<2x32xf32>
    %174 = arith.addf %172, %173 : vector<2x32xf32>
    %175 = math.tanh %174 : vector<2x32xf32>
    %176 = arith.mulf %171, %175 : vector<2x32xf32>
    %177 = vector.extract_strided_slice %5 {offsets = [12, 0], sizes = [2, 128], strides = [1, 1]} : vector<16x128xf32> to vector<2x128xf32>
    %cst_33 = arith.constant dense<0.000000e+00> : vector<2x128xf32>
    %178 = tpu.matmul %176, %6, %cst_33 {dimension_numbers = #tpu.dot_dimension_numbers<[1], [0], [0], [1], [0, 0, 1, 1], [], []>} : vector<2x32xf32>, vector<32x128xf32>, vector<2x128xf32> -> vector<2x128xf32>
    %179 = arith.addf %177, %178 : vector<2x128xf32>
    %180 = vector.extract_strided_slice %179 {offsets = [0, 0], sizes = [2, 32], strides = [1, 1]} : vector<2x128xf32> to vector<2x32xf32>
    %181 = arith.negf %180 : vector<2x32xf32>
    %182 = math.exp %181 : vector<2x32xf32>
    %cst_34 = arith.constant 1.000000e+00 : f32
    %183 = vector.broadcast %cst_34 : f32 to vector<2x32xf32>
    %184 = arith.addf %183, %182 : vector<2x32xf32>
    %185 = arith.divf %183, %184 : vector<2x32xf32>
    %186 = vector.extract_strided_slice %179 {offsets = [0, 32], sizes = [2, 32], strides = [1, 1]} : vector<2x128xf32> to vector<2x32xf32>
    %187 = arith.negf %186 : vector<2x32xf32>
    %188 = math.exp %187 : vector<2x32xf32>
    %cst_35 = arith.constant 1.000000e+00 : f32
    %189 = vector.broadcast %cst_35 : f32 to vector<2x32xf32>
    %190 = arith.addf %189, %188 : vector<2x32xf32>
    %191 = arith.divf %189, %190 : vector<2x32xf32>
    %192 = vector.extract_strided_slice %179 {offsets = [0, 64], sizes = [2, 32], strides = [1, 1]} : vector<2x128xf32> to vector<2x32xf32>
    %193 = math.tanh %192 : vector<2x32xf32>
    %194 = vector.extract_strided_slice %179 {offsets = [0, 96], sizes = [2, 32], strides = [1, 1]} : vector<2x128xf32> to vector<2x32xf32>
    %195 = arith.negf %194 : vector<2x32xf32>
    %196 = math.exp %195 : vector<2x32xf32>
    %cst_36 = arith.constant 1.000000e+00 : f32
    %197 = vector.broadcast %cst_36 : f32 to vector<2x32xf32>
    %198 = arith.addf %197, %196 : vector<2x32xf32>
    %199 = arith.divf %197, %198 : vector<2x32xf32>
    %200 = arith.mulf %191, %174 : vector<2x32xf32>
    %201 = arith.mulf %185, %193 : vector<2x32xf32>
    %202 = arith.addf %200, %201 : vector<2x32xf32>
    %203 = math.tanh %202 : vector<2x32xf32>
    %204 = arith.mulf %199, %203 : vector<2x32xf32>
    %205 = vector.extract_strided_slice %5 {offsets = [14, 0], sizes = [2, 128], strides = [1, 1]} : vector<16x128xf32> to vector<2x128xf32>
    %cst_37 = arith.constant dense<0.000000e+00> : vector<2x128xf32>
    %206 = tpu.matmul %204, %6, %cst_37 {dimension_numbers = #tpu.dot_dimension_numbers<[1], [0], [0], [1], [0, 0, 1, 1], [], []>} : vector<2x32xf32>, vector<32x128xf32>, vector<2x128xf32> -> vector<2x128xf32>
    %207 = arith.addf %205, %206 : vector<2x128xf32>
    %208 = vector.extract_strided_slice %207 {offsets = [0, 0], sizes = [2, 32], strides = [1, 1]} : vector<2x128xf32> to vector<2x32xf32>
    %209 = arith.negf %208 : vector<2x32xf32>
    %210 = math.exp %209 : vector<2x32xf32>
    %cst_38 = arith.constant 1.000000e+00 : f32
    %211 = vector.broadcast %cst_38 : f32 to vector<2x32xf32>
    %212 = arith.addf %211, %210 : vector<2x32xf32>
    %213 = arith.divf %211, %212 : vector<2x32xf32>
    %214 = vector.extract_strided_slice %207 {offsets = [0, 32], sizes = [2, 32], strides = [1, 1]} : vector<2x128xf32> to vector<2x32xf32>
    %215 = arith.negf %214 : vector<2x32xf32>
    %216 = math.exp %215 : vector<2x32xf32>
    %cst_39 = arith.constant 1.000000e+00 : f32
    %217 = vector.broadcast %cst_39 : f32 to vector<2x32xf32>
    %218 = arith.addf %217, %216 : vector<2x32xf32>
    %219 = arith.divf %217, %218 : vector<2x32xf32>
    %220 = vector.extract_strided_slice %207 {offsets = [0, 64], sizes = [2, 32], strides = [1, 1]} : vector<2x128xf32> to vector<2x32xf32>
    %221 = math.tanh %220 : vector<2x32xf32>
    %222 = vector.extract_strided_slice %207 {offsets = [0, 96], sizes = [2, 32], strides = [1, 1]} : vector<2x128xf32> to vector<2x32xf32>
    %223 = arith.negf %222 : vector<2x32xf32>
    %224 = math.exp %223 : vector<2x32xf32>
    %cst_40 = arith.constant 1.000000e+00 : f32
    %225 = vector.broadcast %cst_40 : f32 to vector<2x32xf32>
    %226 = arith.addf %225, %224 : vector<2x32xf32>
    %227 = arith.divf %225, %226 : vector<2x32xf32>
    %228 = arith.mulf %219, %202 : vector<2x32xf32>
    %229 = arith.mulf %213, %221 : vector<2x32xf32>
    %230 = arith.addf %228, %229 : vector<2x32xf32>
    %231 = math.tanh %230 : vector<2x32xf32>
    %232 = arith.mulf %227, %231 : vector<2x32xf32>
    %233 = vector.shape_cast %36 : vector<2x32xf32> to vector<2x1x32xf32>
    %234 = vector.shape_cast %64 : vector<2x32xf32> to vector<2x1x32xf32>
    %235 = vector.shape_cast %92 : vector<2x32xf32> to vector<2x1x32xf32>
    %236 = vector.shape_cast %120 : vector<2x32xf32> to vector<2x1x32xf32>
    %237 = vector.shape_cast %148 : vector<2x32xf32> to vector<2x1x32xf32>
    %238 = vector.shape_cast %176 : vector<2x32xf32> to vector<2x1x32xf32>
    %239 = vector.shape_cast %204 : vector<2x32xf32> to vector<2x1x32xf32>
    %240 = vector.shape_cast %232 : vector<2x32xf32> to vector<2x1x32xf32>
    %241 = tpu.concatenate %233, %234, %235, %236, %237, %238, %239, %240 in 1 : vector<2x1x32xf32>, vector<2x1x32xf32>, vector<2x1x32xf32>, vector<2x1x32xf32>, vector<2x1x32xf32>, vector<2x1x32xf32>, vector<2x1x32xf32>, vector<2x1x32xf32> -> vector<2x8x32xf32>
    %242 = vector.shape_cast %241 : vector<2x8x32xf32> to vector<16x32xf32>
    %c0_41 = arith.constant 0 : index
    %c0_42 = arith.constant 0 : index
    %243 = vector.load %arg6[%c0_41, %c0_42] : memref<32x44xf32, #tpu.memory_space<vmem>>, vector<32x44xf32>
    %cst_43 = arith.constant dense<0.000000e+00> : vector<16x44xf32>
    %244 = tpu.matmul %242, %243, %cst_43 {dimension_numbers = #tpu.dot_dimension_numbers<[1], [0], [0], [1], [0, 0, 1, 1], [], []>} : vector<16x32xf32>, vector<32x44xf32>, vector<16x44xf32> -> vector<16x44xf32>
    %c0_44 = arith.constant 0 : index
    %c0_45 = arith.constant 0 : index
    %245 = vector.load %arg7[%c0_44, %c0_45] : memref<1x44xf32, #tpu.memory_space<vmem>>, vector<1x44xf32>
    %246 = vector.broadcast %245 : vector<1x44xf32> to vector<16x44xf32>
    %247 = arith.addf %244, %246 : vector<16x44xf32>
    %248 = vector.extract_strided_slice %247 {offsets = [0, 0], sizes = [16, 12], strides = [1, 1]} : vector<16x44xf32> to vector<16x12xf32>
    %cst_46 = arith.constant dense<0xFF800000> : vector<16xf32>
    %249 = vector.multi_reduction <maximumf>, %248, %cst_46 [1] : vector<16x12xf32> to vector<16xf32>
    %250 = vector.shape_cast %249 : vector<16xf32> to vector<16x1xf32>
    %251 = vector.broadcast %250 : vector<16x1xf32> to vector<16x12xf32>
    %252 = arith.subf %248, %251 : vector<16x12xf32>
    %253 = math.exp %252 : vector<16x12xf32>
    %cst_47 = arith.constant dense<0.000000e+00> : vector<16xf32>
    %254 = vector.multi_reduction <add>, %253, %cst_47 [1] : vector<16x12xf32> to vector<16xf32>
    %255 = vector.shape_cast %254 : vector<16xf32> to vector<16x1xf32>
    %256 = math.log %255 : vector<16x1xf32>
    %257 = vector.broadcast %256 : vector<16x1xf32> to vector<16x12xf32>
    %258 = arith.subf %252, %257 : vector<16x12xf32>
    %259 = vector.shape_cast %258 : vector<16x12xf32> to vector<2x8x12xf32>
    %c0_48 = arith.constant 0 : index
    %c0_49 = arith.constant 0 : index
    %c0_50 = arith.constant 0 : index
    %260 = vector.load %arg16[%c0_48, %c0_49, %c0_50] : memref<2x8x12xf32, #tpu.memory_space<vmem>>, vector<2x8x12xf32>
    tpu.vector_store %arg16[%c0_48, %c0_49, %c0_50], %259 {strides = array<i32>} : memref<2x8x12xf32, #tpu.memory_space<vmem>>, vector<2x8x12xf32>,
    %261 = vector.extract_strided_slice %247 {offsets = [0, 12], sizes = [16, 32], strides = [1, 1]} : vector<16x44xf32> to vector<16x32xf32>
    %262 = math.tanh %261 : vector<16x32xf32>
    %263 = vector.shape_cast %262 : vector<16x32xf32> to vector<2x8x32xf32>
    %264 = tpu.iota {dimensions = array<i32: 1>} : vector<1x8xi32>
    %c0_51 = arith.constant 0 : index
    %265 = memref.load %arg1[%c0_51] : memref<2xi32, #tpu.memory_space<smem>>
    %266 = vector.broadcast %265 : i32 to vector<1x8xi32>
    %267 = arith.cmpi sge, %264, %266 : vector<1x8xi32>
    %cst_52 = arith.constant -1.000000e+09 : f32
    %cst_53 = arith.constant 0.000000e+00 : f32
    %268 = vector.broadcast %cst_52 : f32 to vector<1x8xf32>
    %269 = vector.broadcast %cst_53 : f32 to vector<1x8xf32>
    %270 = arith.select %267, %268, %269 : vector<1x8xi1>, vector<1x8xf32>
    %c1 = arith.constant 1 : index
    %271 = memref.load %arg1[%c1] : memref<2xi32, #tpu.memory_space<smem>>
    %272 = vector.broadcast %271 : i32 to vector<1x8xi32>
    %273 = arith.cmpi sge, %264, %272 : vector<1x8xi32>
    %cst_54 = arith.constant -1.000000e+09 : f32
    %cst_55 = arith.constant 0.000000e+00 : f32
    %274 = vector.broadcast %cst_54 : f32 to vector<1x8xf32>
    %275 = vector.broadcast %cst_55 : f32 to vector<1x8xf32>
    %276 = arith.select %273, %274, %275 : vector<1x8xi1>, vector<1x8xf32>
    %277 = tpu.concatenate %270, %276 in 0 : vector<1x8xf32>, vector<1x8xf32> -> vector<2x8xf32>
    %c0_56 = arith.constant 0 : index
    %c0_57 = arith.constant 0 : index
    %278 = vector.load %arg8[%c0_56, %c0_57] : memref<1x32xf32, #tpu.memory_space<vmem>>, vector<1x32xf32>
    %c0_58 = arith.constant 0 : index
    %c0_59 = arith.constant 0 : index
    %279 = vector.load %arg9[%c0_58, %c0_59] : memref<32x160xf32, #tpu.memory_space<vmem>>, vector<32x160xf32>
    %c0_60 = arith.constant 0 : index
    %c0_61 = arith.constant 0 : index
    %280 = vector.load %arg10[%c0_60, %c0_61] : memref<32x128xf32, #tpu.memory_space<vmem>>, vector<32x128xf32>
    %c0_62 = arith.constant 0 : index
    %c0_63 = arith.constant 0 : index
    %281 = vector.load %arg11[%c0_62, %c0_63] : memref<32x128xf32, #tpu.memory_space<vmem>>, vector<32x128xf32>
    %c0_64 = arith.constant 0 : index
    %c0_65 = arith.constant 0 : index
    %282 = vector.load %arg12[%c0_64, %c0_65] : memref<1x128xf32, #tpu.memory_space<vmem>>, vector<1x128xf32>
    %c0_66 = arith.constant 0 : index
    %c0_67 = arith.constant 0 : index
    %283 = vector.load %arg13[%c0_66, %c0_67] : memref<32x12xf32, #tpu.memory_space<vmem>>, vector<32x12xf32>
    %c0_68 = arith.constant 0 : index
    %c0_69 = arith.constant 0 : index
    %284 = vector.load %arg14[%c0_68, %c0_69] : memref<1x12xf32, #tpu.memory_space<vmem>>, vector<1x12xf32>
    %c0_70 = arith.constant 0 : index
    %c0_71 = arith.constant 0 : index
    %285 = vector.load %arg15[%c0_70, %c0_71] : memref<12x32xf32, #tpu.memory_space<vmem>>, vector<12x32xf32>
    %cst_72 = arith.constant 0.000000e+00 : f32
    %286 = vector.broadcast %cst_72 : f32 to vector<2x32xf32>
    %cst_73 = arith.constant 0.000000e+00 : f32
    %287 = vector.broadcast %cst_73 : f32 to vector<2x32xf32>
    %c0_74 = arith.constant 0 : index
    %c0_75 = arith.constant 0 : index
    %288 = vector.load %arg15[%c0_74, %c0_75] : memref<12x32xf32, #tpu.memory_space<vmem>>, vector<1x32xf32>
    %289 = vector.shape_cast %288 : vector<1x32xf32> to vector<1x32xf32>
    %290 = vector.broadcast %289 : vector<1x32xf32> to vector<2x32xf32>
    %cst_76 = arith.constant dense<0.000000e+00> : vector<2x160xf32>
    %291 = tpu.matmul %286, %279, %cst_76 {dimension_numbers = #tpu.dot_dimension_numbers<[1], [0], [0], [1], [0, 0, 1, 1], [], []>} : vector<2x32xf32>, vector<32x160xf32>, vector<2x160xf32> -> vector<2x160xf32>
    %292 = vector.extract_strided_slice %291 {offsets = [0, 0], sizes = [2, 128], strides = [1, 1]} : vector<2x160xf32> to vector<2x128xf32>
    %293 = vector.extract_strided_slice %291 {offsets = [0, 128], sizes = [2, 32], strides = [1, 1]} : vector<2x160xf32> to vector<2x32xf32>
    %294 = vector.broadcast %278 : vector<1x32xf32> to vector<2x32xf32>
    %295 = arith.addf %293, %294 : vector<2x32xf32>
    %296 = math.tanh %295 : vector<2x32xf32>
    %297 = vector.shape_cast %296 : vector<2x32xf32> to vector<2x1x32xf32>
    %298 = vector.broadcast %297 : vector<2x1x32xf32> to vector<2x8x32xf32>
    %299 = arith.mulf %298, %263 : vector<2x8x32xf32>
    %cst_77 = arith.constant dense<0.000000e+00> : vector<2x8xf32>
    %300 = vector.multi_reduction <add>, %299, %cst_77 [2] : vector<2x8x32xf32> to vector<2x8xf32>
    %cst_78 = arith.constant 1.000000e+00 : f32
    %301 = vector.broadcast %cst_78 : f32 to vector<2x8xf32>
    %302 = arith.mulf %300, %301 : vector<2x8xf32>
    %303 = arith.addf %302, %277 : vector<2x8xf32>
    %cst_79 = arith.constant dense<0xFF800000> : vector<2xf32>
    %304 = vector.multi_reduction <maximumf>, %303, %cst_79 [1] : vector<2x8xf32> to vector<2xf32>
    %305 = vector.shape_cast %304 : vector<2xf32> to vector<2x1xf32>
    %306 = vector.broadcast %305 : vector<2x1xf32> to vector<2x8xf32>
    %307 = arith.subf %303, %306 : vector<2x8xf32>
    %308 = math.exp %307 : vector<2x8xf32>
    %cst_80 = arith.constant dense<0.000000e+00> : vector<2xf32>
    %309 = vector.multi_reduction <add>, %308, %cst_80 [1] : vector<2x8xf32> to vector<2xf32>
    %310 = vector.shape_cast %309 : vector<2xf32> to vector<2x1xf32>
    %311 = vector.broadcast %310 : vector<2x1xf32> to vector<2x8xf32>
    %312 = arith.divf %308, %311 : vector<2x8xf32>
    %313 = vector.shape_cast %312 : vector<2x8xf32> to vector<2x8x1xf32>
    %314 = vector.broadcast %313 : vector<2x8x1xf32> to vector<2x8x32xf32>
    %315 = arith.mulf %314, %241 : vector<2x8x32xf32>
    %cst_81 = arith.constant dense<0.000000e+00> : vector<2x32xf32>
    %316 = vector.multi_reduction <add>, %315, %cst_81 [1] : vector<2x8x32xf32> to vector<2x32xf32>
    %cst_82 = arith.constant dense<0.000000e+00> : vector<2x128xf32>
    %317 = tpu.matmul %290, %280, %cst_82 {dimension_numbers = #tpu.dot_dimension_numbers<[1], [0], [0], [1], [0, 0, 1, 1], [], []>} : vector<2x32xf32>, vector<32x128xf32>, vector<2x128xf32> -> vector<2x128xf32>
    %cst_83 = arith.constant dense<0.000000e+00> : vector<2x128xf32>
    %318 = tpu.matmul %316, %281, %cst_83 {dimension_numbers = #tpu.dot_dimension_numbers<[1], [0], [0], [1], [0, 0, 1, 1], [], []>} : vector<2x32xf32>, vector<32x128xf32>, vector<2x128xf32> -> vector<2x128xf32>
    %319 = arith.addf %317, %318 : vector<2x128xf32>
    %320 = arith.addf %319, %292 : vector<2x128xf32>
    %321 = vector.broadcast %282 : vector<1x128xf32> to vector<2x128xf32>
    %322 = arith.addf %320, %321 : vector<2x128xf32>
    %323 = vector.extract_strided_slice %322 {offsets = [0, 0], sizes = [2, 32], strides = [1, 1]} : vector<2x128xf32> to vector<2x32xf32>
    %324 = arith.negf %323 : vector<2x32xf32>
    %325 = math.exp %324 : vector<2x32xf32>
    %cst_84 = arith.constant 1.000000e+00 : f32
    %326 = vector.broadcast %cst_84 : f32 to vector<2x32xf32>
    %327 = arith.addf %326, %325 : vector<2x32xf32>
    %328 = arith.divf %326, %327 : vector<2x32xf32>
    %329 = vector.extract_strided_slice %322 {offsets = [0, 32], sizes = [2, 32], strides = [1, 1]} : vector<2x128xf32> to vector<2x32xf32>
    %330 = arith.negf %329 : vector<2x32xf32>
    %331 = math.exp %330 : vector<2x32xf32>
    %cst_85 = arith.constant 1.000000e+00 : f32
    %332 = vector.broadcast %cst_85 : f32 to vector<2x32xf32>
    %333 = arith.addf %332, %331 : vector<2x32xf32>
    %334 = arith.divf %332, %333 : vector<2x32xf32>
    %335 = vector.extract_strided_slice %322 {offsets = [0, 64], sizes = [2, 32], strides = [1, 1]} : vector<2x128xf32> to vector<2x32xf32>
    %336 = math.tanh %335 : vector<2x32xf32>
    %337 = vector.extract_strided_slice %322 {offsets = [0, 96], sizes = [2, 32], strides = [1, 1]} : vector<2x128xf32> to vector<2x32xf32>
    %338 = arith.negf %337 : vector<2x32xf32>
    %339 = math.exp %338 : vector<2x32xf32>
    %cst_86 = arith.constant 1.000000e+00 : f32
    %340 = vector.broadcast %cst_86 : f32 to vector<2x32xf32>
    %341 = arith.addf %340, %339 : vector<2x32xf32>
    %342 = arith.divf %340, %341 : vector<2x32xf32>
    %343 = arith.mulf %334, %287 : vector<2x32xf32>
    %344 = arith.mulf %328, %336 : vector<2x32xf32>
    %345 = arith.addf %343, %344 : vector<2x32xf32>
    %346 = math.tanh %345 : vector<2x32xf32>
    %347 = arith.mulf %342, %346 : vector<2x32xf32>
    %cst_87 = arith.constant dense<0.000000e+00> : vector<2x12xf32>
    %348 = tpu.matmul %347, %283, %cst_87 {dimension_numbers = #tpu.dot_dimension_numbers<[1], [0], [0], [1], [0, 0, 1, 1], [], []>} : vector<2x32xf32>, vector<32x12xf32>, vector<2x12xf32> -> vector<2x12xf32>
    %349 = vector.broadcast %284 : vector<1x12xf32> to vector<2x12xf32>
    %350 = arith.addf %348, %349 : vector<2x12xf32>
    %351 = tpu.iota {dimensions = array<i32: 1>} : vector<2x12xi32>
    %cst_88 = arith.constant dense<0xFF800000> : vector<2xf32>
    %352 = vector.multi_reduction <maximumf>, %350, %cst_88 [1] : vector<2x12xf32> to vector<2xf32>
    %353 = vector.shape_cast %352 : vector<2xf32> to vector<2x1xf32>
    %354 = vector.broadcast %353 : vector<2x1xf32> to vector<2x12xf32>
    %355 = arith.cmpf oeq, %350, %354 : vector<2x12xf32>
    %c12_i32 = arith.constant 12 : i32
    %356 = vector.broadcast %c12_i32 : i32 to vector<2x12xi32>
    %357 = arith.select %355, %351, %356 : vector<2x12xi1>, vector<2x12xi32>
    %cst_89 = arith.constant dense<2147483647> : vector<2xi32>
    %358 = vector.multi_reduction <minsi>, %357, %cst_89 [1] : vector<2x12xi32> to vector<2xi32>
    %359 = vector.shape_cast %358 : vector<2xi32> to vector<2x1xi32>
    %360 = vector.broadcast %359 : vector<2x1xi32> to vector<2x12xi32>
    %361 = arith.cmpi eq, %351, %360 : vector<2x12xi32>
    %362 = arith.extui %361 : vector<2x12xi1> to vector<2x12xi32>
    %363 = arith.sitofp %362 : vector<2x12xi32> to vector<2x12xf32>
    %cst_90 = arith.constant dense<0.000000e+00> : vector<2x32xf32>
    %364 = tpu.matmul %363, %285, %cst_90 {dimension_numbers = #tpu.dot_dimension_numbers<[1], [0], [0], [1], [0, 0, 1, 1], [], []>} : vector<2x12xf32>, vector<12x32xf32>, vector<2x32xf32> -> vector<2x32xf32>
    %cst_91 = arith.constant dense<0.000000e+00> : vector<2x160xf32>
    %365 = tpu.matmul %347, %279, %cst_91 {dimension_numbers = #tpu.dot_dimension_numbers<[1], [0], [0], [1], [0, 0, 1, 1], [], []>} : vector<2x32xf32>, vector<32x160xf32>, vector<2x160xf32> -> vector<2x160xf32>
    %366 = vector.extract_strided_slice %365 {offsets = [0, 0], sizes = [2, 128], strides = [1, 1]} : vector<2x160xf32> to vector<2x128xf32>
    %367 = vector.extract_strided_slice %365 {offsets = [0, 128], sizes = [2, 32], strides = [1, 1]} : vector<2x160xf32> to vector<2x32xf32>
    %368 = vector.broadcast %278 : vector<1x32xf32> to vector<2x32xf32>
    %369 = arith.addf %367, %368 : vector<2x32xf32>
    %370 = math.tanh %369 : vector<2x32xf32>
    %371 = vector.shape_cast %370 : vector<2x32xf32> to vector<2x1x32xf32>
    %372 = vector.broadcast %371 : vector<2x1x32xf32> to vector<2x8x32xf32>
    %373 = arith.mulf %372, %263 : vector<2x8x32xf32>
    %cst_92 = arith.constant dense<0.000000e+00> : vector<2x8xf32>
    %374 = vector.multi_reduction <add>, %373, %cst_92 [2] : vector<2x8x32xf32> to vector<2x8xf32>
    %cst_93 = arith.constant 1.000000e+00 : f32
    %375 = vector.broadcast %cst_93 : f32 to vector<2x8xf32>
    %376 = arith.mulf %374, %375 : vector<2x8xf32>
    %377 = arith.addf %376, %277 : vector<2x8xf32>
    %cst_94 = arith.constant dense<0xFF800000> : vector<2xf32>
    %378 = vector.multi_reduction <maximumf>, %377, %cst_94 [1] : vector<2x8xf32> to vector<2xf32>
    %379 = vector.shape_cast %378 : vector<2xf32> to vector<2x1xf32>
    %380 = vector.broadcast %379 : vector<2x1xf32> to vector<2x8xf32>
    %381 = arith.subf %377, %380 : vector<2x8xf32>
    %382 = math.exp %381 : vector<2x8xf32>
    %cst_95 = arith.constant dense<0.000000e+00> : vector<2xf32>
    %383 = vector.multi_reduction <add>, %382, %cst_95 [1] : vector<2x8xf32> to vector<2xf32>
    %384 = vector.shape_cast %383 : vector<2xf32> to vector<2x1xf32>
    %385 = vector.broadcast %384 : vector<2x1xf32> to vector<2x8xf32>
    %386 = arith.divf %382, %385 : vector<2x8xf32>
    %387 = vector.shape_cast %386 : vector<2x8xf32> to vector<2x8x1xf32>
    %388 = vector.broadcast %387 : vector<2x8x1xf32> to vector<2x8x32xf32>
    %389 = arith.mulf %388, %241 : vector<2x8x32xf32>
    %cst_96 = arith.constant dense<0.000000e+00> : vector<2x32xf32>
    %390 = vector.multi_reduction <add>, %389, %cst_96 [1] : vector<2x8x32xf32> to vector<2x32xf32>
    %cst_97 = arith.constant dense<0.000000e+00> : vector<2x128xf32>
    %391 = tpu.matmul %364, %280, %cst_97 {dimension_numbers = #tpu.dot_dimension_numbers<[1], [0], [0], [1], [0, 0, 1, 1], [], []>} : vector<2x32xf32>, vector<32x128xf32>, vector<2x128xf32> -> vector<2x128xf32>
    %cst_98 = arith.constant dense<0.000000e+00> : vector<2x128xf32>
    %392 = tpu.matmul %390, %281, %cst_98 {dimension_numbers = #tpu.dot_dimension_numbers<[1], [0], [0], [1], [0, 0, 1, 1], [], []>} : vector<2x32xf32>, vector<32x128xf32>, vector<2x128xf32> -> vector<2x128xf32>
    %393 = arith.addf %391, %392 : vector<2x128xf32>
    %394 = arith.addf %393, %366 : vector<2x128xf32>
    %395 = vector.broadcast %282 : vector<1x128xf32> to vector<2x128xf32>
    %396 = arith.addf %394, %395 : vector<2x128xf32>
    %397 = vector.extract_strided_slice %396 {offsets = [0, 0], sizes = [2, 32], strides = [1, 1]} : vector<2x128xf32> to vector<2x32xf32>
    %398 = arith.negf %397 : vector<2x32xf32>
    %399 = math.exp %398 : vector<2x32xf32>
    %cst_99 = arith.constant 1.000000e+00 : f32
    %400 = vector.broadcast %cst_99 : f32 to vector<2x32xf32>
    %401 = arith.addf %400, %399 : vector<2x32xf32>
    %402 = arith.divf %400, %401 : vector<2x32xf32>
    %403 = vector.extract_strided_slice %396 {offsets = [0, 32], sizes = [2, 32], strides = [1, 1]} : vector<2x128xf32> to vector<2x32xf32>
    %404 = arith.negf %403 : vector<2x32xf32>
    %405 = math.exp %404 : vector<2x32xf32>
    %cst_100 = arith.constant 1.000000e+00 : f32
    %406 = vector.broadcast %cst_100 : f32 to vector<2x32xf32>
    %407 = arith.addf %406, %405 : vector<2x32xf32>
    %408 = arith.divf %406, %407 : vector<2x32xf32>
    %409 = vector.extract_strided_slice %396 {offsets = [0, 64], sizes = [2, 32], strides = [1, 1]} : vector<2x128xf32> to vector<2x32xf32>
    %410 = math.tanh %409 : vector<2x32xf32>
    %411 = vector.extract_strided_slice %396 {offsets = [0, 96], sizes = [2, 32], strides = [1, 1]} : vector<2x128xf32> to vector<2x32xf32>
    %412 = arith.negf %411 : vector<2x32xf32>
    %413 = math.exp %412 : vector<2x32xf32>
    %cst_101 = arith.constant 1.000000e+00 : f32
    %414 = vector.broadcast %cst_101 : f32 to vector<2x32xf32>
    %415 = arith.addf %414, %413 : vector<2x32xf32>
    %416 = arith.divf %414, %415 : vector<2x32xf32>
    %417 = arith.mulf %408, %345 : vector<2x32xf32>
    %418 = arith.mulf %402, %410 : vector<2x32xf32>
    %419 = arith.addf %417, %418 : vector<2x32xf32>
    %420 = math.tanh %419 : vector<2x32xf32>
    %421 = arith.mulf %416, %420 : vector<2x32xf32>
    %cst_102 = arith.constant dense<0.000000e+00> : vector<2x12xf32>
    %422 = tpu.matmul %421, %283, %cst_102 {dimension_numbers = #tpu.dot_dimension_numbers<[1], [0], [0], [1], [0, 0, 1, 1], [], []>} : vector<2x32xf32>, vector<32x12xf32>, vector<2x12xf32> -> vector<2x12xf32>
    %423 = vector.broadcast %284 : vector<1x12xf32> to vector<2x12xf32>
    %424 = arith.addf %422, %423 : vector<2x12xf32>
    %425 = tpu.iota {dimensions = array<i32: 1>} : vector<2x12xi32>
    %cst_103 = arith.constant dense<0xFF800000> : vector<2xf32>
    %426 = vector.multi_reduction <maximumf>, %424, %cst_103 [1] : vector<2x12xf32> to vector<2xf32>
    %427 = vector.shape_cast %426 : vector<2xf32> to vector<2x1xf32>
    %428 = vector.broadcast %427 : vector<2x1xf32> to vector<2x12xf32>
    %429 = arith.cmpf oeq, %424, %428 : vector<2x12xf32>
    %c12_i32_104 = arith.constant 12 : i32
    %430 = vector.broadcast %c12_i32_104 : i32 to vector<2x12xi32>
    %431 = arith.select %429, %425, %430 : vector<2x12xi1>, vector<2x12xi32>
    %cst_105 = arith.constant dense<2147483647> : vector<2xi32>
    %432 = vector.multi_reduction <minsi>, %431, %cst_105 [1] : vector<2x12xi32> to vector<2xi32>
    %433 = vector.shape_cast %432 : vector<2xi32> to vector<2x1xi32>
    %434 = vector.broadcast %433 : vector<2x1xi32> to vector<2x12xi32>
    %435 = arith.cmpi eq, %425, %434 : vector<2x12xi32>
    %436 = arith.extui %435 : vector<2x12xi1> to vector<2x12xi32>
    %437 = arith.sitofp %436 : vector<2x12xi32> to vector<2x12xf32>
    %cst_106 = arith.constant dense<0.000000e+00> : vector<2x32xf32>
    %438 = tpu.matmul %437, %285, %cst_106 {dimension_numbers = #tpu.dot_dimension_numbers<[1], [0], [0], [1], [0, 0, 1, 1], [], []>} : vector<2x12xf32>, vector<12x32xf32>, vector<2x32xf32> -> vector<2x32xf32>
    %cst_107 = arith.constant dense<0.000000e+00> : vector<2x160xf32>
    %439 = tpu.matmul %421, %279, %cst_107 {dimension_numbers = #tpu.dot_dimension_numbers<[1], [0], [0], [1], [0, 0, 1, 1], [], []>} : vector<2x32xf32>, vector<32x160xf32>, vector<2x160xf32> -> vector<2x160xf32>
    %440 = vector.extract_strided_slice %439 {offsets = [0, 0], sizes = [2, 128], strides = [1, 1]} : vector<2x160xf32> to vector<2x128xf32>
    %441 = vector.extract_strided_slice %439 {offsets = [0, 128], sizes = [2, 32], strides = [1, 1]} : vector<2x160xf32> to vector<2x32xf32>
    %442 = vector.broadcast %278 : vector<1x32xf32> to vector<2x32xf32>
    %443 = arith.addf %441, %442 : vector<2x32xf32>
    %444 = math.tanh %443 : vector<2x32xf32>
    %445 = vector.shape_cast %444 : vector<2x32xf32> to vector<2x1x32xf32>
    %446 = vector.broadcast %445 : vector<2x1x32xf32> to vector<2x8x32xf32>
    %447 = arith.mulf %446, %263 : vector<2x8x32xf32>
    %cst_108 = arith.constant dense<0.000000e+00> : vector<2x8xf32>
    %448 = vector.multi_reduction <add>, %447, %cst_108 [2] : vector<2x8x32xf32> to vector<2x8xf32>
    %cst_109 = arith.constant 1.000000e+00 : f32
    %449 = vector.broadcast %cst_109 : f32 to vector<2x8xf32>
    %450 = arith.mulf %448, %449 : vector<2x8xf32>
    %451 = arith.addf %450, %277 : vector<2x8xf32>
    %cst_110 = arith.constant dense<0xFF800000> : vector<2xf32>
    %452 = vector.multi_reduction <maximumf>, %451, %cst_110 [1] : vector<2x8xf32> to vector<2xf32>
    %453 = vector.shape_cast %452 : vector<2xf32> to vector<2x1xf32>
    %454 = vector.broadcast %453 : vector<2x1xf32> to vector<2x8xf32>
    %455 = arith.subf %451, %454 : vector<2x8xf32>
    %456 = math.exp %455 : vector<2x8xf32>
    %cst_111 = arith.constant dense<0.000000e+00> : vector<2xf32>
    %457 = vector.multi_reduction <add>, %456, %cst_111 [1] : vector<2x8xf32> to vector<2xf32>
    %458 = vector.shape_cast %457 : vector<2xf32> to vector<2x1xf32>
    %459 = vector.broadcast %458 : vector<2x1xf32> to vector<2x8xf32>
    %460 = arith.divf %456, %459 : vector<2x8xf32>
    %461 = vector.shape_cast %460 : vector<2x8xf32> to vector<2x8x1xf32>
    %462 = vector.broadcast %461 : vector<2x8x1xf32> to vector<2x8x32xf32>
    %463 = arith.mulf %462, %241 : vector<2x8x32xf32>
    %cst_112 = arith.constant dense<0.000000e+00> : vector<2x32xf32>
    %464 = vector.multi_reduction <add>, %463, %cst_112 [1] : vector<2x8x32xf32> to vector<2x32xf32>
    %cst_113 = arith.constant dense<0.000000e+00> : vector<2x128xf32>
    %465 = tpu.matmul %438, %280, %cst_113 {dimension_numbers = #tpu.dot_dimension_numbers<[1], [0], [0], [1], [0, 0, 1, 1], [], []>} : vector<2x32xf32>, vector<32x128xf32>, vector<2x128xf32> -> vector<2x128xf32>
    %cst_114 = arith.constant dense<0.000000e+00> : vector<2x128xf32>
    %466 = tpu.matmul %464, %281, %cst_114 {dimension_numbers = #tpu.dot_dimension_numbers<[1], [0], [0], [1], [0, 0, 1, 1], [], []>} : vector<2x32xf32>, vector<32x128xf32>, vector<2x128xf32> -> vector<2x128xf32>
    %467 = arith.addf %465, %466 : vector<2x128xf32>
    %468 = arith.addf %467, %440 : vector<2x128xf32>
    %469 = vector.broadcast %282 : vector<1x128xf32> to vector<2x128xf32>
    %470 = arith.addf %468, %469 : vector<2x128xf32>
    %471 = vector.extract_strided_slice %470 {offsets = [0, 0], sizes = [2, 32], strides = [1, 1]} : vector<2x128xf32> to vector<2x32xf32>
    %472 = arith.negf %471 : vector<2x32xf32>
    %473 = math.exp %472 : vector<2x32xf32>
    %cst_115 = arith.constant 1.000000e+00 : f32
    %474 = vector.broadcast %cst_115 : f32 to vector<2x32xf32>
    %475 = arith.addf %474, %473 : vector<2x32xf32>
    %476 = arith.divf %474, %475 : vector<2x32xf32>
    %477 = vector.extract_strided_slice %470 {offsets = [0, 32], sizes = [2, 32], strides = [1, 1]} : vector<2x128xf32> to vector<2x32xf32>
    %478 = arith.negf %477 : vector<2x32xf32>
    %479 = math.exp %478 : vector<2x32xf32>
    %cst_116 = arith.constant 1.000000e+00 : f32
    %480 = vector.broadcast %cst_116 : f32 to vector<2x32xf32>
    %481 = arith.addf %480, %479 : vector<2x32xf32>
    %482 = arith.divf %480, %481 : vector<2x32xf32>
    %483 = vector.extract_strided_slice %470 {offsets = [0, 64], sizes = [2, 32], strides = [1, 1]} : vector<2x128xf32> to vector<2x32xf32>
    %484 = math.tanh %483 : vector<2x32xf32>
    %485 = vector.extract_strided_slice %470 {offsets = [0, 96], sizes = [2, 32], strides = [1, 1]} : vector<2x128xf32> to vector<2x32xf32>
    %486 = arith.negf %485 : vector<2x32xf32>
    %487 = math.exp %486 : vector<2x32xf32>
    %cst_117 = arith.constant 1.000000e+00 : f32
    %488 = vector.broadcast %cst_117 : f32 to vector<2x32xf32>
    %489 = arith.addf %488, %487 : vector<2x32xf32>
    %490 = arith.divf %488, %489 : vector<2x32xf32>
    %491 = arith.mulf %482, %419 : vector<2x32xf32>
    %492 = arith.mulf %476, %484 : vector<2x32xf32>
    %493 = arith.addf %491, %492 : vector<2x32xf32>
    %494 = math.tanh %493 : vector<2x32xf32>
    %495 = arith.mulf %490, %494 : vector<2x32xf32>
    %cst_118 = arith.constant dense<0.000000e+00> : vector<2x12xf32>
    %496 = tpu.matmul %495, %283, %cst_118 {dimension_numbers = #tpu.dot_dimension_numbers<[1], [0], [0], [1], [0, 0, 1, 1], [], []>} : vector<2x32xf32>, vector<32x12xf32>, vector<2x12xf32> -> vector<2x12xf32>
    %497 = vector.broadcast %284 : vector<1x12xf32> to vector<2x12xf32>
    %498 = arith.addf %496, %497 : vector<2x12xf32>
    %499 = tpu.iota {dimensions = array<i32: 1>} : vector<2x12xi32>
    %cst_119 = arith.constant dense<0xFF800000> : vector<2xf32>
    %500 = vector.multi_reduction <maximumf>, %498, %cst_119 [1] : vector<2x12xf32> to vector<2xf32>
    %501 = vector.shape_cast %500 : vector<2xf32> to vector<2x1xf32>
    %502 = vector.broadcast %501 : vector<2x1xf32> to vector<2x12xf32>
    %503 = arith.cmpf oeq, %498, %502 : vector<2x12xf32>
    %c12_i32_120 = arith.constant 12 : i32
    %504 = vector.broadcast %c12_i32_120 : i32 to vector<2x12xi32>
    %505 = arith.select %503, %499, %504 : vector<2x12xi1>, vector<2x12xi32>
    %cst_121 = arith.constant dense<2147483647> : vector<2xi32>
    %506 = vector.multi_reduction <minsi>, %505, %cst_121 [1] : vector<2x12xi32> to vector<2xi32>
    %507 = vector.shape_cast %506 : vector<2xi32> to vector<2x1xi32>
    %508 = vector.broadcast %507 : vector<2x1xi32> to vector<2x12xi32>
    %509 = arith.cmpi eq, %499, %508 : vector<2x12xi32>
    %510 = arith.extui %509 : vector<2x12xi1> to vector<2x12xi32>
    %511 = arith.sitofp %510 : vector<2x12xi32> to vector<2x12xf32>
    %cst_122 = arith.constant dense<0.000000e+00> : vector<2x32xf32>
    %512 = tpu.matmul %511, %285, %cst_122 {dimension_numbers = #tpu.dot_dimension_numbers<[1], [0], [0], [1], [0, 0, 1, 1], [], []>} : vector<2x12xf32>, vector<12x32xf32>, vector<2x32xf32> -> vector<2x32xf32>
    %cst_123 = arith.constant dense<0.000000e+00> : vector<2x160xf32>
    %513 = tpu.matmul %495, %279, %cst_123 {dimension_numbers = #tpu.dot_dimension_numbers<[1], [0], [0], [1], [0, 0, 1, 1], [], []>} : vector<2x32xf32>, vector<32x160xf32>, vector<2x160xf32> -> vector<2x160xf32>
    %514 = vector.extract_strided_slice %513 {offsets = [0, 0], sizes = [2, 128], strides = [1, 1]} : vector<2x160xf32> to vector<2x128xf32>
    %515 = vector.extract_strided_slice %513 {offsets = [0, 128], sizes = [2, 32], strides = [1, 1]} : vector<2x160xf32> to vector<2x32xf32>
    %516 = vector.broadcast %278 : vector<1x32xf32> to vector<2x32xf32>
    %517 = arith.addf %515, %516 : vector<2x32xf32>
    %518 = math.tanh %517 : vector<2x32xf32>
    %519 = vector.shape_cast %518 : vector<2x32xf32> to vector<2x1x32xf32>
    %520 = vector.broadcast %519 : vector<2x1x32xf32> to vector<2x8x32xf32>
    %521 = arith.mulf %520, %263 : vector<2x8x32xf32>
    %cst_124 = arith.constant dense<0.000000e+00> : vector<2x8xf32>
    %522 = vector.multi_reduction <add>, %521, %cst_124 [2] : vector<2x8x32xf32> to vector<2x8xf32>
    %cst_125 = arith.constant 1.000000e+00 : f32
    %523 = vector.broadcast %cst_125 : f32 to vector<2x8xf32>
    %524 = arith.mulf %522, %523 : vector<2x8xf32>
    %525 = arith.addf %524, %277 : vector<2x8xf32>
    %cst_126 = arith.constant dense<0xFF800000> : vector<2xf32>
    %526 = vector.multi_reduction <maximumf>, %525, %cst_126 [1] : vector<2x8xf32> to vector<2xf32>
    %527 = vector.shape_cast %526 : vector<2xf32> to vector<2x1xf32>
    %528 = vector.broadcast %527 : vector<2x1xf32> to vector<2x8xf32>
    %529 = arith.subf %525, %528 : vector<2x8xf32>
    %530 = math.exp %529 : vector<2x8xf32>
    %cst_127 = arith.constant dense<0.000000e+00> : vector<2xf32>
    %531 = vector.multi_reduction <add>, %530, %cst_127 [1] : vector<2x8xf32> to vector<2xf32>
    %532 = vector.shape_cast %531 : vector<2xf32> to vector<2x1xf32>
    %533 = vector.broadcast %532 : vector<2x1xf32> to vector<2x8xf32>
    %534 = arith.divf %530, %533 : vector<2x8xf32>
    %535 = vector.shape_cast %534 : vector<2x8xf32> to vector<2x8x1xf32>
    %536 = vector.broadcast %535 : vector<2x8x1xf32> to vector<2x8x32xf32>
    %537 = arith.mulf %536, %241 : vector<2x8x32xf32>
    %cst_128 = arith.constant dense<0.000000e+00> : vector<2x32xf32>
    %538 = vector.multi_reduction <add>, %537, %cst_128 [1] : vector<2x8x32xf32> to vector<2x32xf32>
    %cst_129 = arith.constant dense<0.000000e+00> : vector<2x128xf32>
    %539 = tpu.matmul %512, %280, %cst_129 {dimension_numbers = #tpu.dot_dimension_numbers<[1], [0], [0], [1], [0, 0, 1, 1], [], []>} : vector<2x32xf32>, vector<32x128xf32>, vector<2x128xf32> -> vector<2x128xf32>
    %cst_130 = arith.constant dense<0.000000e+00> : vector<2x128xf32>
    %540 = tpu.matmul %538, %281, %cst_130 {dimension_numbers = #tpu.dot_dimension_numbers<[1], [0], [0], [1], [0, 0, 1, 1], [], []>} : vector<2x32xf32>, vector<32x128xf32>, vector<2x128xf32> -> vector<2x128xf32>
    %541 = arith.addf %539, %540 : vector<2x128xf32>
    %542 = arith.addf %541, %514 : vector<2x128xf32>
    %543 = vector.broadcast %282 : vector<1x128xf32> to vector<2x128xf32>
    %544 = arith.addf %542, %543 : vector<2x128xf32>
    %545 = vector.extract_strided_slice %544 {offsets = [0, 0], sizes = [2, 32], strides = [1, 1]} : vector<2x128xf32> to vector<2x32xf32>
    %546 = arith.negf %545 : vector<2x32xf32>
    %547 = math.exp %546 : vector<2x32xf32>
    %cst_131 = arith.constant 1.000000e+00 : f32
    %548 = vector.broadcast %cst_131 : f32 to vector<2x32xf32>
    %549 = arith.addf %548, %547 : vector<2x32xf32>
    %550 = arith.divf %548, %549 : vector<2x32xf32>
    %551 = vector.extract_strided_slice %544 {offsets = [0, 32], sizes = [2, 32], strides = [1, 1]} : vector<2x128xf32> to vector<2x32xf32>
    %552 = arith.negf %551 : vector<2x32xf32>
    %553 = math.exp %552 : vector<2x32xf32>
    %cst_132 = arith.constant 1.000000e+00 : f32
    %554 = vector.broadcast %cst_132 : f32 to vector<2x32xf32>
    %555 = arith.addf %554, %553 : vector<2x32xf32>
    %556 = arith.divf %554, %555 : vector<2x32xf32>
    %557 = vector.extract_strided_slice %544 {offsets = [0, 64], sizes = [2, 32], strides = [1, 1]} : vector<2x128xf32> to vector<2x32xf32>
    %558 = math.tanh %557 : vector<2x32xf32>
    %559 = vector.extract_strided_slice %544 {offsets = [0, 96], sizes = [2, 32], strides = [1, 1]} : vector<2x128xf32> to vector<2x32xf32>
    %560 = arith.negf %559 : vector<2x32xf32>
    %561 = math.exp %560 : vector<2x32xf32>
    %cst_133 = arith.constant 1.000000e+00 : f32
    %562 = vector.broadcast %cst_133 : f32 to vector<2x32xf32>
    %563 = arith.addf %562, %561 : vector<2x32xf32>
    %564 = arith.divf %562, %563 : vector<2x32xf32>
    %565 = arith.mulf %556, %493 : vector<2x32xf32>
    %566 = arith.mulf %550, %558 : vector<2x32xf32>
    %567 = arith.addf %565, %566 : vector<2x32xf32>
    %568 = math.tanh %567 : vector<2x32xf32>
    %569 = arith.mulf %564, %568 : vector<2x32xf32>
    %cst_134 = arith.constant dense<0.000000e+00> : vector<2x12xf32>
    %570 = tpu.matmul %569, %283, %cst_134 {dimension_numbers = #tpu.dot_dimension_numbers<[1], [0], [0], [1], [0, 0, 1, 1], [], []>} : vector<2x32xf32>, vector<32x12xf32>, vector<2x12xf32> -> vector<2x12xf32>
    %571 = vector.broadcast %284 : vector<1x12xf32> to vector<2x12xf32>
    %572 = arith.addf %570, %571 : vector<2x12xf32>
    %573 = vector.shape_cast %350 : vector<2x12xf32> to vector<2x1x12xf32>
    %574 = vector.shape_cast %424 : vector<2x12xf32> to vector<2x1x12xf32>
    %575 = vector.shape_cast %498 : vector<2x12xf32> to vector<2x1x12xf32>
    %576 = vector.shape_cast %572 : vector<2x12xf32> to vector<2x1x12xf32>
    %577 = tpu.concatenate %573, %574, %575, %576 in 1 : vector<2x1x12xf32>, vector<2x1x12xf32>, vector<2x1x12xf32>, vector<2x1x12xf32> -> vector<2x4x12xf32>
    %c0_135 = arith.constant 0 : index
    %c0_136 = arith.constant 0 : index
    %c0_137 = arith.constant 0 : index
    %578 = vector.load %arg17[%c0_135, %c0_136, %c0_137] : memref<2x4x12xf32, #tpu.memory_space<vmem>>, vector<2x4x12xf32>
    tpu.vector_store %arg17[%c0_135, %c0_136, %c0_137], %577 {strides = array<i32>} : memref<2x4x12xf32, #tpu.memory_space<vmem>>, vector<2x4x12xf32>,
    %579 = vector.shape_cast %312 : vector<2x8xf32> to vector<2x1x8xf32>
    %580 = vector.shape_cast %386 : vector<2x8xf32> to vector<2x1x8xf32>
    %581 = vector.shape_cast %460 : vector<2x8xf32> to vector<2x1x8xf32>
    %582 = vector.shape_cast %534 : vector<2x8xf32> to vector<2x1x8xf32>
    %583 = tpu.concatenate %579, %580, %581, %582 in 1 : vector<2x1x8xf32>, vector<2x1x8xf32>, vector<2x1x8xf32>, vector<2x1x8xf32> -> vector<2x4x8xf32>
    %c0_138 = arith.constant 0 : index
    %c0_139 = arith.constant 0 : index
    %c0_140 = arith.constant 0 : index
    %584 = vector.load %arg18[%c0_138, %c0_139, %c0_140] : memref<2x4x8xf32, #tpu.memory_space<vmem>>, vector<2x4x8xf32>
    tpu.vector_store %arg18[%c0_138, %c0_139, %c0_140], %583 {strides = array<i32>} : memref<2x4x8xf32, #tpu.memory_space<vmem>>, vector<2x4x8xf32>,
    return
  }
  func.func @transform_0(%arg0: i32, %arg1: memref<2xi32, #tpu.memory_space<smem>>) -> (i32, i32) {
    %c0_i32 = arith.constant 0 : i32
    %c0_i32_0 = arith.constant 0 : i32
    %c0_i32_1 = arith.constant 0 : i32
    return %c0_i32, %c0_i32_0 : i32, i32
  }
  func.func @transform_1(%arg0: i32, %arg1: memref<2xi32, #tpu.memory_space<smem>>) -> (i32, i32) {
    %c0_i32 = arith.constant 0 : i32
    %c0_i32_0 = arith.constant 0 : i32
    %c0_i32_1 = arith.constant 0 : i32
    return %c0_i32, %c0_i32_0 : i32, i32
  }
  func.func @transform_2(%arg0: i32, %arg1: memref<2xi32, #tpu.memory_space<smem>>) -> (i32, i32) {
    %c0_i32 = arith.constant 0 : i32
    %c0_i32_0 = arith.constant 0 : i32
    %c0_i32_1 = arith.constant 0 : i32
    return %c0_i32, %c0_i32_0 : i32, i32
  }
  func.func @transform_3(%arg0: i32, %arg1: memref<2xi32, #tpu.memory_space<smem>>) -> (i32, i32) {
    %c0_i32 = arith.constant 0 : i32
    %c0_i32_0 = arith.constant 0 : i32
    %c0_i32_1 = arith.constant 0 : i32
    return %c0_i32, %c0_i32_0 : i32, i32
  }
  func.func @transform_4(%arg0: i32, %arg1: memref<2xi32, #tpu.memory_space<smem>>) -> (i32, i32) {
    %c0_i32 = arith.constant 0 : i32
    %c0_i32_0 = arith.constant 0 : i32
    %c0_i32_1 = arith.constant 0 : i32
    return %c0_i32, %c0_i32_0 : i32, i32
  }
  func.func @transform_5(%arg0: i32, %arg1: memref<2xi32, #tpu.memory_space<smem>>) -> (i32, i32) {
    %c0_i32 = arith.constant 0 : i32
    %c0_i32_0 = arith.constant 0 : i32
    %c0_i32_1 = arith.constant 0 : i32
    return %c0_i32, %c0_i32_0 : i32, i32
  }
  func.func @transform_6(%arg0: i32, %arg1: memref<2xi32, #tpu.memory_space<smem>>) -> (i32, i32) {
    %c0_i32 = arith.constant 0 : i32
    %c0_i32_0 = arith.constant 0 : i32
    %c0_i32_1 = arith.constant 0 : i32
    return %c0_i32, %c0_i32_0 : i32, i32
  }
  func.func @transform_7(%arg0: i32, %arg1: memref<2xi32, #tpu.memory_space<smem>>) -> (i32, i32) {
    %c0_i32 = arith.constant 0 : i32
    %c0_i32_0 = arith.constant 0 : i32
    %c0_i32_1 = arith.constant 0 : i32
    return %c0_i32, %c0_i32_0 : i32, i32
  }
  func.func @transform_8(%arg0: i32, %arg1: memref<2xi32, #tpu.memory_space<smem>>) -> (i32, i32) {
    %c0_i32 = arith.constant 0 : i32
    %c0_i32_0 = arith.constant 0 : i32
    %c0_i32_1 = arith.constant 0 : i32
    return %c0_i32, %c0_i32_0 : i32, i32
  }
  func.func @transform_9(%arg0: i32, %arg1: memref<2xi32, #tpu.memory_space<smem>>) -> (i32, i32) {
    %c0_i32 = arith.constant 0 : i32
    %c0_i32_0 = arith.constant 0 : i32
    %c0_i32_1 = arith.constant 0 : i32
    return %c0_i32, %c0_i32_0 : i32, i32
  }
  func.func @transform_10(%arg0: i32, %arg1: memref<2xi32, #tpu.memory_space<smem>>) -> (i32, i32) {
    %c0_i32 = arith.constant 0 : i32
    %c0_i32_0 = arith.constant 0 : i32
    %c0_i32_1 = arith.constant 0 : i32
    return %c0_i32, %c0_i32_0 : i32, i32
  }
  func.func @transform_11(%arg0: i32, %arg1: memref<2xi32, #tpu.memory_space<smem>>) -> (i32, i32) {
    %c0_i32 = arith.constant 0 : i32
    %c0_i32_0 = arith.constant 0 : i32
    %c0_i32_1 = arith.constant 0 : i32
    return %c0_i32, %c0_i32_0 : i32, i32
  }
  func.func @transform_12(%arg0: i32, %arg1: memref<2xi32, #tpu.memory_space<smem>>) -> (i32, i32) {
    %c0_i32 = arith.constant 0 : i32
    %c0_i32_0 = arith.constant 0 : i32
    %c0_i32_1 = arith.constant 0 : i32
    return %c0_i32, %c0_i32_0 : i32, i32
  }
  func.func @transform_13(%arg0: i32, %arg1: memref<2xi32, #tpu.memory_space<smem>>) -> (i32, i32) {
    %c0_i32 = arith.constant 0 : i32
    %c0_i32_0 = arith.constant 0 : i32
    %c0_i32_1 = arith.constant 0 : i32
    return %c0_i32, %c0_i32_0 : i32, i32
  }
  func.func @transform_14(%arg0: i32, %arg1: memref<2xi32, #tpu.memory_space<smem>>) -> (i32, i32, i32) {
    %c0_i32 = arith.constant 0 : i32
    %c0_i32_0 = arith.constant 0 : i32
    %c0_i32_1 = arith.constant 0 : i32
    %c0_i32_2 = arith.constant 0 : i32
    return %c0_i32, %c0_i32_0, %c0_i32_1 : i32, i32, i32
  }
  func.func @transform_15(%arg0: i32, %arg1: memref<2xi32, #tpu.memory_space<smem>>) -> (i32, i32, i32) {
    %c0_i32 = arith.constant 0 : i32
    %c0_i32_0 = arith.constant 0 : i32
    %c0_i32_1 = arith.constant 0 : i32
    %c0_i32_2 = arith.constant 0 : i32
    return %c0_i32, %c0_i32_0, %c0_i32_1 : i32, i32, i32
  }
  func.func @transform_16(%arg0: i32, %arg1: memref<2xi32, #tpu.memory_space<smem>>) -> (i32, i32, i32) {
    %c0_i32 = arith.constant 0 : i32
    %c0_i32_0 = arith.constant 0 : i32
    %c0_i32_1 = arith.constant 0 : i32
    %c0_i32_2 = arith.constant 0 : i32
    return %c0_i32, %c0_i32_0, %c0_i32_1 : i32, i32, i32
  }
}

</mosaic_0001>

<bundles_post_ra>
// kernel: asr_forward.1
= control target key start
LH: loop header
LB: loop body
LE: loop exit
PB: predicated region body
PF: predicated region fallthrough
CT: control target
= control target key end

     0   :  { %s2542_s27 = smov [#allocation3]   ;;  %s3309_s0 = inlined_call_operand.vmem [shape: s32[2], index: 0, kind: input, shape index: {}]   ;;  %s3310_s1 = inlined_call_operand.vmem [shape: f32[16,16], index: 1, kind: input, shape index: {}]   ;;  %s3311_s2 = inlined_call_operand.vmem [shape: f32[16,128], index: 2, kind: input, shape index: {}]   ;;  %s3312_s3 = inlined_call_operand.vmem [shape: f32[32,128], index: 3, kind: input, shape index: {}]   ;;  %s3313_s4 = inlined_call_operand.vmem [shape: f32[1,128], index: 4, kind: input, shape index: {}]   ;;  %s3314_s5 = inlined_call_operand.vmem [shape: f32[32,44], index: 5, kind: input, shape index: {}]   ;;  %s3315_s6 = inlined_call_operand.vmem [shape: f32[1,44], index: 6, kind: input, shape index: {}]   ;;  %s3316_s7 = inlined_call_operand.vmem [shape: f32[1,32], index: 7, kind: input, shape index: {}]   ;;  %s3317_s8 = inlined_call_operand.vmem [shape: f32[32,160], index: 8, kind: input, shape index: {}]   ;;  %s3318_s9 = inlined_call_operand.vmem [shape: f32[32,128], index: 9, kind: input, shape index: {}]   ;;  %s3319_s10 = inlined_call_operand.vmem [shape: f32[32,128], index: 10, kind: input, shape index: {}]   ;;  %s3320_s11 = inlined_call_operand.vmem [shape: f32[1,128], index: 11, kind: input, shape index: {}]   ;;  %s3321_s12 = inlined_call_operand.vmem [shape: f32[32,12], index: 12, kind: input, shape index: {}]   ;;  %s3322_s13 = inlined_call_operand.vmem [shape: f32[1,12], index: 13, kind: input, shape index: {}]   ;;  %s3323_s14 = inlined_call_operand.vmem [shape: f32[12,32], index: 14, kind: input, shape index: {}]   ;;  %s3324_s15 = inlined_call_operand.hbm [shape: f32[2,8,12], index: 15, kind: output, shape index: {0}]   ;;  %s3325_s16 = inlined_call_operand.hbm [shape: f32[2,4,12], index: 16, kind: output, shape index: {1}]   ;;  %s3326_s17 = inlined_call_operand.hbm [shape: f32[2,4,8], index: 17, kind: output, shape index: {2}]  }
   0x1   :  { %3331 = sst [smem:[#allocation12_spill]] %s3309_s0 }
   0x2   :  { %3332 = sst [smem:[#allocation13_spill]] %s3310_s1 }
   0x3   :  { %3333 = sst [smem:[#allocation14_spill]] %s3320_s11 }
   0x4   :  { %s3334_s26 = sld [smem:[#allocation12_spill]] }
   0xa   :  { %s24_s11 = sshll.u32 %s3334_s26, 4  ;;  %s25_s11 = int_to_ptr.vmem [resolvable:$true] %s24_s11 }
   0xb   :  { %27 = dma.vmem_to_smem %s25_s11, 16, %s2542_s27, [#allocation2] }
   0xc   :  { %2536 = dma.done.wait [#allocation2], 16 }
   0xd   :  { %2537 = vsyncadd [#allocation2], 4294967280 }
   0xe   :  { %30 = sfence }
   0xf   :  { %31 = vsyncpa [#allocation5], 0  ;;  %v102_v0 = vld [vmem:[%s3312_s3 + $0x18] sm:$0xff]  ;;  %v64_v1 = vld [vmem:[%s3311_s2 + $0x8] sm:$0xff]  ;;  %s3335_s22 = sld [smem:[#allocation13_spill]]  ;;  %vm69_vm0 = vcmask 130048  }
  0x10   :  { %v101_v2 = vld [vmem:[%s3312_s3 + $0x10] sm:$0xff]  ;;  %119 = vmatpush.msra.mxu1 %v102_v0  ;;  %90 = vmatpush.msra.mxu0 %v64_v1  ;;  %v63_v3 = vld [vmem:[%s3311_s2] sm:$0xff]  ;;  %v100_v5 = vld [vmem:[%s3312_s3 + $0x8] sm:$0xff] }
  0x11   :  { %v99_v6 = vld [vmem:[%s3312_s3] sm:$0xff]  ;;  %182 = vmatpush.msra.mxu2 %v102_v0  ;;  %252 = vmatpush.msra.mxu3 %v102_v0 }
  0x12   :  { %120 = vmatpush.msra.mxu1 %v101_v2  ;;  %91 = vmatpush.msra.mxu0 %v63_v3 }
  0x13   :  { %183 = vmatpush.msra.mxu2 %v101_v2 }
  0x15   :  { %v61_v4 = vld [vmem:[%s3335_s22] sm:$0xff] }
  0x16   :  { %2224 = vmatmul.msk.f32.vlgmr.msra.gmra.mxu0 %vm69_vm0, %v61_v4 }
  0x17   :  { %32 = vsyncpa [#allocation7], 0  ;;  %121 = vmatpush.msra.mxu1 %v100_v5  ;;  %253 = vmatpush.msra.mxu3 %v101_v2  ;;  %v2543_v7 = vmov 0.0   ;;  %v2673_v8 = vld [vmem:[%s3313_s4] ss:$0 sm:$0xff]  ;;  %s2544_s27 = smov 64  }
  0x18   :  { %184 = vmatpush.msra.mxu2 %v100_v5  ;;  %528 = vmatpush.msrb.mxu0 %v102_v0  ;;  %s2545_s4 = smov 32   ;;  %vm103_vm5 = vcmask 261120   ;;  %s805_s0 = sld [smem:[#allocation3]] }
  0x19   :  { %122 = vmatpush.msra.mxu1 %v99_v6  ;;  %254 = vmatpush.msra.mxu3 %v100_v5  ;;  %s2243_s30 = sld [smem:[#allocation3 + $0x1]]  ;;  %s2546_s18 = smov 116  }
  0x1a   :  { %123 = vmatmul.f32.vlgmr.msra.gmra.mxu1 %v2543_v7  ;;  %185 = vmatpush.msra.mxu2 %v99_v6  ;;  %s3336_s25 = sld [smem:[#allocation14_spill]]  ;;  %s2177_s28 = sshll.u32 %s3324_s15, 4  ;;  %s2178_s28 = int_to_ptr.hbm [resolvable:$true] %s2177_s28 }
  0x1b   :  { %255 = vmatpush.msra.mxu3 %v99_v6  ;;  %322 = vmatpush.msrb.mxu1 %v102_v0  ;;  %s2549_s29 = smov 128   ;;  %s2190_s1 = sshll.u32 %s3325_s16, 4  ;;  %s2191_s1 = int_to_ptr.hbm [resolvable:$true] %s2190_s1 }
  0x1c   :  { %392 = vmatpush.msrb.mxu2 %v102_v0  ;;  %529 = vmatpush.msrb.mxu0 %v101_v2  ;;  %s2203_s20 = sshll.u32 %s3326_s17, 4  ;;  %s2553_s16 = smov 4   ;;  %s2204_s20 = int_to_ptr.hbm [resolvable:$true] %s2203_s20 }
  0x1d   :  { %458 = vmatpush.msrb.mxu3 %v102_v0  ;;  %323 = vmatpush.msrb.mxu1 %v101_v2 }
  0x1e   :  { %393 = vmatpush.msrb.mxu2 %v101_v2  ;;  %530 = vmatpush.msrb.mxu0 %v100_v5 }
  0x1f   :  { %459 = vmatpush.msrb.mxu3 %v101_v2  ;;  %324 = vmatpush.msrb.mxu1 %v100_v5 }
  0x20   :  { %394 = vmatpush.msrb.mxu2 %v100_v5  ;;  %531 = vmatpush.msrb.mxu0 %v99_v6 }
  0x21   :  { %460 = vmatpush.msrb.mxu3 %v100_v5  ;;  %325 = vmatpush.msrb.mxu1 %v99_v6 }
  0x22   :  { %395 = vmatpush.msrb.mxu2 %v99_v6 }
  0x23   :  { %461 = vmatpush.msrb.mxu3 %v99_v6  ;;  %598 = vmatpush.msra.mxu1 %v102_v0 }
  0x25   :  { %599 = vmatpush.msra.mxu1 %v101_v2 }
  0x27   :  { %600 = vmatpush.msra.mxu1 %v100_v5 }
  0x29   :  { %601 = vmatpush.msra.mxu1 %v99_v6 }
  0x93   :  { %v93_v9 = vpop.f32.mrf.mxu0 }
  0x94   :  { %v2676_v10 = vadd.f32 %v2673_v8, %v93_v9 }
  0x97   :  { %v124_v11 = vpop.f32.mrf.mxu1 }
  0x98   :  { %v127_v12 = vadd.f32 %v124_v11, %v2676_v10 }
  0x9a   :  { %2297 = vtanh.f32 %v127_v12  ;;  %v2226_v14 = vmul.f32 -1.442695, %v127_v12 }
  0x9c   :  { %2299 = vpow2.f32 %v2226_v14 }
  0xa0   :  { %v2298_v13 = vpop.eup %2297 }
  0xa1   :  { %150 = vrot.lane.b32.xlu0 %v2298_v13, %s2544_s27 }
  0xa2   :  { %v2300_v15 = vpop.eup %2299 }
  0xa3   :  { %v131_v16 = vadd.f32 1.0, %v2300_v15 }
  0xa5   :  { %2301 = vrcp.f32 %v131_v16  ;;  %v143_v22 = vand.u32 2147483648, %v131_v16  ;;  %vm137_vm2 = vweird.f32 %v131_v16  ;;  %v141_v23 = vand.u32 2147483647, %v131_v16 }
  0xa7   :  { %v144_v25 = vor.u32 1.1754944e-38, %v143_v22  ;;  %vm142_vm4 = vcmp.eq.f32.partialorder %v141_v23, 8.507059e+37 }
  0xab   :  { %v2302_v17 = vpop.eup %2301 }
  0xac   :  { %v133_v18 = vmul.f32 %v2302_v17, %v131_v16  ;;  %vm138_vm1 = vweird.f32 %v2302_v17 }
  0xad   :  { %vm139_vm3 = vmor %vm137_vm2, %vm138_vm1 }
  0xae   :  { %v134_v19 = vsub.f32 1.0, %v133_v18 }
  0xb0   :  { %v135_v20 = vmul.f32 %v2302_v17, %v134_v19 }
  0xb2   :  { %v136_v21 = vadd.f32 %v2302_v17, %v135_v20 }
  0xb4   :  { %v140_v24 = vsel %vm139_vm3, %v2302_v17, %v136_v21 }
  0xb5   :  { %v145_v27 = vsel %vm142_vm4, %v144_v25, %v140_v24 }
  0xb6   :  { %v148_v29 = vmul.f32 0.0, %v145_v27 }
 0x113   :  { %v151_v26 = vpop.permute.xlu0 %150 }
 0x114   :  { %v153_v28 = vmul.f32 %v151_v26, %v145_v27 }
 0x116   :  { %155 = vrot.lane.b32.xlu0 %v153_v28, %s2545_s4 }
 0x188   :  { %v156_v30 = vpop.permute.xlu0 %155 }
 0x189   :  { %v158_v31 = vadd.f32 %v156_v30, %v148_v29 }
 0x18b   :  { %2303 = vtanh.f32 %v158_v31  ;;  %v215_v55 = vrot.slane %v158_v31, 6 }
 0x191   :  { %v2304_v32 = vpop.eup %2303 }
 0x192   :  { %161 = vrot.lane.b32.xlu1 %v2304_v32, %s2544_s27 }
 0x204   :  { %v162_v33 = vpop.permute.xlu1 %161 }
 0x205   :  { %v2682_v34 = vmul.f32 %v162_v33, %v145_v27 }
 0x207   :  { %166 = vrot.lane.b32.xlu1 %v2682_v34, %s2545_s4 }
 0x279   :  { %v167_v35 = vpop.permute.xlu1 %166 }
 0x27a   :  { %2227 = vmatmul.msk.f32.vlgmr.msra.gmra.mxu2 %vm103_vm5, %v167_v35 }
 0x2fd   :  { %v187_v36 = vpop.f32.mrf.mxu2 }
 0x2fe   :  { %v191_v37 = vrot.slane %v187_v36, 6 }
 0x300   :  { %v193_v38 = vadd.f32 %v191_v37, %v2676_v10 }
 0x302   :  { %2305 = vtanh.f32 %v193_v38  ;;  %v2228_v40 = vmul.f32 -1.442695, %v193_v38 }
 0x304   :  { %2307 = vpow2.f32 %v2228_v40 }
 0x308   :  { %v2306_v39 = vpop.eup %2305 }
 0x309   :  { %219 = vrot.lane.b32.xlu2 %v2306_v39, %s2544_s27 }
 0x30a   :  { %v2308_v41 = vpop.eup %2307 }
 0x30b   :  { %v197_v42 = vadd.f32 1.0, %v2308_v41 }
 0x30d   :  { %2309 = vrcp.f32 %v197_v42  ;;  %v209_v48 = vand.u32 2147483648, %v197_v42  ;;  %vm203_vm7 = vweird.f32 %v197_v42  ;;  %v207_v49 = vand.u32 2147483647, %v197_v42 }
 0x30f   :  { %v210_v51 = vor.u32 1.1754944e-38, %v209_v48  ;;  %vm208_vm9 = vcmp.eq.f32.partialorder %v207_v49, 8.507059e+37 }
 0x313   :  { %v2310_v43 = vpop.eup %2309 }
 0x314   :  { %v199_v44 = vmul.f32 %v2310_v43, %v197_v42  ;;  %vm204_vm6 = vweird.f32 %v2310_v43 }
 0x315   :  { %vm205_vm8 = vmor %vm203_vm7, %vm204_vm6 }
 0x316   :  { %v200_v45 = vsub.f32 1.0, %v199_v44 }
 0x318   :  { %v201_v46 = vmul.f32 %v2310_v43, %v200_v45 }
 0x31a   :  { %v202_v47 = vadd.f32 %v2310_v43, %v201_v46 }
 0x31c   :  { %v206_v50 = vsel %vm205_vm8, %v2310_v43, %v202_v47 }
 0x31d   :  { %v211_v53 = vsel %vm208_vm9, %v210_v51, %v206_v50 }
 0x31e   :  { %v217_v56 = vmul.f32 %v215_v55, %v211_v53 }
 0x363   :  { %v220_v52 = vpop.permute.xlu2 %219 }
 0x364   :  { %v222_v54 = vmul.f32 %v220_v52, %v211_v53 }
 0x366   :  { %224 = vrot.lane.b32.xlu2 %v222_v54, %s2545_s4 }
 0x3c0   :  { %v225_v57 = vpop.permute.xlu2 %224 }
 0x3c1   :  { %v227_v58 = vadd.f32 %v225_v57, %v217_v56 }
 0x3c3   :  { %2311 = vtanh.f32 %v227_v58  ;;  %v285_v22 = vrot.slane %v227_v58, 6 }
 0x3c9   :  { %v2312_v59 = vpop.eup %2311 }
 0x3ca   :  { %230 = vrot.lane.b32.xlu0 %v2312_v59, %s2544_s27 }
 0x43c   :  { %v231_v60 = vpop.permute.xlu0 %230 }
 0x43d   :  { %v233_v61 = vmul.f32 %v231_v60, %v211_v53 }
 0x43f   :  { %v235_v62 = vrot.slane %v233_v61, 2  ;;  %652 = vst [vmem:[#allocation1] sm:$0xff] %v233_v61 }
 0x441   :  { %236 = vrot.lane.b32.xlu1 %v235_v62, %s2545_s4  ;;  %v62_v62 = vld [vmem:[%s3335_s22 + $0x8] sm:$0xff] }
 0x442   :  { %2225 = vmatmul.msk.f32.gmra.mxu0 %vm69_vm0, %v62_v62 }
 0x446   :  { %v2697_v29 = vld [vmem:[#allocation1 + $0x2] ss:$9 sm:$0xff] }
 0x447   :  { %v2699_v30 = vld [vmem:[#allocation1 + $0x3] ss:$9 sm:$0xff] }
 0x4b3   :  { %v237_v63 = vpop.permute.xlu1 %236 }
 0x4b4   :  { %2229 = vmatmul.msk.f32.vlgmr.msra.gmra.mxu3 %vm103_vm5, %v237_v63 }
 0x537   :  { %v257_v0 = vpop.f32.mrf.mxu3 }
 0x538   :  { %v261_v1 = vrot.slane %v257_v0, 4  ;;  %v96_v0 = vpop.f32.mrf.mxu0 }
 0x53a   :  { %v263_v2 = vadd.f32 %v261_v1, %v2676_v10  ;;  %v2718_v1 = vadd.f32 %v2673_v8, %v96_v0 }
 0x53c   :  { %2313 = vtanh.f32 %v263_v2  ;;  %v2230_v4 = vmul.f32 -1.442695, %v263_v2 }
 0x53e   :  { %2315 = vpow2.f32 %v2230_v4 }
 0x542   :  { %v2314_v3 = vpop.eup %2313 }
 0x543   :  { %289 = vrot.lane.b32.xlu2 %v2314_v3, %s2544_s27 }
 0x544   :  { %v2316_v5 = vpop.eup %2315 }
 0x545   :  { %v267_v6 = vadd.f32 1.0, %v2316_v5 }
 0x547   :  { %2317 = vrcp.f32 %v267_v6  ;;  %v279_v15 = vand.u32 2147483648, %v267_v6  ;;  %vm273_vm11 = vweird.f32 %v267_v6  ;;  %v277_v16 = vand.u32 2147483647, %v267_v6 }
 0x549   :  { %v280_v18 = vor.u32 1.1754944e-38, %v279_v15  ;;  %vm278_vm13 = vcmp.eq.f32.partialorder %v277_v16, 8.507059e+37 }
 0x54d   :  { %v2318_v9 = vpop.eup %2317 }
 0x54e   :  { %v269_v11 = vmul.f32 %v2318_v9, %v267_v6  ;;  %vm274_vm10 = vweird.f32 %v2318_v9 }
 0x54f   :  { %vm275_vm12 = vmor %vm273_vm11, %vm274_vm10 }
 0x550   :  { %v270_v12 = vsub.f32 1.0, %v269_v11 }
 0x552   :  { %v271_v13 = vmul.f32 %v2318_v9, %v270_v12 }
 0x554   :  { %v272_v14 = vadd.f32 %v2318_v9, %v271_v13 }
 0x556   :  { %v276_v17 = vsel %vm275_vm12, %v2318_v9, %v272_v14 }
 0x557   :  { %v281_v20 = vsel %vm278_vm13, %v280_v18, %v276_v17 }
 0x558   :  { %v287_v23 = vmul.f32 %v285_v22, %v281_v20 }
 0x59d   :  { %v290_v19 = vpop.permute.xlu2 %289 }
 0x59e   :  { %v292_v21 = vmul.f32 %v290_v19, %v281_v20 }
 0x5a0   :  { %294 = vrot.lane.b32.xlu0 %v292_v21, %s2545_s4 }
 0x612   :  { %v295_v24 = vpop.permute.xlu0 %294 }
 0x613   :  { %v297_v25 = vadd.f32 %v295_v24, %v287_v23 }
 0x615   :  { %2319 = vtanh.f32 %v297_v25  ;;  %v355_v52 = vrot.slane %v297_v25, 6 }
 0x61b   :  { %v2320_v26 = vpop.eup %2319 }
 0x61c   :  { %300 = vrot.lane.b32.xlu1 %v2320_v26, %s2544_s27 }
 0x68e   :  { %v301_v27 = vpop.permute.xlu1 %300 }
 0x68f   :  { %v303_v28 = vmul.f32 %v301_v27, %v281_v20 }
 0x691   :  { %v305_v31 = vrot.slane %v303_v28, 4  ;;  %657 = vst [vmem:[#allocation1] sm:$0xff] %v303_v28 }
 0x693   :  { %306 = vrot.lane.b32.xlu2 %v305_v31, %s2545_s4 }
 0x698   :  { %v2707_v59 = vld [vmem:[#allocation1 + $0x4] ss:$9 sm:$0xff] }
 0x699   :  { %v2709_v60 = vld [vmem:[#allocation1 + $0x5] ss:$9 sm:$0xff] }
 0x6ed   :  { %v307_v32 = vpop.permute.xlu2 %306 }
 0x6ee   :  { %2231 = vmatmul.msk.f32.vlgmr.msrb.gmra.mxu1 %vm103_vm5, %v307_v32 }
 0x76b   :  { %v327_v33 = vpop.f32.mrf.mxu1 }
 0x76c   :  { %v331_v35 = vrot.slane %v327_v33, 2 }
 0x76e   :  { %v333_v36 = vadd.f32 %v331_v35, %v2676_v10 }
 0x770   :  { %2321 = vtanh.f32 %v333_v36  ;;  %v2232_v38 = vmul.f32 -1.442695, %v333_v36 }
 0x772   :  { %2323 = vpow2.f32 %v2232_v38 }
 0x776   :  { %v2322_v37 = vpop.eup %2321 }
 0x777   :  { %359 = vrot.lane.b32.xlu0 %v2322_v37, %s2544_s27 }
 0x778   :  { %v2324_v39 = vpop.eup %2323 }
 0x779   :  { %v337_v40 = vadd.f32 1.0, %v2324_v39 }
 0x77b   :  { %2325 = vrcp.f32 %v337_v40  ;;  %v349_v46 = vand.u32 2147483648, %v337_v40  ;;  %vm343_vm15 = vweird.f32 %v337_v40  ;;  %v347_v47 = vand.u32 2147483647, %v337_v40 }
 0x77d   :  { %v350_v48 = vor.u32 1.1754944e-38, %v349_v46  ;;  %vm348_vm2 = vcmp.eq.f32.partialorder %v347_v47, 8.507059e+37 }
 0x781   :  { %v2326_v41 = vpop.eup %2325 }
 0x782   :  { %v339_v42 = vmul.f32 %v2326_v41, %v337_v40  ;;  %vm344_vm14 = vweird.f32 %v2326_v41 }
 0x783   :  { %vm345_vm1 = vmor %vm343_vm15, %vm344_vm14 }
 0x784   :  { %v340_v43 = vsub.f32 1.0, %v339_v42 }
 0x786   :  { %v341_v44 = vmul.f32 %v2326_v41, %v340_v43 }
 0x788   :  { %v342_v45 = vadd.f32 %v2326_v41, %v341_v44 }
 0x78a   :  { %v346_v10 = vsel %vm345_vm1, %v2326_v41, %v342_v45 }
 0x78b   :  { %v351_v50 = vsel %vm348_vm2, %v350_v48, %v346_v10 }
 0x78c   :  { %v357_v53 = vmul.f32 %v355_v52, %v351_v50 }
 0x7e9   :  { %v360_v49 = vpop.permute.xlu0 %359 }
 0x7ea   :  { %v362_v51 = vmul.f32 %v360_v49, %v351_v50 }
 0x7ec   :  { %364 = vrot.lane.b32.xlu1 %v362_v51, %s2545_s4 }
 0x85e   :  { %v365_v54 = vpop.permute.xlu1 %364 }
 0x85f   :  { %v367_v55 = vadd.f32 %v365_v54, %v357_v53 }
 0x861   :  { %2327 = vtanh.f32 %v367_v55  ;;  %v422_v22 = vrot.slane %v367_v55, 6 }
 0x867   :  { %v2328_v56 = vpop.eup %2327 }
 0x868   :  { %370 = vrot.lane.b32.xlu2 %v2328_v56, %s2544_s27 }
 0x8c2   :  { %v371_v57 = vpop.permute.xlu2 %370 }
 0x8c3   :  { %v373_v58 = vmul.f32 %v371_v57, %v351_v50 }
 0x8c5   :  { %v375_v61 = vrot.slane %v373_v58, 6  ;;  %662 = vst [vmem:[#allocation1] sm:$0xff] %v373_v58 }
 0x8c7   :  { %376 = vrot.lane.b32.xlu0 %v375_v61, %s2545_s4 }
 0x8cc   :  { %v2733_v58 = vld [vmem:[#allocation1 + $0x6] ss:$9 sm:$0xff] }
 0x8cd   :  { %v2735_v61 = vld [vmem:[#allocation1 + $0x7] ss:$9 sm:$0xff] }
 0x939   :  { %v377_v63 = vpop.permute.xlu0 %376 }
 0x93a   :  { %2233 = vmatmul.msk.f32.vlgmr.msrb.gmra.mxu2 %vm103_vm5, %v377_v63 }
 0x9bd   :  { %v397_v2 = vpop.f32.mrf.mxu2 }
 0x9be   :  { %v400_v3 = vadd.f32 %v397_v2, %v2718_v1 }
 0x9c0   :  { %2329 = vtanh.f32 %v400_v3  ;;  %v2234_v5 = vmul.f32 -1.442695, %v400_v3 }
 0x9c2   :  { %2331 = vpow2.f32 %v2234_v5 }
 0x9c6   :  { %v2330_v4 = vpop.eup %2329 }
 0x9c7   :  { %426 = vrot.lane.b32.xlu1 %v2330_v4, %s2544_s27 }
 0x9c8   :  { %v2332_v6 = vpop.eup %2331 }
 0x9c9   :  { %v404_v9 = vadd.f32 1.0, %v2332_v6 }
 0x9cb   :  { %2333 = vrcp.f32 %v404_v9  ;;  %v416_v8 = vand.u32 2147483648, %v404_v9  ;;  %vm410_vm3 = vweird.f32 %v404_v9  ;;  %v414_v16 = vand.u32 2147483647, %v404_v9 }
 0x9cd   :  { %v417_v18 = vor.u32 1.1754944e-38, %v416_v8  ;;  %vm415_vm6 = vcmp.eq.f32.partialorder %v414_v16, 8.507059e+37 }
 0x9d1   :  { %v2334_v11 = vpop.eup %2333 }
 0x9d2   :  { %v406_v12 = vmul.f32 %v2334_v11, %v404_v9  ;;  %vm411_vm0 = vweird.f32 %v2334_v11 }
 0x9d3   :  { %vm412_vm4 = vmor %vm410_vm3, %vm411_vm0  ;;  %vm712_vm3 = vcmask 1040384  }
 0x9d4   :  { %v407_v13 = vsub.f32 1.0, %v406_v12 }
 0x9d6   :  { %v408_v14 = vmul.f32 %v2334_v11, %v407_v13 }
 0x9d8   :  { %v409_v15 = vadd.f32 %v2334_v11, %v408_v14 }
 0x9da   :  { %v413_v17 = vsel %vm412_vm4, %v2334_v11, %v409_v15  ;;  %vm3330_vm4 = vcmask 1041408  }
 0x9db   :  { %v418_v20 = vsel %vm415_vm6, %v417_v18, %v413_v17  ;;  %vm3329_vm6 = vcmask 1042432  }
 0x9dc   :  { %v424_v23 = vmul.f32 %v422_v22, %v418_v20 }
 0xa39   :  { %v427_v19 = vpop.permute.xlu1 %426 }
 0xa3a   :  { %v429_v21 = vmul.f32 %v427_v19, %v418_v20 }
 0xa3c   :  { %431 = vrot.lane.b32.xlu2 %v429_v21, %s2545_s4 }
 0xa96   :  { %v432_v24 = vpop.permute.xlu2 %431 }
 0xa97   :  { %v434_v25 = vadd.f32 %v432_v24, %v424_v23 }
 0xa99   :  { %2335 = vtanh.f32 %v434_v25  ;;  %v491_v51 = vrot.slane %v434_v25, 6 }
 0xa9f   :  { %v2336_v26 = vpop.eup %2335 }
 0xaa0   :  { %437 = vrot.lane.b32.xlu0 %v2336_v26, %s2544_s27 }
 0xb12   :  { %v438_v27 = vpop.permute.xlu0 %437 }
 0xb13   :  { %v2724_v28 = vmul.f32 %v438_v27, %v418_v20 }
 0xb15   :  { %442 = vrot.lane.b32.xlu1 %v2724_v28, %s2545_s4 }
 0xb87   :  { %v443_v31 = vpop.permute.xlu1 %442 }
 0xb88   :  { %2235 = vmatmul.msk.f32.vlgmr.msrb.gmra.mxu3 %vm103_vm5, %v443_v31 }
 0xc0b   :  { %v463_v32 = vpop.f32.mrf.mxu3 }
 0xc0c   :  { %v467_v33 = vrot.slane %v463_v32, 6 }
 0xc0e   :  { %v469_v35 = vadd.f32 %v467_v33, %v2718_v1 }
 0xc10   :  { %2337 = vtanh.f32 %v469_v35  ;;  %v2236_v37 = vmul.f32 -1.442695, %v469_v35 }
 0xc12   :  { %2339 = vpow2.f32 %v2236_v37 }
 0xc16   :  { %v2338_v36 = vpop.eup %2337 }
 0xc17   :  { %495 = vrot.lane.b32.xlu2 %v2338_v36, %s2544_s27 }
 0xc18   :  { %v2340_v38 = vpop.eup %2339 }
 0xc19   :  { %v473_v39 = vadd.f32 1.0, %v2340_v38 }
 0xc1b   :  { %2341 = vrcp.f32 %v473_v39  ;;  %v485_v45 = vand.u32 2147483648, %v473_v39  ;;  %vm479_vm8 = vweird.f32 %v473_v39  ;;  %v483_v46 = vand.u32 2147483647, %v473_v39 }
 0xc1d   :  { %v486_v10 = vor.u32 1.1754944e-38, %v485_v45  ;;  %vm484_vm10 = vcmp.eq.f32.partialorder %v483_v46, 8.507059e+37 }
 0xc21   :  { %v2342_v40 = vpop.eup %2341 }
 0xc22   :  { %v475_v41 = vmul.f32 %v2342_v40, %v473_v39  ;;  %vm480_vm7 = vweird.f32 %v2342_v40 }
 0xc23   :  { %vm481_vm9 = vmor %vm479_vm8, %vm480_vm7  ;;  %vm721_vm7 = vcmask 1043456   ;;  %vm724_vm8 = vcmask 1044480  }
 0xc24   :  { %v476_v42 = vsub.f32 1.0, %v475_v41 }
 0xc26   :  { %v477_v43 = vmul.f32 %v2342_v40, %v476_v42 }
 0xc28   :  { %v478_v44 = vadd.f32 %v2342_v40, %v477_v43 }
 0xc2a   :  { %v482_v47 = vsel %vm481_vm9, %v2342_v40, %v478_v44  ;;  %vm727_vm9 = vcmask 1045504  }
 0xc2b   :  { %v487_v49 = vsel %vm484_vm10, %v486_v10, %v482_v47  ;;  %vm730_vm10 = vcmask 1046528  }
 0xc2c   :  { %v493_v52 = vmul.f32 %v491_v51, %v487_v49 }
 0xc71   :  { %v496_v48 = vpop.permute.xlu2 %495 }
 0xc72   :  { %v498_v50 = vmul.f32 %v496_v48, %v487_v49 }
 0xc74   :  { %500 = vrot.lane.b32.xlu0 %v498_v50, %s2545_s4 }
 0xce6   :  { %v501_v53 = vpop.permute.xlu0 %500 }
 0xce7   :  { %v503_v54 = vadd.f32 %v501_v53, %v493_v52 }
 0xce9   :  { %2343 = vtanh.f32 %v503_v54  ;;  %v561_v22 = vrot.slane %v503_v54, 6 }
 0xcef   :  { %v2344_v55 = vpop.eup %2343 }
 0xcf0   :  { %506 = vrot.lane.b32.xlu1 %v2344_v55, %s2544_s27 }
 0xd62   :  { %v507_v56 = vpop.permute.xlu1 %506 }
 0xd63   :  { %v509_v57 = vmul.f32 %v507_v56, %v487_v49 }
 0xd65   :  { %v511_v62 = vrot.slane %v509_v57, 2  ;;  %668 = vst [vmem:[#allocation1] sm:$0xff] %v509_v57 }
 0xd67   :  { %512 = vrot.lane.b32.xlu2 %v511_v62, %s2545_s4 }
 0xd6c   :  { %v2743_v32 = vld [vmem:[#allocation1 + $0x3] ss:$9 sm:$0xff] }
 0xd6d   :  { %v2745_v33 = vld [vmem:[#allocation1 + $0x2] ss:$9 sm:$0xff] }
 0xdc1   :  { %v513_v63 = vpop.permute.xlu2 %512 }
 0xdc2   :  { %2237 = vmatmul.msk.f32.vlgmr.msrb.gmra.mxu0 %vm103_vm5, %v513_v63 }
 0xe3f   :  { %v533_v0 = vpop.f32.mrf.mxu0 }
 0xe40   :  { %v537_v2 = vrot.slane %v533_v0, 4  ;;  %v684_v0 = vperm.slane %v2697_v29, 0  ;;  %v693_v29 = vperm.slane %v2735_v61, 0 }
 0xe42   :  { %v539_v3 = vadd.f32 %v537_v2, %v2718_v1 }
 0xe44   :  { %2345 = vtanh.f32 %v539_v3  ;;  %v2238_v5 = vmul.f32 -1.442695, %v539_v3  ;;  %v685_v3 = vperm.slane %v2699_v30, 0  ;;  %v696_v30 = vperm.slane %v2724_v28, 0 }
 0xe46   :  { %2347 = vpow2.f32 %v2238_v5 }
 0xe4a   :  { %v2346_v4 = vpop.eup %2345 }
 0xe4b   :  { %565 = vrot.lane.b32.xlu0 %v2346_v4, %s2544_s27  ;;  %v667_v4 = vrot.slane %v2724_v28, 1 }
 0xe4c   :  { %v2348_v6 = vpop.eup %2347 }
 0xe4d   :  { %v543_v9 = vadd.f32 1.0, %v2348_v6 }
 0xe4f   :  { %2349 = vrcp.f32 %v543_v9  ;;  %v555_v8 = vand.u32 2147483648, %v543_v9  ;;  %vm549_vm12 = vweird.f32 %v543_v9  ;;  %v553_v16 = vand.u32 2147483647, %v543_v9 }
 0xe51   :  { %v556_v18 = vor.u32 1.1754944e-38, %v555_v8  ;;  %vm554_vm14 = vcmp.eq.f32.partialorder %v553_v16, 8.507059e+37  ;;  %v700_v16 = vperm.slane %v2745_v33, 0  ;;  %v736_v33 = vld [vmem:[%s3314_s5 + $0x18] sm:$0xff] }
 0xe52   :  { %763 = vmatpush.msra.mxu2 %v736_v33 }
 0xe55   :  { %v2350_v11 = vpop.eup %2349 }
 0xe56   :  { %v545_v12 = vmul.f32 %v2350_v11, %v543_v9  ;;  %vm550_vm11 = vweird.f32 %v2350_v11  ;;  %v688_v9 = vperm.slane %v2707_v59, 0 }
 0xe57   :  { %vm551_vm13 = vmor %vm549_vm12, %vm550_vm11 }
 0xe58   :  { %v546_v13 = vsub.f32 1.0, %v545_v12  ;;  %v689_v12 = vperm.slane %v2709_v60, 0  ;;  %v701_v60 = vperm.slane %v2743_v32, 0 }
 0xe5a   :  { %v547_v14 = vmul.f32 %v2350_v11, %v546_v13  ;;  %v692_v13 = vperm.slane %v2733_v58, 0 }
 0xe5c   :  { %v548_v15 = vadd.f32 %v2350_v11, %v547_v14  ;;  %v713_v14 = vsel %vm712_vm3, %v2682_v34, %v684_v0 }
 0xe5d   :  { %v716_v59 = vsel %vm3330_vm4, %v713_v14, %v688_v9 }
 0xe5e   :  { %v552_v17 = vsel %vm551_vm13, %v2350_v11, %v548_v15  ;;  %v650_v11 = vrot.slane %v2682_v34, 1  ;;  %v697_v15 = vperm.slane %v667_v4, 0  ;;  %v719_v34 = vsel %vm3329_vm6, %v716_v59, %v692_v13 }
 0xe5f   :  { %v557_v20 = vsel %vm554_vm14, %v556_v18, %v552_v17  ;;  %v722_v28 = vsel %vm721_vm7, %v719_v34, %v696_v30  ;;  %v2547_v30 = vmov 0   ;;  %vm937_vm13 = vcmask 1041409  }
 0xe60   :  { %v563_v23 = vmul.f32 %v561_v22, %v557_v20  ;;  %v714_v8 = vsel %vm712_vm3, %v650_v11, %v685_v3  ;;  %2290 = vset.pattern.permute.xlu0 %v2547_v30  ;;  %2289 = vset.pattern.permute.xlu2 %v2547_v30  ;;  %vm940_vm14 = vcmask 58368  }
 0xe61   :  { %v717_v58 = vsel %vm3330_vm4, %v714_v8, %v689_v12 }
 0xe62   :  { %v720_v18 = vsel %vm3329_vm6, %v717_v58, %v693_v29 }
 0xebd   :  { %v566_v19 = vpop.permute.xlu0 %565 }
 0xebe   :  { %v568_v21 = vmul.f32 %v566_v19, %v557_v20  ;;  %v723_v19 = vsel %vm721_vm7, %v720_v18, %v697_v15 }
 0xec0   :  { %570 = vrot.lane.b32.xlu1 %v568_v21, %s2545_s4 }
 0xf32   :  { %v571_v24 = vpop.permute.xlu1 %570 }
 0xf33   :  { %v573_v25 = vadd.f32 %v571_v24, %v563_v23  ;;  %v725_v23 = vsel %vm724_vm8, %v722_v28, %v700_v16 }
 0xf35   :  { %2351 = vtanh.f32 %v573_v25  ;;  %v631_v54 = vrot.slane %v573_v25, 6  ;;  %v726_v25 = vsel %vm724_vm8, %v723_v19, %v701_v60 }
 0xf3b   :  { %v2352_v26 = vpop.eup %2351 }
 0xf3c   :  { %576 = vrot.lane.b32.xlu2 %v2352_v26, %s2544_s27 }
 0xf96   :  { %v577_v27 = vpop.permute.xlu2 %576 }
 0xf97   :  { %v579_v31 = vmul.f32 %v577_v27, %v557_v20 }
 0xf99   :  { %v581_v35 = vrot.slane %v579_v31, 4  ;;  %673 = vst [vmem:[#allocation1] sm:$0xff] %v579_v31 }
 0xf9b   :  { %582 = vrot.lane.b32.xlu0 %v581_v35, %s2545_s4  ;;  %v735_v35 = vld [vmem:[%s3314_s5 + $0x10] sm:$0xff] }
 0xf9c   :  { %764 = vmatpush.msra.mxu2 %v735_v35 }
 0xfa0   :  { %v675_v5 = vld [vmem:[#allocation1 + $0x4] ss:$9 sm:$0xff] }
 0xfa1   :  { %v677_v6 = vld [vmem:[#allocation1 + $0x5] ss:$9 sm:$0xff]  ;;  %v704_v17 = vperm.slane %v675_v5, 0 }
 0xfa2   :  { %v705_v61 = vperm.slane %v677_v6, 0 }
 0xfa3   :  { %v728_v26 = vsel %vm727_vm9, %v725_v23, %v704_v17 }
 0xfa4   :  { %v729_v27 = vsel %vm727_vm9, %v726_v25, %v705_v61 }
0x100d   :  { %v583_v36 = vpop.permute.xlu0 %582 }
0x100e   :  { %2239 = vmatmul.msk.f32.vlgmr.msra.gmra.mxu1 %vm103_vm5, %v583_v36  ;;  %v734_v36 = vld [vmem:[%s3314_s5 + $0x8] sm:$0xff] }
0x100f   :  { %765 = vmatpush.msra.mxu2 %v734_v36 }
0x108b   :  { %v603_v37 = vpop.f32.mrf.mxu1 }
0x108c   :  { %v607_v38 = vrot.slane %v603_v37, 2  ;;  %v733_v37 = vld [vmem:[%s3314_s5] sm:$0xff] }
0x108d   :  { %766 = vmatpush.msra.mxu2 %v733_v37 }
0x108e   :  { %v609_v39 = vadd.f32 %v607_v38, %v2718_v1  ;;  %v2796_v38 = vld [vmem:[%s3317_s8 + $0x38] sm:$0xff] }
0x108f   :  { %873 = vmatpush.msra.mxu0 %v2796_v38 }
0x1090   :  { %2353 = vtanh.f32 %v609_v39  ;;  %v2240_v41 = vmul.f32 -1.442695, %v609_v39  ;;  %v2801_v39 = vld [vmem:[%s3317_s8 + $0x28] sm:$0xff] }
0x1091   :  { %874 = vmatpush.msra.mxu0 %v2801_v39 }
0x1092   :  { %2355 = vpow2.f32 %v2240_v41  ;;  %v2813_v41 = vld [vmem:[%s3317_s8 + $0x8] sm:$0xff] }
0x1096   :  { %v2354_v40 = vpop.eup %2353 }
0x1097   :  { %635 = vrot.lane.b32.xlu1 %v2354_v40, %s2544_s27  ;;  %v2807_v40 = vld [vmem:[%s3317_s8 + $0x18] sm:$0xff] }
0x1098   :  { %v2356_v42 = vpop.eup %2355  ;;  %875 = vmatpush.msra.mxu0 %v2807_v40 }
0x1099   :  { %v613_v43 = vadd.f32 1.0, %v2356_v42 }
0x109a   :  { %876 = vmatpush.msra.mxu0 %v2813_v41 }
0x109b   :  { %2357 = vrcp.f32 %v613_v43  ;;  %v625_v48 = vand.u32 2147483648, %v613_v43  ;;  %vm619_vm1 = vweird.f32 %v613_v43  ;;  %v623_v49 = vand.u32 2147483647, %v613_v43  ;;  %877 = vmatmul.f32.vlgmr.msra.gmra.mxu0 %v2543_v7 }
0x109d   :  { %v626_v50 = vor.u32 1.1754944e-38, %v625_v48  ;;  %vm624_vm0 = vcmp.eq.f32.partialorder %v623_v49, 8.507059e+37 }
0x10a1   :  { %v2358_v44 = vpop.eup %2357 }
0x10a2   :  { %v615_v45 = vmul.f32 %v2358_v44, %v613_v43  ;;  %vm620_vm15 = vweird.f32 %v2358_v44 }
0x10a3   :  { %vm621_vm2 = vmor %vm619_vm1, %vm620_vm15 }
0x10a4   :  { %v616_v46 = vsub.f32 1.0, %v615_v45 }
0x10a6   :  { %v617_v47 = vmul.f32 %v2358_v44, %v616_v46  ;;  %v2292_v46 = vld [vmem:[%s3315_s6] ss:$0 sm:$0xff] }
0x10a8   :  { %v618_v10 = vadd.f32 %v2358_v44, %v617_v47 }
0x10aa   :  { %v622_v1 = vsel %vm621_vm2, %v2358_v44, %v618_v10  ;;  %v803_v44 = vlaneseq }
0x10ab   :  { %v627_v52 = vsel %vm624_vm0, %v626_v50, %v622_v1 }
0x10ac   :  { %v633_v55 = vmul.f32 %v631_v54, %v627_v52  ;;  %v911_v45 = vshrl.u32 %v803_v44, 7  ;;  %v2828_v50 = vand.u32 127, %v803_v44 }
0x10ae   :  { %2287 = vset.pattern.permute.xlu1 %v911_v45 }
0x1109   :  { %v636_v51 = vpop.permute.xlu1 %635 }
0x110a   :  { %v638_v53 = vmul.f32 %v636_v51, %v627_v52  ;;  %v806_v51 = vstv %s805_s0  ;;  %s2550_s0 = smov 8  }
0x110b   :  { %vm807_vm11 = vcmp.ge.s32.totalorder %v2828_v50, %v806_v51 }
0x110c   :  { %640 = vrot.lane.b32.xlu2 %v638_v53, %s2545_s4  ;;  %v808_v53 = vsel %vm807_vm11, -1e+09, %v2543_v7 }
0x1118   :  { %v878_v0 = vpop.f32.mrf.mxu0 }
0x1166   :  { %v641_v56 = vpop.permute.xlu2 %640 }
0x1167   :  { %v643_v57 = vadd.f32 %v641_v56, %v633_v55 }
0x1169   :  { %2359 = vtanh.f32 %v643_v57 }
0x116f   :  { %v2360_v62 = vpop.eup %2359 }
0x1170   :  { %646 = vrot.lane.b32.xlu0 %v2360_v62, %s2544_s27 }
0x11e2   :  { %v647_v63 = vpop.permute.xlu0 %646 }
0x11e3   :  { %v649_v2 = vmul.f32 %v647_v63, %v627_v52  ;;  %v810_v52 = vstv %s2243_s30  ;;  %v2839_v63 = vld [vmem:[%s3316_s7] ss:$0 sm:$0xff] }
0x11e4   :  { %vm811_vm12 = vcmp.ge.s32.totalorder %v2828_v50, %v810_v52 }
0x11e5   :  { %679 = vst [vmem:[#allocation1] sm:$0xff] %v649_v2  ;;  %v812_v54 = vsel %vm811_vm12, -1e+09, %v2543_v7  ;;  %v884_v2 = vadd.f32 %v2839_v63, %v878_v0  ;;  %vm1017_vm12 = vcmask 1048320  }
0x11e6   :  { %v813_v56 = vsel %vm712_vm3, %v808_v53, %v812_v54 }
0x11e7   :  { %v909_v57 = vperm.slane %v813_v56, 0  ;;  %v916_v62 = vperm.slane %v813_v56, 1 }
0x11ec   :  { %v681_v20 = vld [vmem:[#allocation1 + $0x6] ss:$9 sm:$0xff] }
0x11ed   :  { %v683_v21 = vld [vmem:[#allocation1 + $0x7] ss:$9 sm:$0xff]  ;;  %v708_v22 = vperm.slane %v681_v20, 0 }
0x11ee   :  { %v709_v24 = vperm.slane %v683_v21, 0 }
0x11ef   :  { %v2773_v31 = vsel %vm730_vm10, %v728_v26, %v708_v22 }
0x11f0   :  { %v2775_v32 = vsel %vm730_vm10, %v729_v27, %v709_v24  ;;  %743 = vrot.lane.b32.xlu1 %v2773_v31, %s2545_s4 }
0x11f1   :  { %745 = vrot.lane.b32.xlu2 %v2775_v32, %s2545_s4 }
0x124b   :  { %v746_v43 = vpop.permute.xlu2 %745 }
0x1262   :  { %v744_v42 = vpop.permute.xlu1 %743 }
0x1263   :  { %2241 = vmatmul.msk.f32.vlgmr.msra.gmra.mxu2 %vm103_vm5, %v744_v42 }
0x126b   :  { %2242 = vmatmul.msk.f32.gmra.mxu2 %vm103_vm5, %v746_v43 }
0x12e6   :  { %v768_v47 = vpop.f32.mrf.mxu2 }
0x12e7   :  { %v2823_v10 = vadd.f32 %v2292_v46, %v768_v47 }
0x12e9   :  { %2361 = vtanh.f32 %v2823_v10 }
0x12ee   :  { %v771_v48 = vpop.f32.mrf.mxu2 }
0x12ef   :  { %v2362_v49 = vpop.eup %2361  ;;  %v2826_v1 = vadd.f32 %v2292_v46, %v771_v48 }
0x12f0   :  { %894 = vrot.lane.b32.xlu0 %v2362_v49, %s2546_s18 }
0x12f1   :  { %2363 = vtanh.f32 %v2826_v1 }
0x12f2   :  { %2365 = vtanh.f32 %v884_v2 }
0x12f7   :  { %v2364_v55 = vpop.eup %2363 }
0x12f8   :  { %896 = vrot.lane.b32.xlu1 %v2364_v55, %s2546_s18  ;;  %v2366_v3 = vpop.eup %2365 }
0x12f9   :  { %v888_v4 = vperm.slane %v2366_v3, 0  ;;  %v887_v11 = vrot.slane %v2366_v3, 1 }
0x12fb   :  { %v889_v12 = vperm.slane %v887_v11, 0 }
0x1300   :  { %914 = vperm.xlu1 %2287, %v909_v57  }
0x1308   :  { %921 = vperm.xlu1 %2287, %v916_v62  }
0x1310   :  { %2288 = vset.pattern.permute.xlu1 %v2547_v30 }
0x1362   :  { %v2842_v5 = vpop.permute.xlu0 %894 }
0x1363   :  { %v900_v6 = vmul.f32 %v2842_v5, %v888_v4 }
0x1365   :  { %v902_v9 = vsel %vm103_vm5, %v900_v6, 0.0 }
0x1366   :  { %903 = vadd.xlane.f32.xlu2 %v902_v9 }
0x136a   :  { %v2846_v13 = vpop.permute.xlu1 %896 }
0x136b   :  { %v901_v29 = vmul.f32 %v2846_v13, %v889_v12 }
0x136d   :  { %v905_v14 = vsel %vm103_vm5, %v901_v29, 0.0 }
0x136e   :  { %906 = vadd.xlane.f32.xlu0 %v905_v14 }
0x1372   :  { %v2850_v15 = vpop.permute.xlu1 %914 }
0x137a   :  { %v2853_v16 = vpop.permute.xlu1 %921 }
0x13d9   :  { %v904_v8 = vpop.xlane.xlu2 %903 }
0x13da   :  { %v925_v59 = vadd.f32 %v2850_v15, %v904_v8 }
0x13dc   :  { %930 = vperm.xlu1 %2288, %v925_v59  }
0x13e1   :  { %v907_v60 = vpop.xlane.xlu0 %906 }
0x13e2   :  { %v926_v58 = vadd.f32 %v2853_v16, %v907_v60  ;;  %v2872_v60 = vld [vmem:[%s3317_s8 + $0x20] sm:$0xff] }
0x13e4   :  { %933 = vperm.xlu1 %2288, %v926_v58  }
0x144e   :  { %v931_v17 = vpop.permute.xlu1 %930 }
0x144f   :  { %v935_v34 = vperm.slane %v931_v17, %v2828_v50  ;;  %v2884_v17 = vld [vmem:[%s3319_s10 + $0x18] sm:$0xff] }
0x1450   :  { %1051 = vmatpush.msrb.mxu1 %v2884_v17 }
0x1456   :  { %v934_v61 = vpop.permute.xlu1 %933 }
0x1457   :  { %v936_v18 = vperm.slane %v934_v61, %v2828_v50  ;;  %v2891_v61 = vld [vmem:[%s3319_s10 + $0x10] sm:$0xff] }
0x1458   :  { %1052 = vmatpush.msrb.mxu1 %v2891_v61 }
0x1459   :  { %v938_v28 = vsel %vm937_vm13, %v936_v18, %v935_v34  ;;  %v2896_v34 = vld [vmem:[%s3317_s8] sm:$0xff]  ;;  %v2901_v18 = vld [vmem:[%s3319_s10 + $0x8] sm:$0xff] }
0x145a   :  { %v941_v19 = vsel %vm940_vm14, %v938_v28, -inf  ;;  %v2909_v28 = vld [vmem:[%s3318_s9 + $0x18] sm:$0xff]  ;;  %1053 = vmatpush.msrb.mxu1 %v2901_v18 }
0x145b   :  { %942 = vmax.xlane.f32.xlu1 %v941_v19  ;;  %v2914_v19 = vld [vmem:[%s3319_s10] sm:$0xff]  ;;  %s2552_s10 = smov [#allocation8]  }
0x145c   :  { %1054 = vmatpush.msrb.mxu1 %v2914_v19 }
0x14ce   :  { %v943_v20 = vpop.xlane.xlu1 %942 }
0x14cf   :  { %v945_v21 = vperm.slane %v943_v20, 0  ;;  %v946_v22 = vperm.slane %v943_v20, 1  ;;  %v2923_v20 = vld [vmem:[%s3318_s9 + $0x10] sm:$0xff] }
0x14d1   :  { %v949_v23 = vsub.f32 %v925_v59, %v945_v21  ;;  %v950_v24 = vsub.f32 %v926_v58, %v946_v22  ;;  %v2867_v59 = vld [vmem:[%s3317_s8 + $0x30] sm:$0xff]  ;;  %v2931_v21 = vld [vmem:[%s3318_s9 + $0x8] sm:$0xff]  ;;  %v2937_v22 = vld [vmem:[%s3318_s9] sm:$0xff] }
0x14d2   :  { %853 = vmatpush.msra.mxu3 %v2867_v59  ;;  %1214 = vmatpush.msrb.mxu2 %v2867_v59  ;;  %v2879_v58 = vld [vmem:[%s3317_s8 + $0x10] sm:$0xff] }
0x14d3   :  { %v951_v25 = vmul.f32 1.442695, %v949_v23  ;;  %v953_v26 = vmul.f32 1.442695, %v950_v24  ;;  %v2294_v23 = vld [vmem:[%s3323_s14] ss:$0 sm:$0xff] }
0x14d4   :  { %854 = vmatpush.msra.mxu3 %v2872_v60  ;;  %1215 = vmatpush.msrb.mxu2 %v2872_v60 }
0x14d5   :  { %2367 = vpow2.f32 %v951_v25 }
0x14d6   :  { %2369 = vpow2.f32 %v953_v26  ;;  %855 = vmatpush.msra.mxu3 %v2879_v58  ;;  %1216 = vmatpush.msrb.mxu2 %v2879_v58 }
0x14d8   :  { %856 = vmatpush.msra.mxu3 %v2896_v34  ;;  %1217 = vmatpush.msrb.mxu2 %v2896_v34 }
0x14d9   :  { %857 = vmatmul.f32.vlgmr.msra.gmra.mxu3 %v2543_v7 }
0x14da   :  { %1074 = vmatpush.msrb.mxu3 %v2909_v28 }
0x14db   :  { %v2368_v27 = vpop.eup %2367 }
0x14dc   :  { %v2370_v33 = vpop.eup %2369  ;;  %958 = vperm.xlu2 %2289, %v2368_v27   ;;  %1075 = vmatpush.msrb.mxu3 %v2923_v20 }
0x14dd   :  { %961 = vperm.xlu0 %2290, %v2370_v33  }
0x14de   :  { %1076 = vmatpush.msrb.mxu3 %v2931_v21 }
0x14e0   :  { %1077 = vmatpush.msrb.mxu3 %v2937_v22 }
0x14e1   :  { %2245 = vmatmul.msk.f32.vlgmr.msrb.gmra.mxu3 %vm103_vm5, %v2294_v23 }
0x14e2   :  { %1234 = vmatpush.msra.mxu3 %v2796_v38 }
0x14e4   :  { %1235 = vmatpush.msra.mxu3 %v2801_v39 }
0x14e6   :  { %1236 = vmatpush.msra.mxu3 %v2807_v40 }
0x14e8   :  { %1237 = vmatpush.msra.mxu3 %v2813_v41 }
0x1536   :  { %v959_v35 = vpop.permute.xlu2 %958 }
0x1537   :  { %v963_v37 = vperm.slane %v959_v35, %v2828_v50 }
0x154f   :  { %v962_v36 = vpop.permute.xlu0 %961 }
0x1550   :  { %v964_v42 = vperm.slane %v962_v36, %v2828_v50 }
0x1552   :  { %v965_v43 = vsel %vm937_vm13, %v964_v42, %v963_v37 }
0x1553   :  { %v967_v44 = vsel %vm940_vm14, %v965_v43, 0.0 }
0x1554   :  { %968 = vadd.xlane.f32.xlu2 %v967_v44 }
0x15c7   :  { %v969_v45 = vpop.xlane.xlu2 %968 }
0x15c8   :  { %v971_v46 = vperm.slane %v969_v45, 0  ;;  %v972_v47 = vperm.slane %v969_v45, 1 }
0x15ca   :  { %2371 = vrcp.f32 %v971_v46  ;;  %v986_v55 = vand.u32 2147483648, %v971_v46  ;;  %v1001_v56 = vand.u32 2147483648, %v972_v47  ;;  %v984_v62 = vand.u32 2147483647, %v971_v46 }
0x15cb   :  { %2373 = vrcp.f32 %v972_v47  ;;  %v999_v2 = vand.u32 2147483647, %v972_v47  ;;  %vm980_vm2 = vweird.f32 %v971_v46  ;;  %vm995_vm0 = vweird.f32 %v972_v47 }
0x15cc   :  { %v987_v6 = vor.u32 1.1754944e-38, %v986_v55  ;;  %v1002_v9 = vor.u32 1.1754944e-38, %v1001_v56  ;;  %vm985_vm10 = vcmp.eq.f32.partialorder %v984_v62, 8.507059e+37  ;;  %v858_v55 = vpop.f32.mrf.mxu3 }
0x15cd   :  { %vm1000_vm11 = vcmp.eq.f32.partialorder %v999_v2, 8.507059e+37 }
0x15d0   :  { %v2372_v48 = vpop.eup %2371 }
0x15d1   :  { %v2374_v49 = vpop.eup %2373  ;;  %v976_v51 = vmul.f32 %v2372_v48, %v971_v46  ;;  %vm981_vm15 = vweird.f32 %v2372_v48 }
0x15d2   :  { %v991_v52 = vmul.f32 %v2374_v49, %v972_v47  ;;  %vm996_vm1 = vweird.f32 %v2374_v49  ;;  %vm982_vm8 = vmor %vm980_vm2, %vm981_vm15 }
0x15d3   :  { %v977_v53 = vsub.f32 1.0, %v976_v51  ;;  %vm997_vm9 = vmor %vm995_vm0, %vm996_vm1 }
0x15d4   :  { %v992_v54 = vsub.f32 1.0, %v991_v52  ;;  %v1079_v56 = vpop.f32.mrf.mxu3 }
0x15d5   :  { %v978_v57 = vmul.f32 %v2372_v48, %v977_v53 }
0x15d6   :  { %v993_v0 = vmul.f32 %v2374_v49, %v992_v54 }
0x15d7   :  { %v979_v3 = vadd.f32 %v2372_v48, %v978_v57 }
0x15d8   :  { %v994_v4 = vadd.f32 %v2374_v49, %v993_v0  ;;  %v2965_v0 = vld [vmem:[%s3336_s25] ss:$0 sm:$0xff] }
0x15d9   :  { %v983_v11 = vsel %vm982_vm8, %v2372_v48, %v979_v3  ;;  %vm1152_vm8 = vcmask 91136  }
0x15da   :  { %v998_v12 = vsel %vm997_vm9, %v2374_v49, %v994_v4  ;;  %v988_v29 = vsel %vm985_vm10, %v987_v6, %v983_v11 }
0x15db   :  { %v1003_v14 = vsel %vm1000_vm11, %v1002_v9, %v998_v12  ;;  %v989_v30 = vmul.f32 %v2368_v27, %v988_v29 }
0x15dc   :  { %v1004_v8 = vmul.f32 %v2370_v33, %v1003_v14 }
0x15dd   :  { %1007 = vperm.xlu1 %2288, %v989_v30  }
0x15de   :  { %1012 = vperm.xlu0 %2290, %v1004_v8  }
0x164f   :  { %v2943_v24 = vpop.permute.xlu1 %1007 }
0x1650   :  { %v2945_v25 = vpop.permute.xlu0 %1012  ;;  %v1015_v26 = vmul.f32 %v2943_v24, %v2773_v31 }
0x1651   :  { %v1016_v27 = vmul.f32 %v2945_v25, %v2775_v32 }
0x1652   :  { %v1018_v33 = vsel %vm1017_vm12, %v1015_v26, 0.0 }
0x1653   :  { %v1025_v35 = vsel %vm1017_vm12, %v1016_v27, 0.0  ;;  %v1019_v36 = vrot.slane %v1018_v33, 4 }
0x1654   :  { %v1026_v37 = vrot.slane %v1025_v35, 4 }
0x1655   :  { %v1020_v42 = vadd.f32 %v1019_v36, %v1018_v33 }
0x1656   :  { %v1027_v43 = vadd.f32 %v1026_v37, %v1025_v35 }
0x1657   :  { %v1021_v44 = vrot.slane %v1020_v42, 2 }
0x1658   :  { %v1028_v45 = vrot.slane %v1027_v43, 2 }
0x1659   :  { %v1022_v46 = vadd.f32 %v1021_v44, %v1020_v42 }
0x165a   :  { %v1029_v47 = vadd.f32 %v1028_v45, %v1027_v43 }
0x165b   :  { %v1023_v48 = vrot.slane %v1022_v46, 1 }
0x165c   :  { %v1030_v49 = vrot.slane %v1029_v47, 1 }
0x165d   :  { %v1024_v51 = vadd.f32 %v1023_v48, %v1022_v46  ;;  %v2977_v46 = vld [vmem:[%s3321_s12 + $0x18] sm:$0xff]  ;;  %v2989_v48 = vld [vmem:[%s3321_s12 + $0x8] sm:$0xff] }
0x165e   :  { %v1031_v52 = vadd.f32 %v1030_v49, %v1029_v47  ;;  %v2982_v47 = vld [vmem:[%s3321_s12 + $0x10] sm:$0xff]  ;;  %1144 = vmatpush.msrb.mxu0 %v2977_v46  ;;  %1468 = vmatpush.msra.mxu2 %v2977_v46  ;;  %v2996_v49 = vld [vmem:[%s3321_s12] sm:$0xff]  ;;  %s2551_s12 = smov [#allocation6]  }
0x165f   :  { %s2188_s18 = sshll.u32 %s2551_s12, 4  ;;  %s2189_s18 = int_to_ptr.vmem [resolvable:$true] %s2188_s18 }
0x1660   :  { %v1034_v53 = vsel %vm937_vm13, %v1031_v52, %v1024_v51  ;;  %1145 = vmatpush.msrb.mxu0 %v2982_v47  ;;  %1469 = vmatpush.msra.mxu2 %v2982_v47 }
0x1661   :  { %1035 = vrot.lane.b32.xlu0 %v1034_v53, %s2545_s4 }
0x1662   :  { %1146 = vmatpush.msrb.mxu0 %v2989_v48  ;;  %1470 = vmatpush.msra.mxu2 %v2989_v48 }
0x1664   :  { %1147 = vmatpush.msrb.mxu0 %v2996_v49  ;;  %1471 = vmatpush.msra.mxu2 %v2996_v49 }
0x1666   :  { %1381 = vmatpush.msra.mxu0 %v2884_v17 }
0x1668   :  { %1382 = vmatpush.msra.mxu0 %v2891_v61 }
0x166a   :  { %1383 = vmatpush.msra.mxu0 %v2901_v18 }
0x166c   :  { %1384 = vmatpush.msra.mxu0 %v2914_v19 }
0x16d3   :  { %v1036_v54 = vpop.permute.xlu0 %1035 }
0x16d4   :  { %2244 = vmatmul.msk.f32.vlgmr.msrb.gmra.mxu1 %vm103_vm5, %v1036_v54 }
0x1751   :  { %v1056_v57 = vpop.f32.mrf.mxu1 }
0x1752   :  { %v1080_v62 = vadd.f32 %v1079_v56, %v1056_v57 }
0x1754   :  { %v1082_v2 = vadd.f32 %v1080_v62, %v858_v55 }
0x1756   :  { %v1086_v3 = vadd.f32 %v2965_v0, %v1082_v2 }
0x1758   :  { %2375 = vtanh.f32 %v1086_v3  ;;  %v2246_v6 = vmul.f32 -1.442695, %v1086_v3 }
0x175a   :  { %2377 = vpow2.f32 %v2246_v6 }
0x175e   :  { %v2376_v4 = vpop.eup %2375 }
0x175f   :  { %1109 = vrot.lane.b32.xlu0 %v2376_v4, %s2544_s27 }
0x1760   :  { %v2378_v9 = vpop.eup %2377 }
0x1761   :  { %v1090_v11 = vadd.f32 1.0, %v2378_v9 }
0x1763   :  { %2379 = vrcp.f32 %v1090_v11  ;;  %v1102_v23 = vand.u32 2147483648, %v1090_v11  ;;  %vm1096_vm1 = vweird.f32 %v1090_v11  ;;  %v1100_v26 = vand.u32 2147483647, %v1090_v11 }
0x1765   :  { %v1103_v33 = vor.u32 1.1754944e-38, %v1102_v23  ;;  %vm1101_vm0 = vcmp.eq.f32.partialorder %v1100_v26, 8.507059e+37 }
0x1769   :  { %v2380_v12 = vpop.eup %2379 }
0x176a   :  { %v1092_v29 = vmul.f32 %v2380_v12, %v1090_v11  ;;  %vm1097_vm15 = vweird.f32 %v2380_v12 }
0x176b   :  { %vm1098_vm2 = vmor %vm1096_vm1, %vm1097_vm15  ;;  %vm774_vm15 = vcmask 97280  }
0x176c   :  { %v1093_v14 = vsub.f32 1.0, %v1092_v29 }
0x176e   :  { %v1094_v30 = vmul.f32 %v2380_v12, %v1093_v14 }
0x1770   :  { %v1095_v8 = vadd.f32 %v2380_v12, %v1094_v30  ;;  %v3028_v30 = vld [vmem:[%s3322_s13] ss:$0 sm:$0xff] }
0x1772   :  { %v1099_v27 = vsel %vm1098_vm2, %v2380_v12, %v1095_v8 }
0x1773   :  { %v1104_v36 = vsel %vm1101_vm0, %v1103_v33, %v1099_v27 }
0x1774   :  { %v1107_v42 = vmul.f32 0.0, %v1104_v36 }
0x17d1   :  { %v1110_v35 = vpop.permute.xlu0 %1109 }
0x17d2   :  { %v1112_v37 = vmul.f32 %v1110_v35, %v1104_v36 }
0x17d4   :  { %1114 = vrot.lane.b32.xlu2 %v1112_v37, %s2545_s4 }
0x182e   :  { %v1115_v43 = vpop.permute.xlu2 %1114 }
0x182f   :  { %v2970_v44 = vadd.f32 %v1115_v43, %v1107_v42 }
0x1831   :  { %2381 = vtanh.f32 %v2970_v44 }
0x1837   :  { %v2382_v45 = vpop.eup %2381 }
0x1838   :  { %1120 = vrot.lane.b32.xlu1 %v2382_v45, %s2544_s27 }
0x18aa   :  { %v1121_v51 = vpop.permute.xlu1 %1120 }
0x18ab   :  { %v1123_v52 = vmul.f32 %v1121_v51, %v1104_v36 }
0x18ad   :  { %1128 = vrot.lane.b32.xlu0 %v1123_v52, %s2545_s4 }
0x191f   :  { %v1129_v53 = vpop.permute.xlu0 %1128 }
0x1920   :  { %2247 = vmatmul.msk.f32.vlgmr.msrb.gmra.mxu0 %vm103_vm5, %v1129_v53  ;;  %2251 = vmatmul.msk.f32.vlgmr.msrb.gmra.mxu2 %vm103_vm5, %v1129_v53 }
0x1921   :  { %2252 = vmatmul.msk.f32.vlgmr.msra.gmra.mxu3 %vm103_vm5, %v1129_v53  ;;  %1534 = vmatpush.msrb.mxu0 %v2867_v59 }
0x1922   :  { %1701 = vmatpush.msrb.mxu2 %v2884_v17 }
0x1923   :  { %1535 = vmatpush.msrb.mxu0 %v2872_v60 }
0x1924   :  { %1702 = vmatpush.msrb.mxu2 %v2891_v61 }
0x1925   :  { %1536 = vmatpush.msrb.mxu0 %v2879_v58 }
0x1926   :  { %1703 = vmatpush.msrb.mxu2 %v2901_v18 }
0x1927   :  { %1537 = vmatpush.msrb.mxu0 %v2896_v34 }
0x1928   :  { %1704 = vmatpush.msrb.mxu2 %v2914_v19 }
0x199d   :  { %v1149_v8 = vpop.f32.mrf.mxu0 }
0x199e   :  { %v3031_v23 = vadd.f32 %v3028_v30, %v1149_v8 }
0x19a0   :  { %v1153_v26 = vsel %vm1152_vm8, %v3031_v23, -inf }
0x19a4   :  { %v1239_v54 = vpop.f32.mrf.mxu3 }
0x19a5   :  { %v1242_v55 = vadd.f32 %v2839_v63, %v1239_v54 }
0x19a7   :  { %2383 = vtanh.f32 %v1242_v55 }
0x19ad   :  { %v2384_v56 = vpop.eup %2383 }
0x19ae   :  { %v1246_v57 = vperm.slane %v2384_v56, 0  ;;  %v1245_v62 = vrot.slane %v2384_v56, 1 }
0x19b0   :  { %v1250_v2 = vmul.f32 %v1246_v57, %v2842_v5  ;;  %v1247_v3 = vperm.slane %v1245_v62, 0 }
0x19b2   :  { %v1252_v4 = vsel %vm103_vm5, %v1250_v2, 0.0  ;;  %v1251_v6 = vmul.f32 %v1247_v3, %v2846_v13 }
0x19b3   :  { %1253 = vadd.xlane.f32.xlu1 %v1252_v4 }
0x19b4   :  { %v1255_v9 = vsel %vm103_vm5, %v1251_v6, 0.0 }
0x19b5   :  { %1256 = vadd.xlane.f32.xlu0 %v1255_v9 }
0x1a26   :  { %v1254_v11 = vpop.xlane.xlu1 %1253 }
0x1a27   :  { %v1258_v12 = vadd.f32 %v1254_v11, %v2850_v15 }
0x1a28   :  { %v1257_v29 = vpop.xlane.xlu0 %1256 }
0x1a29   :  { %1263 = vperm.xlu2 %2289, %v1258_v12   ;;  %v1259_v14 = vadd.f32 %v1257_v29, %v2853_v16 }
0x1a31   :  { %1266 = vperm.xlu2 %2289, %v1259_v14  }
0x1a5a   :  { %1154 = vmax.xlane.f32.xlu2 %v1153_v26 }
0x1a83   :  { %v1264_v27 = vpop.permute.xlu2 %1263 }
0x1a84   :  { %v1268_v35 = vperm.slane %v1264_v27, %v2828_v50 }
0x1a8b   :  { %v1267_v33 = vpop.permute.xlu2 %1266 }
0x1a8c   :  { %v1269_v36 = vperm.slane %v1267_v33, %v2828_v50 }
0x1a8e   :  { %v1270_v37 = vsel %vm937_vm13, %v1269_v36, %v1268_v35  ;;  %v3055_v36 = vld [vmem:[%s3323_s14 + $0x8] sm:$0xf] }
0x1a8f   :  { %v1272_v42 = vsel %vm940_vm14, %v1270_v37, -inf  ;;  %2249 = vmatpush.msk.msra.mxu1 %vm721_vm7, %v3055_v36  ;;  %2258 = vmatpush.msk.msrb.mxu3 %vm721_vm7, %v3055_v36  ;;  %v3064_v37 = vld [vmem:[%s3323_s14] sm:$0xff] }
0x1a90   :  { %1273 = vmax.xlane.f32.xlu1 %v1272_v42 }
0x1a91   :  { %1197 = vmatpush.msra.mxu1 %v3064_v37  ;;  %1517 = vmatpush.msrb.mxu3 %v3064_v37 }
0x1a93   :  { %1404 = vmatpush.msrb.mxu1 %v2909_v28  ;;  %1724 = vmatpush.msra.mxu3 %v2909_v28 }
0x1a95   :  { %1405 = vmatpush.msrb.mxu1 %v2923_v20  ;;  %1725 = vmatpush.msra.mxu3 %v2923_v20 }
0x1a97   :  { %1406 = vmatpush.msrb.mxu1 %v2931_v21  ;;  %1726 = vmatpush.msra.mxu3 %v2931_v21 }
0x1a99   :  { %1407 = vmatpush.msrb.mxu1 %v2937_v22  ;;  %1727 = vmatpush.msra.mxu3 %v2937_v22 }
0x1acd   :  { %v1155_v43 = vpop.xlane.xlu2 %1154 }
0x1ace   :  { %vm1156_vm9 = vcmp.eq.f32.partialorder %v3031_v23, %v1155_v43 }
0x1acf   :  { %v1157_v45 = vsel %vm1156_vm9, %v2828_v50, 12 }
0x1ad0   :  { %v1158_v51 = vsel %vm1152_vm8, %v1157_v45, 2147483647 }
0x1ad1   :  { %v1160_v52 = vshra.s32 %v1158_v51, 16  ;;  %v1159_v9 = vand.u32 65535, %v1158_v51 }
0x1ad3   :  { %v1162_v53 = vcvt.s32.f32 %v1160_v52  ;;  %v1161_v29 = vcvt.s32.f32 %v1159_v9 }
0x1ad5   :  { %1163 = vmin.xlane.f32.xlu0 %v1162_v53 }
0x1b03   :  { %v1274_v54 = vpop.xlane.xlu1 %1273 }
0x1b04   :  { %v1276_v55 = vperm.slane %v1274_v54, 0  ;;  %v1277_v56 = vperm.slane %v1274_v54, 1 }
0x1b06   :  { %v1280_v57 = vsub.f32 %v1258_v12, %v1276_v55  ;;  %v1281_v62 = vsub.f32 %v1259_v14, %v1277_v56 }
0x1b08   :  { %v1282_v2 = vmul.f32 1.442695, %v1280_v57  ;;  %v1284_v3 = vmul.f32 1.442695, %v1281_v62 }
0x1b0a   :  { %2385 = vpow2.f32 %v1282_v2 }
0x1b0b   :  { %2387 = vpow2.f32 %v1284_v3 }
0x1b10   :  { %v3042_v4 = vpop.eup %2385 }
0x1b11   :  { %v3044_v6 = vpop.eup %2387  ;;  %1289 = vperm.xlu1 %2288, %v3042_v4  }
0x1b12   :  { %1292 = vperm.xlu0 %2290, %v3044_v6  }
0x1b48   :  { %v1164_v11 = vpop.xlane.xlu0 %1163 }
0x1b49   :  { %vm1165_vm10 = vcmp.eq.f32.partialorder %v1162_v53, %v1164_v11  ;;  %v1170_v42 = vcvt.f32.s32 %v1164_v11 }
0x1b4a   :  { %v1166_v8 = vsel %vm1165_vm10, %v1161_v29, inf }
0x1b4b   :  { %1167 = vmin.xlane.f32.xlu2 %v1166_v8  ;;  %v1171_v45 = vshll.u32 %v1170_v42, 16 }
0x1b83   :  { %v1290_v12 = vpop.permute.xlu1 %1289 }
0x1b84   :  { %v1294_v14 = vperm.slane %v1290_v12, %v2828_v50  ;;  %v1293_v26 = vpop.permute.xlu0 %1292 }
0x1b85   :  { %v1295_v27 = vperm.slane %v1293_v26, %v2828_v50 }
0x1b87   :  { %v1296_v33 = vsel %vm937_vm13, %v1295_v27, %v1294_v14 }
0x1b88   :  { %v1298_v35 = vsel %vm940_vm14, %v1296_v33, 0.0 }
0x1b89   :  { %1299 = vadd.xlane.f32.xlu1 %v1298_v35 }
0x1bbe   :  { %v1168_v43 = vpop.xlane.xlu2 %1167 }
0x1bbf   :  { %v1169_v51 = vcvt.f32.s32 %v1168_v43 }
0x1bc1   :  { %v1172_v52 = vadd.s32 %v1171_v45, %v1169_v51 }
0x1bc3   :  { %vm1173_vm11 = vcmp.eq.s32.totalorder %v2828_v50, %v1172_v52 }
0x1bc4   :  { %v2248_v53 = vsel %vm1173_vm11, 1.0, %v2543_v7 }
0x1bc5   :  { %2250 = vmatmul.msk.f32.vlgmr.msra.gmra.mxu1 %vm774_vm15, %v2248_v53 }
0x1bc6   :  { %1554 = vmatpush.msra.mxu1 %v2796_v38 }
0x1bc8   :  { %1555 = vmatpush.msra.mxu1 %v2801_v39 }
0x1bca   :  { %1556 = vmatpush.msra.mxu1 %v2807_v40 }
0x1bcc   :  { %1557 = vmatpush.msra.mxu1 %v2813_v41 }
0x1bfc   :  { %v1300_v54 = vpop.xlane.xlu1 %1299 }
0x1bfd   :  { %v1302_v55 = vperm.slane %v1300_v54, 0  ;;  %v1303_v56 = vperm.slane %v1300_v54, 1 }
0x1bff   :  { %2389 = vrcp.f32 %v1302_v55  ;;  %v1317_v29 = vand.u32 2147483648, %v1302_v55  ;;  %v1315_v38 = vand.u32 2147483647, %v1302_v55  ;;  %v1332_v39 = vand.u32 2147483648, %v1303_v56 }
0x1c00   :  { %2391 = vrcp.f32 %v1303_v56  ;;  %v1330_v40 = vand.u32 2147483647, %v1303_v56  ;;  %vm1311_vm0 = vweird.f32 %v1302_v55  ;;  %vm1326_vm10 = vweird.f32 %v1303_v56 }
0x1c01   :  { %v1318_v14 = vor.u32 1.1754944e-38, %v1317_v29  ;;  %vm1316_vm11 = vcmp.eq.f32.partialorder %v1315_v38, 8.507059e+37  ;;  %v1333_v33 = vor.u32 1.1754944e-38, %v1332_v39 }
0x1c02   :  { %vm1331_vm4 = vcmp.eq.f32.partialorder %v1330_v40, 8.507059e+37 }
0x1c05   :  { %v2390_v57 = vpop.eup %2389 }
0x1c06   :  { %v2392_v62 = vpop.eup %2391  ;;  %v1307_v2 = vmul.f32 %v2390_v57, %v1302_v55  ;;  %vm1312_vm1 = vweird.f32 %v2390_v57 }
0x1c07   :  { %v1322_v3 = vmul.f32 %v2392_v62, %v1303_v56  ;;  %vm1327_vm2 = vweird.f32 %v2392_v62  ;;  %vm1313_vm9 = vmor %vm1311_vm0, %vm1312_vm1 }
0x1c08   :  { %v1308_v9 = vsub.f32 1.0, %v1307_v2  ;;  %vm1328_vm6 = vmor %vm1326_vm10, %vm1327_vm2 }
0x1c09   :  { %v1323_v11 = vsub.f32 1.0, %v1322_v3 }
0x1c0a   :  { %v1309_v8 = vmul.f32 %v2390_v57, %v1308_v9 }
0x1c0b   :  { %v1324_v12 = vmul.f32 %v2392_v62, %v1323_v11 }
0x1c0c   :  { %v1310_v41 = vadd.f32 %v2390_v57, %v1309_v8 }
0x1c0d   :  { %v1325_v26 = vadd.f32 %v2392_v62, %v1324_v12 }
0x1c0e   :  { %v1314_v27 = vsel %vm1313_vm9, %v2390_v57, %v1310_v41 }
0x1c0f   :  { %v1319_v35 = vsel %vm1316_vm11, %v1318_v14, %v1314_v27  ;;  %v1329_v42 = vsel %vm1328_vm6, %v2392_v62, %v1325_v26  ;;  %v1219_v27 = vpop.f32.mrf.mxu2 }
0x1c10   :  { %v1320_v43 = vmul.f32 %v3042_v4, %v1319_v35  ;;  %v1334_v45 = vsel %vm1331_vm4, %v1333_v33, %v1329_v42 }
0x1c11   :  { %v1335_v51 = vmul.f32 %v3044_v6, %v1334_v45 }
0x1c12   :  { %1338 = vperm.xlu0 %2290, %v1320_v43  }
0x1c13   :  { %1343 = vperm.xlu2 %2289, %v1335_v51  }
0x1c42   :  { %v1199_v52 = vpop.f32.mrf.mxu1 }
0x1c43   :  { %2254 = vmatmul.msk.f32.vlgmr.msrb.gmra.mxu1 %vm103_vm5, %v1199_v52 }
0x1c44   :  { %2267 = vmatpush.msk.msrb.mxu1 %vm721_vm7, %v3055_v36 }
0x1c46   :  { %1837 = vmatpush.msrb.mxu1 %v3064_v37 }
0x1c6d   :  { %v3089_v53 = vpop.permute.xlu2 %1343 }
0x1c6e   :  { %v1347_v54 = vmul.f32 %v3089_v53, %v2775_v32 }
0x1c70   :  { %v1355_v4 = vsel %vm1017_vm12, %v1347_v54, 0.0 }
0x1c71   :  { %v1356_v55 = vrot.slane %v1355_v4, 4 }
0x1c73   :  { %v1357_v56 = vadd.f32 %v1356_v55, %v1355_v4 }
0x1c75   :  { %v1358_v62 = vrot.slane %v1357_v56, 2 }
0x1c77   :  { %v1359_v3 = vadd.f32 %v1358_v62, %v1357_v56 }
0x1c79   :  { %v1360_v29 = vrot.slane %v1359_v3, 1 }
0x1c7b   :  { %v1361_v39 = vadd.f32 %v1360_v29, %v1359_v3 }
0x1c84   :  { %v3094_v6 = vpop.permute.xlu0 %1338 }
0x1c85   :  { %v1346_v57 = vmul.f32 %v3094_v6, %v2773_v31 }
0x1c87   :  { %v1348_v2 = vsel %vm1017_vm12, %v1346_v57, 0.0 }
0x1c88   :  { %v1349_v36 = vrot.slane %v1348_v2, 4 }
0x1c8a   :  { %v1350_v37 = vadd.f32 %v1349_v36, %v1348_v2 }
0x1c8c   :  { %v1351_v9 = vrot.slane %v1350_v37, 2 }
0x1c8e   :  { %v1352_v11 = vadd.f32 %v1351_v9, %v1350_v37 }
0x1c90   :  { %v1353_v8 = vrot.slane %v1352_v11, 1 }
0x1c92   :  { %v1354_v38 = vadd.f32 %v1353_v8, %v1352_v11 }
0x1c94   :  { %v1364_v12 = vsel %vm937_vm13, %v1361_v39, %v1354_v38 }
0x1c95   :  { %1365 = vrot.lane.b32.xlu0 %v1364_v12, %s2545_s4 }
0x1cc0   :  { %v1409_v41 = vpop.f32.mrf.mxu1 }
0x1d07   :  { %v1366_v40 = vpop.permute.xlu0 %1365 }
0x1d08   :  { %2253 = vmatmul.msk.f32.vlgmr.msra.gmra.mxu0 %vm103_vm5, %v1366_v40 }
0x1d09   :  { %1788 = vmatpush.msra.mxu0 %v2977_v46 }
0x1d0b   :  { %1789 = vmatpush.msra.mxu0 %v2982_v47 }
0x1d0d   :  { %1790 = vmatpush.msra.mxu0 %v2989_v48 }
0x1d0f   :  { %1791 = vmatpush.msra.mxu0 %v2996_v49 }
0x1d85   :  { %v1386_v14 = vpop.f32.mrf.mxu0 }
0x1d86   :  { %v1410_v26 = vadd.f32 %v1409_v41, %v1386_v14 }
0x1d88   :  { %v1412_v33 = vadd.f32 %v1410_v26, %v1219_v27 }
0x1d8a   :  { %v1413_v35 = vadd.f32 %v2965_v0, %v1412_v33 }
0x1d8c   :  { %2393 = vtanh.f32 %v1413_v35  ;;  %v2255_v43 = vmul.f32 -1.442695, %v1413_v35 }
0x1d8e   :  { %2395 = vpow2.f32 %v2255_v43 }
0x1d92   :  { %v2394_v42 = vpop.eup %2393 }
0x1d93   :  { %1436 = vrot.lane.b32.xlu0 %v2394_v42, %s2544_s27 }
0x1d94   :  { %v2396_v45 = vpop.eup %2395 }
0x1d95   :  { %v1417_v51 = vadd.f32 1.0, %v2396_v45 }
0x1d97   :  { %2397 = vrcp.f32 %v1417_v51  ;;  %v1429_v57 = vand.u32 2147483648, %v1417_v51  ;;  %vm1423_vm6 = vweird.f32 %v1417_v51  ;;  %v1427_v62 = vand.u32 2147483647, %v1417_v51 }
0x1d99   :  { %v1430_v36 = vor.u32 1.1754944e-38, %v1429_v57  ;;  %vm1428_vm1 = vcmp.eq.f32.partialorder %v1427_v62, 8.507059e+37 }
0x1d9d   :  { %v2398_v52 = vpop.eup %2397 }
0x1d9e   :  { %v1419_v54 = vmul.f32 %v2398_v52, %v1417_v51  ;;  %vm1424_vm4 = vweird.f32 %v2398_v52 }
0x1d9f   :  { %vm1425_vm7 = vmor %vm1423_vm6, %vm1424_vm4 }
0x1da0   :  { %v1420_v4 = vsub.f32 1.0, %v1419_v54 }
0x1da2   :  { %v1421_v55 = vmul.f32 %v2398_v52, %v1420_v4 }
0x1da4   :  { %v1422_v56 = vadd.f32 %v2398_v52, %v1421_v55 }
0x1da6   :  { %v1426_v2 = vsel %vm1425_vm7, %v2398_v52, %v1422_v56 }
0x1da7   :  { %v1431_v37 = vsel %vm1428_vm1, %v1430_v36, %v1426_v2 }
0x1da8   :  { %v1434_v11 = vmul.f32 %v1431_v37, %v2970_v44 }
0x1e05   :  { %v1437_v3 = vpop.permute.xlu0 %1436 }
0x1e06   :  { %v1439_v9 = vmul.f32 %v1437_v3, %v1431_v37 }
0x1e08   :  { %1441 = vrot.lane.b32.xlu0 %v1439_v9, %s2545_s4 }
0x1e7a   :  { %v1442_v29 = vpop.permute.xlu0 %1441 }
0x1e7b   :  { %v3110_v8 = vadd.f32 %v1442_v29, %v1434_v11 }
0x1e7d   :  { %2399 = vtanh.f32 %v3110_v8 }
0x1e83   :  { %v2400_v38 = vpop.eup %2399 }
0x1e84   :  { %1447 = vrot.lane.b32.xlu2 %v2400_v38, %s2544_s27 }
0x1ede   :  { %v1448_v39 = vpop.permute.xlu2 %1447 }
0x1edf   :  { %v1450_v12 = vmul.f32 %v1448_v39, %v1431_v37 }
0x1ee1   :  { %1452 = vrot.lane.b32.xlu0 %v1450_v12, %s2545_s4 }
0x1f53   :  { %v1453_v40 = vpop.permute.xlu0 %1452 }
0x1f54   :  { %2256 = vmatmul.msk.f32.vlgmr.msra.gmra.mxu2 %vm103_vm5, %v1453_v40  ;;  %2260 = vmatmul.msk.f32.vlgmr.msrb.gmra.mxu0 %vm103_vm5, %v1453_v40 }
0x1f55   :  { %2261 = vmatmul.msk.f32.vlgmr.msra.gmra.mxu1 %vm103_vm5, %v1453_v40  ;;  %1854 = vmatpush.msra.mxu2 %v2867_v59 }
0x1f56   :  { %2044 = vmatpush.msra.mxu1 %v2909_v28  ;;  %2021 = vmatpush.msrb.mxu0 %v2884_v17 }
0x1f57   :  { %1855 = vmatpush.msra.mxu2 %v2872_v60 }
0x1f58   :  { %2045 = vmatpush.msra.mxu1 %v2923_v20  ;;  %2022 = vmatpush.msrb.mxu0 %v2891_v61 }
0x1f59   :  { %1856 = vmatpush.msra.mxu2 %v2879_v58 }
0x1f5a   :  { %2046 = vmatpush.msra.mxu1 %v2931_v21  ;;  %2023 = vmatpush.msrb.mxu0 %v2901_v18 }
0x1f5b   :  { %1857 = vmatpush.msra.mxu2 %v2896_v34 }
0x1f5c   :  { %2047 = vmatpush.msra.mxu1 %v2937_v22  ;;  %2024 = vmatpush.msrb.mxu0 %v2914_v19 }
0x1fd2   :  { %v1559_v59 = vpop.f32.mrf.mxu1 }
0x1fd3   :  { %v1562_v17 = vadd.f32 %v2839_v63, %v1559_v59 }
0x1fd5   :  { %2401 = vtanh.f32 %v1562_v17 }
0x1fd7   :  { %v1473_v41 = vpop.f32.mrf.mxu2 }
0x1fd8   :  { %v3138_v14 = vadd.f32 %v3028_v30, %v1473_v41  ;;  %v2448_v41 = vld [vmem:[%s3317_s8 + $0x8] sm:$0xff] }
0x1fda   :  { %v1476_v26 = vsel %vm1152_vm8, %v3138_v14, -inf }
0x1fdb   :  { %v2402_v60 = vpop.eup %2401 }
0x1fdc   :  { %v1566_v28 = vperm.slane %v2402_v60, 0  ;;  %v1565_v20 = vrot.slane %v2402_v60, 1 }
0x1fde   :  { %v1570_v61 = vmul.f32 %v1566_v28, %v2842_v5  ;;  %v1567_v58 = vperm.slane %v1565_v20, 0 }
0x1fe0   :  { %v1572_v21 = vsel %vm103_vm5, %v1570_v61, 0.0  ;;  %v1571_v18 = vmul.f32 %v1567_v58, %v2846_v13 }
0x1fe1   :  { %1573 = vadd.xlane.f32.xlu2 %v1572_v21 }
0x1fe2   :  { %v1575_v34 = vsel %vm103_vm5, %v1571_v18, 0.0 }
0x1fe3   :  { %1576 = vadd.xlane.f32.xlu0 %v1575_v34 }
0x2054   :  { %v1574_v22 = vpop.xlane.xlu2 %1573 }
0x2055   :  { %v1578_v19 = vadd.f32 %v1574_v22, %v2850_v15 }
0x2056   :  { %v1577_v63 = vpop.xlane.xlu0 %1576 }
0x2057   :  { %1583 = vperm.xlu1 %2288, %v1578_v19   ;;  %v1579_v44 = vadd.f32 %v1577_v63, %v2853_v16  ;;  %v2446_v63 = vld [vmem:[%s3317_s8 + $0x28] sm:$0xff] }
0x205f   :  { %1586 = vperm.xlu1 %2288, %v1579_v44  }
0x2089   :  { %1477 = vmax.xlane.f32.xlu1 %v1476_v26 }
0x20c9   :  { %v1584_v27 = vpop.permute.xlu1 %1583 }
0x20ca   :  { %v1588_v35 = vperm.slane %v1584_v27, %v2828_v50 }
0x20d1   :  { %v1587_v33 = vpop.permute.xlu1 %1586 }
0x20d2   :  { %v1589_v42 = vperm.slane %v1587_v33, %v2828_v50 }
0x20d4   :  { %v1590_v43 = vsel %vm937_vm13, %v1589_v42, %v1588_v35 }
0x20d5   :  { %v1592_v45 = vsel %vm940_vm14, %v1590_v43, -inf }
0x20d6   :  { %1593 = vmax.xlane.f32.xlu2 %v1592_v45 }
0x20fc   :  { %v1478_v51 = vpop.xlane.xlu1 %1477 }
0x20fd   :  { %vm1479_vm2 = vcmp.eq.f32.partialorder %v3138_v14, %v1478_v51 }
0x20fe   :  { %v1480_v52 = vsel %vm1479_vm2, %v2828_v50, 12 }
0x20ff   :  { %v1481_v54 = vsel %vm1152_vm8, %v1480_v52, 2147483647 }
0x2100   :  { %v1483_v4 = vshra.s32 %v1481_v54, 16  ;;  %v1482_v38 = vand.u32 65535, %v1481_v54 }
0x2102   :  { %v1485_v55 = vcvt.s32.f32 %v1483_v4  ;;  %v1484_v39 = vcvt.s32.f32 %v1482_v38 }
0x2104   :  { %1486 = vmin.xlane.f32.xlu0 %v1485_v55 }
0x2149   :  { %v1594_v56 = vpop.xlane.xlu2 %1593 }
0x214a   :  { %v1596_v57 = vperm.slane %v1594_v56, 0  ;;  %v1597_v62 = vperm.slane %v1594_v56, 1 }
0x214c   :  { %v1600_v2 = vsub.f32 %v1578_v19, %v1596_v57  ;;  %v1601_v36 = vsub.f32 %v1579_v44, %v1597_v62  ;;  %v2445_v19 = vld [vmem:[%s3317_s8 + $0x38] sm:$0xff] }
0x214d   :  { %v2447_v44 = vld [vmem:[%s3317_s8 + $0x18] sm:$0xff] }
0x214e   :  { %v1602_v3 = vmul.f32 1.442695, %v1600_v2  ;;  %v1604_v37 = vmul.f32 1.442695, %v1601_v36 }
0x2150   :  { %2403 = vpow2.f32 %v1602_v3 }
0x2151   :  { %2405 = vpow2.f32 %v1604_v37 }
0x2156   :  { %v2404_v9 = vpop.eup %2403 }
0x2157   :  { %v3149_v11 = vpop.eup %2405  ;;  %1609 = vperm.xlu2 %2289, %v2404_v9  }
0x2158   :  { %1612 = vperm.xlu0 %2290, %v3149_v11  }
0x2177   :  { %v1487_v29 = vpop.xlane.xlu0 %1486 }
0x2178   :  { %vm1488_vm0 = vcmp.eq.f32.partialorder %v1485_v55, %v1487_v29  ;;  %v1493_v61 = vcvt.f32.s32 %v1487_v29 }
0x2179   :  { %v1489_v12 = vsel %vm1488_vm0, %v1484_v39, inf }
0x217a   :  { %v1494_v21 = vshll.u32 %v1493_v61, 16 }
0x2180   :  { %1490 = vmin.xlane.f32.xlu2 %v1489_v12 }
0x21b1   :  { %v1610_v40 = vpop.permute.xlu2 %1609 }
0x21b2   :  { %v1614_v17 = vperm.slane %v1610_v40, %v2828_v50 }
0x21ca   :  { %v1613_v59 = vpop.permute.xlu0 %1612 }
0x21cb   :  { %v1615_v60 = vperm.slane %v1613_v59, %v2828_v50 }
0x21cd   :  { %v1616_v28 = vsel %vm937_vm13, %v1615_v60, %v1614_v17 }
0x21ce   :  { %v1618_v20 = vsel %vm940_vm14, %v1616_v28, 0.0 }
0x21cf   :  { %1619 = vadd.xlane.f32.xlu0 %v1618_v20 }
0x21f3   :  { %v1491_v58 = vpop.xlane.xlu2 %1490 }
0x21f4   :  { %v1492_v18 = vcvt.f32.s32 %v1491_v58 }
0x21f6   :  { %v1495_v34 = vadd.s32 %v1494_v21, %v1492_v18 }
0x21f8   :  { %vm1496_vm9 = vcmp.eq.s32.totalorder %v2828_v50, %v1495_v34 }
0x21f9   :  { %v2257_v22 = vsel %vm1496_vm9, 1.0, %v2543_v7 }
0x21fa   :  { %2259 = vmatmul.msk.f32.vlgmr.msrb.gmra.mxu3 %vm774_vm15, %v2257_v22 }
0x21fb   :  { %1874 = vmatpush.msrb.mxu3 %v2445_v19 }
0x21fd   :  { %1875 = vmatpush.msrb.mxu3 %v2446_v63 }
0x21ff   :  { %1876 = vmatpush.msrb.mxu3 %v2447_v44 }
0x2201   :  { %1877 = vmatpush.msrb.mxu3 %v2448_v41 }
0x2242   :  { %v1620_v26 = vpop.xlane.xlu0 %1619 }
0x2243   :  { %v1622_v27 = vperm.slane %v1620_v26, 0  ;;  %v1623_v33 = vperm.slane %v1620_v26, 1 }
0x2245   :  { %2407 = vrcp.f32 %v1622_v27  ;;  %v1637_v54 = vand.u32 2147483648, %v1622_v27  ;;  %v1635_v55 = vand.u32 2147483647, %v1622_v27  ;;  %vm1631_vm11 = vweird.f32 %v1622_v27 }
0x2246   :  { %2409 = vrcp.f32 %v1623_v33  ;;  %v1652_v37 = vand.u32 2147483648, %v1623_v33  ;;  %vm1646_vm1 = vweird.f32 %v1623_v33  ;;  %v1650_v38 = vand.u32 2147483647, %v1623_v33 }
0x2247   :  { %v1638_v62 = vor.u32 1.1754944e-38, %v1637_v54  ;;  %vm1636_vm6 = vcmp.eq.f32.partialorder %v1635_v55, 8.507059e+37 }
0x2248   :  { %v1653_v12 = vor.u32 1.1754944e-38, %v1652_v37  ;;  %vm1651_vm0 = vcmp.eq.f32.partialorder %v1650_v38, 8.507059e+37 }
0x224b   :  { %v2408_v35 = vpop.eup %2407 }
0x224c   :  { %v2410_v42 = vpop.eup %2409  ;;  %v1627_v43 = vmul.f32 %v2408_v35, %v1622_v27  ;;  %vm1632_vm10 = vweird.f32 %v2408_v35 }
0x224d   :  { %v1642_v45 = vmul.f32 %v2410_v42, %v1623_v33  ;;  %vm1633_vm4 = vmor %vm1631_vm11, %vm1632_vm10  ;;  %vm1647_vm7 = vweird.f32 %v2410_v42 }
0x224e   :  { %v1628_v51 = vsub.f32 1.0, %v1627_v43  ;;  %vm1648_vm2 = vmor %vm1646_vm1, %vm1647_vm7 }
0x224f   :  { %v1643_v52 = vsub.f32 1.0, %v1642_v45 }
0x2250   :  { %v1629_v4 = vmul.f32 %v2408_v35, %v1628_v51 }
0x2251   :  { %v1644_v56 = vmul.f32 %v2410_v42, %v1643_v52  ;;  %v1539_v52 = vpop.f32.mrf.mxu0 }
0x2252   :  { %v1630_v57 = vadd.f32 %v2408_v35, %v1629_v4 }
0x2253   :  { %v1645_v36 = vadd.f32 %v2410_v42, %v1644_v56 }
0x2254   :  { %v1634_v2 = vsel %vm1633_vm4, %v2408_v35, %v1630_v57 }
0x2255   :  { %v1639_v3 = vsel %vm1636_vm6, %v1638_v62, %v1634_v2  ;;  %v1649_v39 = vsel %vm1648_vm2, %v2410_v42, %v1645_v36 }
0x2256   :  { %v1640_v29 = vmul.f32 %v2404_v9, %v1639_v3  ;;  %v1654_v40 = vsel %vm1651_vm0, %v1653_v12, %v1649_v39 }
0x2257   :  { %v1655_v59 = vmul.f32 %v3149_v11, %v1654_v40 }
0x2258   :  { %1658 = vperm.xlu1 %2288, %v1640_v29  }
0x2260   :  { %1663 = vperm.xlu1 %2288, %v1655_v59  }
0x227d   :  { %v1519_v17 = vpop.f32.mrf.mxu3 }
0x227e   :  { %2263 = vmatmul.msk.f32.vlgmr.msra.gmra.mxu3 %vm103_vm5, %v1519_v17 }
0x22ca   :  { %v3173_v60 = vpop.permute.xlu1 %1658 }
0x22cb   :  { %v1666_v28 = vmul.f32 %v3173_v60, %v2773_v31 }
0x22cd   :  { %v1668_v9 = vsel %vm1017_vm12, %v1666_v28, 0.0 }
0x22ce   :  { %v1669_v20 = vrot.slane %v1668_v9, 4 }
0x22d0   :  { %v1670_v61 = vadd.f32 %v1669_v20, %v1668_v9 }
0x22d2   :  { %v3178_v58 = vpop.permute.xlu1 %1663  ;;  %v1671_v18 = vrot.slane %v1670_v61, 2 }
0x22d3   :  { %v1667_v21 = vmul.f32 %v3178_v58, %v2775_v32 }
0x22d4   :  { %v1672_v22 = vadd.f32 %v1671_v18, %v1670_v61  ;;  %v2449_v61 = vld [vmem:[%s3316_s7] ss:$0 sm:$0xff] }
0x22d5   :  { %v1675_v11 = vsel %vm1017_vm12, %v1667_v21, 0.0 }
0x22d6   :  { %v1676_v34 = vrot.slane %v1675_v11, 4  ;;  %v1673_v41 = vrot.slane %v1672_v22, 1 }
0x22d8   :  { %v1677_v19 = vadd.f32 %v1676_v34, %v1675_v11  ;;  %v1674_v27 = vadd.f32 %v1673_v41, %v1672_v22 }
0x22da   :  { %v1678_v63 = vrot.slane %v1677_v19, 2 }
0x22dc   :  { %v1679_v44 = vadd.f32 %v1678_v63, %v1677_v19 }
0x22de   :  { %v1680_v26 = vrot.slane %v1679_v44, 1 }
0x22e0   :  { %v1681_v33 = vadd.f32 %v1680_v26, %v1679_v44 }
0x22e2   :  { %v1684_v35 = vsel %vm937_vm13, %v1681_v33, %v1674_v27 }
0x22e3   :  { %1685 = vrot.lane.b32.xlu1 %v1684_v35, %s2545_s4 }
0x2301   :  { %v1729_v43 = vpop.f32.mrf.mxu3 }
0x2355   :  { %v1686_v42 = vpop.permute.xlu1 %1685 }
0x2356   :  { %2262 = vmatmul.msk.f32.vlgmr.msrb.gmra.mxu2 %vm103_vm5, %v1686_v42 }
0x2357   :  { %2108 = vmatpush.msrb.mxu2 %v2977_v46 }
0x2359   :  { %2109 = vmatpush.msrb.mxu2 %v2982_v47 }
0x235b   :  { %2110 = vmatpush.msrb.mxu2 %v2989_v48 }
0x235d   :  { %2111 = vmatpush.msrb.mxu2 %v2996_v49 }
0x23d9   :  { %v1706_v45 = vpop.f32.mrf.mxu2 }
0x23da   :  { %v1730_v51 = vadd.f32 %v1729_v43, %v1706_v45 }
0x23dc   :  { %v1732_v54 = vadd.f32 %v1730_v51, %v1539_v52 }
0x23de   :  { %v1733_v4 = vadd.f32 %v2965_v0, %v1732_v54 }
0x23e0   :  { %2411 = vtanh.f32 %v1733_v4  ;;  %v2264_v56 = vmul.f32 -1.442695, %v1733_v4 }
0x23e2   :  { %2413 = vpow2.f32 %v2264_v56 }
0x23e6   :  { %v2412_v55 = vpop.eup %2411 }
0x23e7   :  { %1756 = vrot.lane.b32.xlu2 %v2412_v55, %s2544_s27 }
0x23e8   :  { %v2414_v46 = vpop.eup %2413 }
0x23e9   :  { %v1737_v57 = vadd.f32 1.0, %v2414_v46 }
0x23eb   :  { %2415 = vrcp.f32 %v1737_v57  ;;  %v1749_v36 = vand.u32 2147483648, %v1737_v57  ;;  %vm1743_vm10 = vweird.f32 %v1737_v57  ;;  %v1747_v3 = vand.u32 2147483647, %v1737_v57 }
0x23ed   :  { %v1750_v37 = vor.u32 1.1754944e-38, %v1749_v36  ;;  %vm1748_vm4 = vcmp.eq.f32.partialorder %v1747_v3, 8.507059e+37 }
0x23f1   :  { %v2416_v47 = vpop.eup %2415 }
0x23f2   :  { %v1739_v48 = vmul.f32 %v2416_v47, %v1737_v57  ;;  %vm1744_vm9 = vweird.f32 %v2416_v47 }
0x23f3   :  { %vm1745_vm11 = vmor %vm1743_vm10, %vm1744_vm9 }
0x23f4   :  { %v1740_v62 = vsub.f32 1.0, %v1739_v48 }
0x23f6   :  { %v1741_v49 = vmul.f32 %v2416_v47, %v1740_v62 }
0x23f8   :  { %v1742_v2 = vadd.f32 %v2416_v47, %v1741_v49 }
0x23fa   :  { %v1746_v0 = vsel %vm1745_vm11, %v2416_v47, %v1742_v2 }
0x23fb   :  { %v1751_v38 = vsel %vm1748_vm4, %v1750_v37, %v1746_v0 }
0x23fc   :  { %v1754_v12 = vmul.f32 %v1751_v38, %v3110_v8 }
0x2441   :  { %v1757_v29 = vpop.permute.xlu2 %1756 }
0x2442   :  { %v1759_v39 = vmul.f32 %v1757_v29, %v1751_v38 }
0x2444   :  { %1761 = vrot.lane.b32.xlu0 %v1759_v39, %s2545_s4 }
0x24b6   :  { %v1762_v40 = vpop.permute.xlu0 %1761 }
0x24b7   :  { %v3194_v59 = vadd.f32 %v1762_v40, %v1754_v12 }
0x24b9   :  { %2417 = vtanh.f32 %v3194_v59 }
0x24bf   :  { %v2418_v17 = vpop.eup %2417 }
0x24c0   :  { %1767 = vrot.lane.b32.xlu1 %v2418_v17, %s2544_s27 }
0x2532   :  { %v1768_v28 = vpop.permute.xlu1 %1767 }
0x2533   :  { %v1770_v9 = vmul.f32 %v1768_v28, %v1751_v38 }
0x2535   :  { %1772 = vrot.lane.b32.xlu1 %v1770_v9, %s2545_s4 }
0x25a7   :  { %v1773_v20 = vpop.permute.xlu1 %1772 }
0x25a8   :  { %2265 = vmatmul.msk.f32.vlgmr.msra.gmra.mxu0 %vm103_vm5, %v1773_v20  ;;  %2269 = vmatmul.msk.f32.vlgmr.msra.gmra.mxu2 %vm103_vm5, %v1773_v20 }
0x25a9   :  { %2270 = vmatmul.msk.f32.vlgmr.msrb.gmra.mxu3 %vm103_vm5, %v1773_v20 }
0x2625   :  { %v1793_v42 = vpop.f32.mrf.mxu0 }
0x262c   :  { %v1879_v8 = vpop.f32.mrf.mxu3 }
0x262d   :  { %v1882_v21 = vadd.f32 %v2449_v61, %v1879_v8 }
0x262f   :  { %2419 = vtanh.f32 %v1882_v21 }
0x2635   :  { %v2420_v18 = vpop.eup %2419 }
0x2636   :  { %v1886_v11 = vperm.slane %v2420_v18, 0  ;;  %v1885_v34 = vrot.slane %v2420_v18, 1 }
0x2638   :  { %v1890_v22 = vmul.f32 %v1886_v11, %v2842_v5  ;;  %v1887_v19 = vperm.slane %v1885_v34, 0  ;;  %v3212_v5 = vadd.f32 %v3028_v30, %v1793_v42 }
0x263a   :  { %v1892_v63 = vsel %vm103_vm5, %v1890_v22, 0.0  ;;  %v1891_v44 = vmul.f32 %v1887_v19, %v2846_v13  ;;  %v1796_v43 = vsel %vm1152_vm8, %v3212_v5, -inf }
0x263b   :  { %1893 = vadd.xlane.f32.xlu0 %v1892_v63 }
0x263c   :  { %v1895_v41 = vsel %vm103_vm5, %v1891_v44, 0.0 }
0x263d   :  { %1896 = vadd.xlane.f32.xlu1 %v1895_v41 }
0x26ae   :  { %v1894_v26 = vpop.xlane.xlu0 %1893 }
0x26af   :  { %v1898_v27 = vadd.f32 %v1894_v26, %v2850_v15 }
0x26b0   :  { %v1897_v33 = vpop.xlane.xlu1 %1896 }
0x26b1   :  { %1903 = vperm.xlu2 %2289, %v1898_v27   ;;  %v1899_v35 = vadd.f32 %v1897_v33, %v2853_v16 }
0x26b9   :  { %1906 = vperm.xlu2 %2289, %v1899_v35  }
0x26e2   :  { %1797 = vmax.xlane.f32.xlu2 %v1796_v43 }
0x270b   :  { %v1904_v13 = vpop.permute.xlu2 %1903 }
0x270c   :  { %v1908_v51 = vperm.slane %v1904_v13, %v2828_v50 }
0x2713   :  { %v1907_v45 = vpop.permute.xlu2 %1906 }
0x2714   :  { %v1909_v52 = vperm.slane %v1907_v45, %v2828_v50 }
0x2716   :  { %v1910_v15 = vsel %vm937_vm13, %v1909_v52, %v1908_v51 }
0x2717   :  { %v1912_v54 = vsel %vm940_vm14, %v1910_v15, -inf }
0x2718   :  { %1913 = vmax.xlane.f32.xlu0 %v1912_v54 }
0x2755   :  { %v1798_v16 = vpop.xlane.xlu2 %1797 }
0x2756   :  { %vm1799_vm6 = vcmp.eq.f32.partialorder %v3212_v5, %v1798_v16 }
0x2757   :  { %v1800_v30 = vsel %vm1799_vm6, %v2828_v50, 12  ;;  %vm2168_vm6 = vcmask 60416  }
0x2758   :  { %v1801_v4 = vsel %vm1152_vm8, %v1800_v30, 2147483647 }
0x2759   :  { %v1803_v55 = vshra.s32 %v1801_v4, 16  ;;  %v1802_v0 = vand.u32 65535, %v1801_v4 }
0x275b   :  { %v1805_v56 = vcvt.s32.f32 %v1803_v55  ;;  %v1804_v29 = vcvt.s32.f32 %v1802_v0 }
0x275d   :  { %1806 = vmin.xlane.f32.xlu1 %v1805_v56 }
0x278b   :  { %v1914_v46 = vpop.xlane.xlu0 %1913 }
0x278c   :  { %v1916_v57 = vperm.slane %v1914_v46, 0  ;;  %v1917_v47 = vperm.slane %v1914_v46, 1 }
0x278e   :  { %v1920_v48 = vsub.f32 %v1898_v27, %v1916_v57  ;;  %v1921_v62 = vsub.f32 %v1899_v35, %v1917_v47  ;;  %v778_v57 = vsel %vm774_vm15, %v2826_v1, -inf }
0x2790   :  { %v1922_v49 = vmul.f32 1.442695, %v1920_v48  ;;  %v1924_v2 = vmul.f32 1.442695, %v1921_v62  ;;  %v2151_v48 = vperm.slane %v3089_v53, %v2828_v50  ;;  %v2155_v62 = vperm.slane %v3178_v58, %v2828_v50 }
0x2792   :  { %2421 = vpow2.f32 %v1922_v49  ;;  %v2147_v49 = vperm.slane %v2945_v25, %v2828_v50  ;;  %v2150_v25 = vperm.slane %v3094_v6, %v2828_v50 }
0x2793   :  { %2423 = vpow2.f32 %v1924_v2 }
0x2798   :  { %v2422_v36 = vpop.eup %2421 }
0x2799   :  { %v2424_v3 = vpop.eup %2423  ;;  %1929 = vperm.xlu0 %2290, %v2422_v36  }
0x279a   :  { %1932 = vperm.xlu1 %2288, %v2424_v3  }
0x27d0   :  { %v1807_v37 = vpop.xlane.xlu1 %1806 }
0x27d1   :  { %vm1808_vm8 = vcmp.eq.f32.partialorder %v1805_v56, %v1807_v37  ;;  %v1813_v20 = vcvt.f32.s32 %v1807_v37 }
0x27d2   :  { %v1809_v38 = vsel %vm1808_vm8, %v1804_v29, inf  ;;  %vm3337_vm8 = vcmask 1041408  }
0x27d3   :  { %1810 = vmin.xlane.f32.xlu2 %v1809_v38  ;;  %v1814_v61 = vshll.u32 %v1813_v20, 16  ;;  %v2154_v38 = vperm.slane %v3173_v60, %v2828_v50 }
0x280b   :  { %v1930_v39 = vpop.permute.xlu0 %1929 }
0x280c   :  { %v1934_v12 = vperm.slane %v1930_v39, %v2828_v50  ;;  %v1933_v40 = vpop.permute.xlu1 %1932 }
0x280d   :  { %v1935_v17 = vperm.slane %v1933_v40, %v2828_v50 }
0x280f   :  { %v1936_v28 = vsel %vm937_vm13, %v1935_v17, %v1934_v12  ;;  %v2146_v12 = vperm.slane %v2943_v24, %v2828_v50 }
0x2810   :  { %v1938_v9 = vsel %vm940_vm14, %v1936_v28, 0.0 }
0x2811   :  { %1939 = vadd.xlane.f32.xlu2 %v1938_v9  ;;  %v2162_v17 = vsel %vm712_vm3, %v2146_v12, %v2150_v25 }
0x2846   :  { %v1811_v8 = vpop.xlane.xlu2 %1810 }
0x2847   :  { %v1812_v21 = vcvt.f32.s32 %v1811_v8 }
0x2849   :  { %v1815_v18 = vadd.s32 %v1814_v61, %v1812_v21 }
0x284b   :  { %vm1816_vm7 = vcmp.eq.s32.totalorder %v2828_v50, %v1815_v18 }
0x284c   :  { %v2266_v11 = vsel %vm1816_vm7, 1.0, %v2543_v7  ;;  %vm3338_vm7 = vcmask 1042432  }
0x284d   :  { %2268 = vmatmul.msk.f32.vlgmr.msrb.gmra.mxu1 %vm774_vm15, %v2266_v11 }
0x2884   :  { %v1940_v34 = vpop.xlane.xlu2 %1939 }
0x2885   :  { %v1942_v22 = vperm.slane %v1940_v34, 0  ;;  %v1943_v19 = vperm.slane %v1940_v34, 1 }
0x2887   :  { %2425 = vrcp.f32 %v1942_v22  ;;  %v1957_v35 = vand.u32 2147483648, %v1942_v22  ;;  %v1972_v42 = vand.u32 2147483648, %v1943_v19  ;;  %v1955_v13 = vand.u32 2147483647, %v1942_v22 }
0x2888   :  { %2427 = vrcp.f32 %v1943_v19  ;;  %v1970_v7 = vand.u32 2147483647, %v1943_v19  ;;  %vm1951_vm2 = vweird.f32 %v1942_v22  ;;  %vm1966_vm0 = vweird.f32 %v1943_v19 }
0x2889   :  { %v1958_v15 = vor.u32 1.1754944e-38, %v1957_v35  ;;  %v1973_v54 = vor.u32 1.1754944e-38, %v1972_v42  ;;  %vm1956_vm11 = vcmp.eq.f32.partialorder %v1955_v13, 8.507059e+37 }
0x288a   :  { %vm1971_vm4 = vcmp.eq.f32.partialorder %v1970_v7, 8.507059e+37 }
0x288d   :  { %v2426_v63 = vpop.eup %2425 }
0x288e   :  { %v2428_v44 = vpop.eup %2427  ;;  %v1947_v41 = vmul.f32 %v2426_v63, %v1942_v22  ;;  %vm1952_vm14 = vweird.f32 %v2426_v63 }
0x288f   :  { %v1962_v26 = vmul.f32 %v2428_v44, %v1943_v19  ;;  %vm1967_vm1 = vweird.f32 %v2428_v44  ;;  %vm1953_vm9 = vmor %vm1951_vm2, %vm1952_vm14 }
0x2890   :  { %v1948_v27 = vsub.f32 1.0, %v1947_v41  ;;  %vm1968_vm10 = vmor %vm1966_vm0, %vm1967_vm1 }
0x2891   :  { %v1963_v33 = vsub.f32 1.0, %v1962_v26  ;;  %vm3339_vm14 = vmmov %vm3337_vm8  ;;  %v1859_v26 = vpop.f32.mrf.mxu2 }
0x2892   :  { %v1949_v43 = vmul.f32 %v2426_v63, %v1948_v27  ;;  %v2164_v9 = vsel %vm3339_vm14, %v2162_v17, %v2154_v38  ;;  %vm3340_vm1 = vmmov %vm3338_vm7 }
0x2893   :  { %v1964_v45 = vmul.f32 %v2428_v44, %v1963_v33  ;;  %v2450_v33 = vld [vmem:[%s3336_s25] ss:$0 sm:$0xff] }
0x2894   :  { %v1950_v51 = vadd.f32 %v2426_v63, %v1949_v43 }
0x2895   :  { %v1965_v52 = vadd.f32 %v2428_v44, %v1964_v45 }
0x2896   :  { %v1954_v16 = vsel %vm1953_vm9, %v2426_v63, %v1950_v51  ;;  %vm3342_vm9 = vmmov %vm3340_vm1 }
0x2897   :  { %v1969_v30 = vsel %vm1968_vm10, %v2428_v44, %v1965_v52  ;;  %v1959_v4 = vsel %vm1956_vm11, %v1958_v15, %v1954_v16  ;;  %vm3343_vm10 = vmmov %vm3337_vm8 }
0x2898   :  { %v1974_v55 = vsel %vm1971_vm4, %v1973_v54, %v1969_v30  ;;  %v1960_v56 = vmul.f32 %v2422_v36, %v1959_v4  ;;  %v2163_v36 = vsel %vm712_vm3, %v2147_v49, %v2151_v48  ;;  %vm3344_vm11 = vmmov %vm3340_vm1 }
0x2899   :  { %v1975_v46 = vmul.f32 %v2424_v3, %v1974_v55  ;;  %v2165_v0 = vsel %vm3337_vm8, %v2163_v36, %v2155_v62 }
0x289a   :  { %1978 = vperm.xlu0 %2290, %v1960_v56  }
0x289b   :  { %1983 = vperm.xlu2 %2289, %v1975_v46  }
0x28c4   :  { %779 = vmax.xlane.f32.xlu2 %v778_v57 }
0x28ca   :  { %v1839_v47 = vpop.f32.mrf.mxu1 }
0x28cb   :  { %2272 = vmatmul.msk.f32.vlgmr.msra.gmra.mxu1 %vm103_vm5, %v1839_v47 }
0x28f5   :  { %v1984_v2 = vpop.permute.xlu2 %1983 }
0x28f6   :  { %v2159_v3 = vperm.slane %v1984_v2, %v2828_v50  ;;  %v1987_v53 = vmul.f32 %v1984_v2, %v2775_v32 }
0x28f8   :  { %v2167_v37 = vsel %vm3338_vm7, %v2165_v0, %v2159_v3  ;;  %v1995_v29 = vsel %vm1017_vm12, %v1987_v53, 0.0  ;;  %v775_v0 = vsel %vm774_vm15, %v2823_v10, -inf }
0x28f9   :  { %2170 = vst.msk [vmem:[#allocation8 + $0x4] sm:$0xf] %vm2168_vm6, %v2167_v37  ;;  %v1996_v58 = vrot.slane %v1995_v29, 4 }
0x28fb   :  { %v1997_v39 = vadd.f32 %v1996_v58, %v1995_v29 }
0x28fd   :  { %v1998_v20 = vrot.slane %v1997_v39, 2 }
0x28ff   :  { %v1999_v60 = vadd.f32 %v1998_v20, %v1997_v39 }
0x2901   :  { %v2000_v11 = vrot.slane %v1999_v60, 1 }
0x290c   :  { %v1979_v40 = vpop.permute.xlu0 %1978 }
0x290d   :  { %v1986_v28 = vmul.f32 %v1979_v40, %v2773_v31  ;;  %v2158_v32 = vperm.slane %v1979_v40, %v2828_v50  ;;  %v2001_v31 = vadd.f32 %v2000_v11, %v1999_v60  ;;  %v2125_v60 = vperm.slane %v3138_v14, 0  ;;  %v2451_v11 = vld [vmem:[%s3322_s13] ss:$0 sm:$0xff]  ;;  %s2201_s13 = sshll.u32 %s2552_s10, 4  ;;  %s2202_s13 = int_to_ptr.vmem [resolvable:$true] %s2201_s13 }
0x290f   :  { %v1988_v8 = vsel %vm1017_vm12, %v1986_v28, 0.0  ;;  %v2166_v6 = vsel %vm3340_vm1, %v2164_v9, %v2158_v32 }
0x2910   :  { %v1989_v61 = vrot.slane %v1988_v8, 4  ;;  %2169 = vst.msk [vmem:[#allocation8] sm:$0xf] %vm2168_vm6, %v2166_v6  ;;  %v2120_v6 = vrot.slane %v3138_v14, 1 }
0x2912   :  { %v1990_v21 = vadd.f32 %v1989_v61, %v1988_v8  ;;  %v2122_v61 = vrot.slane %v3212_v5, 1 }
0x2914   :  { %v1991_v24 = vrot.slane %v1990_v21, 2 }
0x2916   :  { %v1992_v18 = vadd.f32 %v1991_v24, %v1990_v21  ;;  %v2129_v21 = vperm.slane %v3212_v5, 0 }
0x2918   :  { %v1993_v34 = vrot.slane %v1992_v18, 1 }
0x291a   :  { %v1994_v22 = vadd.f32 %v1993_v34, %v1992_v18  ;;  %v2126_v18 = vperm.slane %v2120_v6, 0 }
0x291c   :  { %v2004_v50 = vsel %vm937_vm13, %v2001_v31, %v1994_v22  ;;  %v2117_v22 = vrot.slane %v3031_v23, 1  ;;  %v2130_v31 = vperm.slane %v2122_v61, 0 }
0x291d   :  { %2005 = vrot.lane.b32.xlu1 %v2004_v50, %s2545_s4 }
0x2937   :  { %v780_v2 = vpop.xlane.xlu2 %779 }
0x2938   :  { %v782_v36 = vsub.f32 %v2826_v1, %v780_v2 }
0x293a   :  { %v785_v3 = vmul.f32 1.442695, %v782_v36 }
0x2948   :  { %v2049_v63 = vpop.f32.mrf.mxu1 }
0x298f   :  { %v2006_v19 = vpop.permute.xlu1 %2005 }
0x2990   :  { %2271 = vmatmul.msk.f32.vlgmr.msrb.gmra.mxu0 %vm103_vm5, %v2006_v19 }
0x2a0d   :  { %v2026_v44 = vpop.f32.mrf.mxu0 }
0x2a0e   :  { %v2050_v41 = vadd.f32 %v2049_v63, %v2026_v44  ;;  %v2137_v63 = vsel %vm712_vm3, %v3031_v23, %v2125_v60  ;;  %v2138_v44 = vsel %vm712_vm3, %v2117_v22, %v2126_v18 }
0x2a0f   :  { %v2140_v23 = vsel %vm3343_vm10, %v2138_v44, %v2130_v31 }
0x2a10   :  { %v2052_v27 = vadd.f32 %v2050_v41, %v1859_v26 }
0x2a12   :  { %v2053_v35 = vadd.f32 %v2450_v33, %v2052_v27 }
0x2a14   :  { %2429 = vtanh.f32 %v2053_v35  ;;  %v2273_v43 = vmul.f32 -1.442695, %v2053_v35 }
0x2a16   :  { %2431 = vpow2.f32 %v2273_v43 }
0x2a1a   :  { %v2430_v42 = vpop.eup %2429 }
0x2a1b   :  { %2076 = vrot.lane.b32.xlu0 %v2430_v42, %s2544_s27 }
0x2a1c   :  { %v2432_v13 = vpop.eup %2431 }
0x2a1d   :  { %v2057_v45 = vadd.f32 1.0, %v2432_v13 }
0x2a1f   :  { %2433 = vrcp.f32 %v2057_v45  ;;  %v2069_v16 = vand.u32 2147483648, %v2057_v45  ;;  %vm2063_vm12 = vweird.f32 %v2057_v45  ;;  %v2067_v30 = vand.u32 2147483647, %v2057_v45 }
0x2a21   :  { %v2070_v55 = vor.u32 1.1754944e-38, %v2069_v16  ;;  %vm2068_vm0 = vcmp.eq.f32.partialorder %v2067_v30, 8.507059e+37 }
0x2a25   :  { %v2434_v7 = vpop.eup %2433 }
0x2a26   :  { %v2059_v51 = vmul.f32 %v2434_v7, %v2057_v45  ;;  %vm2064_vm13 = vweird.f32 %v2434_v7 }
0x2a27   :  { %vm2065_vm2 = vmor %vm2063_vm12, %vm2064_vm13 }
0x2a28   :  { %v2060_v52 = vsub.f32 1.0, %v2059_v51 }
0x2a2a   :  { %v2061_v15 = vmul.f32 %v2434_v7, %v2060_v52 }
0x2a2c   :  { %v2062_v54 = vadd.f32 %v2434_v7, %v2061_v15 }
0x2a2e   :  { %v2066_v4 = vsel %vm2065_vm2, %v2434_v7, %v2062_v54 }
0x2a2f   :  { %v2071_v46 = vsel %vm2068_vm0, %v2070_v55, %v2066_v4 }
0x2a30   :  { %v2074_v47 = vmul.f32 %v2071_v46, %v3194_v59 }
0x2a8d   :  { %v2077_v56 = vpop.permute.xlu0 %2076 }
0x2a8e   :  { %v2079_v57 = vmul.f32 %v2077_v56, %v2071_v46 }
0x2a90   :  { %2081 = vrot.lane.b32.xlu1 %v2079_v57, %s2545_s4 }
0x2b02   :  { %v2082_v48 = vpop.permute.xlu1 %2081 }
0x2b03   :  { %v2084_v62 = vadd.f32 %v2082_v48, %v2074_v47 }
0x2b05   :  { %2435 = vtanh.f32 %v2084_v62 }
0x2b06   :  { %2437 = vpow2.f32 %v785_v3 }
0x2b0b   :  { %v2436_v49 = vpop.eup %2435 }
0x2b0c   :  { %2087 = vrot.lane.b32.xlu0 %v2436_v49, %s2544_s27  ;;  %v2438_v37 = vpop.eup %2437 }
0x2b0d   :  { %v790_v53 = vsel %vm774_vm15, %v2438_v37, 0.0 }
0x2b36   :  { %776 = vmax.xlane.f32.xlu0 %v775_v0 }
0x2b3e   :  { %791 = vadd.xlane.f32.xlu0 %v790_v53 }
0x2b7e   :  { %v2088_v59 = vpop.permute.xlu0 %2087 }
0x2b7f   :  { %v2090_v29 = vmul.f32 %v2088_v59, %v2071_v46 }
0x2b81   :  { %2092 = vrot.lane.b32.xlu1 %v2090_v29, %s2545_s4  ;;  %s2548_s4 = smov [#allocation4]  }
0x2b82   :  { %s2175_s25 = sshll.u32 %s2548_s4, 4  ;;  %s2176_s25 = int_to_ptr.vmem [resolvable:$true] %s2175_s25 }
0x2ba9   :  { %v777_v58 = vpop.xlane.xlu0 %776 }
0x2baa   :  { %v781_v25 = vsub.f32 %v2823_v10, %v777_v58 }
0x2bac   :  { %v783_v38 = vmul.f32 1.442695, %v781_v25 }
0x2bae   :  { %2439 = vpow2.f32 %v783_v38 }
0x2bb1   :  { %v792_v1 = vpop.xlane.xlu0 %791 }
0x2bb2   :  { %2441 = vlog2.f32 %v792_v1 }
0x2bb4   :  { %v2440_v39 = vpop.eup %2439 }
0x2bb5   :  { %v787_v12 = vsel %vm774_vm15, %v2440_v39, 0.0 }
0x2bb6   :  { %788 = vadd.xlane.f32.xlu1 %v787_v12 }
0x2bb8   :  { %v2442_v40 = vpop.eup %2441 }
0x2bb9   :  { %v796_v17 = vmul.f32 0.6931472, %v2442_v40 }
0x2bbb   :  { %v798_v28 = vsub.f32 %v782_v36, %v796_v17 }
0x2bbd   :  { %800 = vst.msk [vmem:[#allocation4 + $0x8] sm:$0xff] %vm774_vm15, %v798_v28 }
0x2bf3   :  { %v2093_v32 = vpop.permute.xlu1 %2092 }
0x2bf4   :  { %2274 = vmatmul.msk.f32.vlgmr.msrb.gmra.mxu2 %vm103_vm5, %v2093_v32  ;;  %vm2143_vm5 = vcmask 93184  }
0x2c29   :  { %v789_v9 = vpop.xlane.xlu1 %788 }
0x2c2a   :  { %2443 = vlog2.f32 %v789_v9 }
0x2c30   :  { %v2444_v10 = vpop.eup %2443 }
0x2c31   :  { %v794_v20 = vmul.f32 0.6931472, %v2444_v10 }
0x2c33   :  { %v797_v8 = vsub.f32 %v781_v25, %v794_v20 }
0x2c35   :  { %799 = vst.msk [vmem:[#allocation4] sm:$0xff] %vm774_vm15, %v797_v8  ;;  %vm3341_vm15 = vmmov %vm3337_vm8 }
0x2c36   :  { %2183 = dma.vmem_to_hbm [thread:$0]  %s2176_s25, 256, %s2178_s28, [#allocation5], %s2549_s29, %s2549_s29, %s2550_s0   ;;  %v2139_v14 = vsel %vm3341_vm15, %v2137_v63, %v2129_v21 }
0x2c77   :  { %v2113_v24 = vpop.f32.mrf.mxu2 }
0x2c78   :  { %v2114_v34 = vadd.f32 %v2451_v11, %v2113_v24 }
0x2c7a   :  { %v2124_v50 = vrot.slane %v2114_v34, 1  ;;  %v2133_v19 = vperm.slane %v2114_v34, 0 }
0x2c7c   :  { %v2134_v5 = vperm.slane %v2124_v50, 0  ;;  %v2141_v41 = vsel %vm3342_vm9, %v2139_v14, %v2133_v19 }
0x2c7d   :  { %2144 = vst.msk [vmem:[#allocation6] sm:$0xf] %vm2143_vm5, %v2141_v41 }
0x2c7e   :  { %v2142_v26 = vsel %vm3344_vm11, %v2140_v23, %v2134_v5 }
0x2c7f   :  { %2145 = vst.msk [vmem:[#allocation6 + $0x4] sm:$0xf] %vm2143_vm5, %v2142_v26 }
0x2c80   :  { %2196 = dma.vmem_to_hbm [thread:$0]  %s2189_s18, 128, %s2191_s1, [#allocation7], %s2544_s27, %s2544_s27, %s2553_s16  }
0x2c81   :  { %2209 = dma.vmem_to_hbm [thread:$0]  %s2202_s13, 128, %s2204_s20, [#allocation7], %s2544_s27, %s2544_s27, %s2553_s16  }
0x2c82   :  { %2538 = dma.done.wait [#allocation5], 256  }
0x2c83   :  { %2539 = vsyncadd [#allocation5], 4294967040 }
0x2c84   :  { %2540 = dma.done.wait [#allocation7], 256  }
0x2c85   :  { %2541 = vsyncadd [#allocation7], 4294967040 }
0x2c86   :  { %2222 = vsyncpa [#allocation5], 1 }
0x2c87   :  { %2223 = vsyncpa [#allocation7], 1 }

</bundles_post_ra>
